<compile_context>
chip_gen: v7x
topology: tpu7x:2x2x1
jax: 0.10.0
libtpu: 0.0.40
codegen_flags: <defaults>
</compile_context>

<pallas_src>
import numpy as np

import jax
import jax.numpy as jnp
from jax.experimental import pallas as pl
from jax.experimental.pallas import tpu as pltpu


# ----------------------------- Pallas kernel --------------------------------
def _make_cbam_kernel(C, HW, HWp, mid, Bn, needs_hw_mask):
    inv_hw = 1.0 / HW

    def kernel(x_ref, wfc1_t_ref, bfc1_ref, wfc2_t_ref, bfc2_ref,
               kmat_ref, bnshift_ref, out_ref):
        x = x_ref[...].astype(jnp.float32)                    # (Bn, C, HWp)

        # ---------------- channel attention (shared MLP) --------------------
        # avg pool: padded lanes are zero, so sum / true-HW is the exact mean.
        avg = jnp.sum(x, axis=2) * inv_hw                     # (Bn, C)
        if needs_hw_mask:
            mx = jnp.max(x[:, :, :HW], axis=2)                # ignore zero pad
        else:
            mx = jnp.max(x, axis=2)                           # (Bn, C)

        # shared MLP, both pools in one pass: (2*Bn, C) -> (2*Bn, C)
        v = jnp.concatenate([avg, mx], axis=0)                # (2*Bn, C)
        h = jnp.maximum(
            jnp.dot(v, wfc1_t_ref[...], preferred_element_type=jnp.float32)
            + bfc1_ref[...], 0.0)                             # (2*Bn, mid)
        o = (jnp.dot(h, wfc2_t_ref[...], preferred_element_type=jnp.float32)
             + bfc2_ref[...])                                 # (2*Bn, C)
        ch_att = jax.nn.sigmoid(o[:Bn] + o[Bn:])              # (Bn, C)
        x1 = x * ch_att[:, :, None]                           # (Bn, C, HWp)

        # ---------------- spatial attention (banded-matrix MXU conv) --------
        a = jnp.mean(x1, axis=1)                              # (Bn, HWp) ch-avg
        m = jnp.max(x1, axis=1)                               # (Bn, HWp) ch-max
        am = jnp.concatenate([a, m], axis=1)                  # (Bn, 2*HWp)
        # Kmat already has the 7x7 weights * BN scale * zero-pad boundary mask
        # baked in; padded lanes contribute zero (their a/m rows are zero and
        # their Kmat rows/cols are zero).
        conv = jnp.dot(am, kmat_ref[...],
                       preferred_element_type=jnp.float32)    # (Bn, HWp)
        sp_att = jax.nn.sigmoid(conv + bnshift_ref[...])      # (Bn, HWp)

        out_ref[...] = (x1 * sp_att[:, None, :]).astype(out_ref.dtype)

    return kernel


def _spatial_conv_indices(H, W, HWp, K=7):
    """Static scatter indices for the banded conv matrix (numpy, shape-only).

    Returns (rows, cols, widx) such that
        Kmat[rows, cols] += wflat[widx]
    builds the (2*HWp, HWp) matrix with
        Kmat[c*HWp + p, q] = w[c, ky, kx]   for p = q + tap offset, in-bounds.
    """
    P = K // 2
    HW = H * W
    rr = np.repeat(np.arange(H), W)                 # output row per pixel q
    cc = np.tile(np.arange(W), H)                   # output col per pixel q
    q_idx = np.arange(HW)

    rows, cols, widx = [], [], []
    for ky in range(K):
        for kx in range(K):
            pr = rr + ky - P
            pc = cc + kx - P
            ok = (pr >= 0) & (pr < H) & (pc >= 0) & (pc < W)
            p = (pr * W + pc)[ok]
            q = q_idx[ok]
            t = ky * K + kx
            for c in range(2):
                rows.append(c * HWp + p)
                cols.append(q)
                widx.append(np.full(p.shape, c * K * K + t, dtype=np.int32))
    return (np.concatenate(rows).astype(np.int32),
            np.concatenate(cols).astype(np.int32),
            np.concatenate(widx))


def cbam_pallas(x, p):
    N, C, H, W = x.shape
    HW = H * W
    HWp = ((HW + 127) // 128) * 128                # lane-dense pixel axis
    mid = p['fc1_w'].shape[0]
    f32 = jnp.float32
    eps = 1e-5

    # Fold BatchNorm2d(1) (eval mode): scale into the conv weights, shift
    # added before the sigmoid.
    bn_scale = p['bn_gamma'] / jnp.sqrt(p['bn_var'] + eps)    # (1,)
    bn_shift = p['bn_beta'] - p['bn_mean'] * bn_scale         # (1,)

    # Banded masked-weight matrix for the 7x7 (2 -> 1 ch) conv, BN folded.
    wflat = (p['conv_w'].reshape(2, 49).astype(f32) * bn_scale[0]).reshape(-1)
    rows, cols, widx = _spatial_conv_indices(H, W, HWp)
    kmat = jnp.zeros((2 * HWp, HWp), f32).at[rows, cols].add(wflat[widx])

    args = dict(
        wfc1_t=p['fc1_w'].T.astype(f32),                   # (C, mid)
        bfc1=p['fc1_b'].reshape(1, mid).astype(f32),       # (1, mid)
        wfc2_t=p['fc2_w'].T.astype(f32),                   # (mid, C)
        bfc2=p['fc2_b'].reshape(1, C).astype(f32),         # (1, C)
        kmat=kmat,                                         # (2*HWp, HWp)
        bnshift=bn_shift.reshape(1, 1).astype(f32),        # (1, 1)
    )

    # Keep the input dtype for the HBM<->VMEM DMA; pad pixels to 128 lanes.
    x_flat = x.reshape(N, C, HW)
    if HWp != HW:
        x_flat = jnp.pad(x_flat, ((0, 0), (0, 0), (0, HWp - HW)))

    # ---- block sizing: derive from actual VMEM capacity -----------------
    itemsize = x.dtype.itemsize
    weight_bytes = sum(int(np.prod(a.shape)) * 4 for a in args.values())
    try:
        vmem_cap = int(pltpu.get_tpu_info().vmem_capacity_bytes)
    except Exception:
        vmem_cap = 64 << 20                        # conservative (v7x per-TC)

    # Target total VMEM usage (leave headroom for Mosaic internals).
    usage_target = min(int(0.45 * vmem_cap), 56 << 20)

    # Per batch-sample VMEM cost: double-buffered in+out DMA tiles (input
    # dtype) + the two in-kernel f32 slabs (x.astype(f32) and x1).
    per_sample = C * HWp * (4 * itemsize + 8)
    avail = usage_target - 2 * weight_bytes - (2 << 20)
    bn = max(1, min(N, avail // per_sample))
    # Keep >= 2 grid steps when possible so the "parallel" batch axis can be
    # sharded across both v7x TensorCores.
    if N >= 2:
        bn = min(bn, max(1, N // 2))
    while N % bn:
        bn -= 1
    grid = (N // bn,)

    est_usage = bn * per_sample + 2 * weight_bytes + (2 << 20)
    vmem_limit = int(min(max(est_usage + (4 << 20), 32 << 20),
                         max(vmem_cap - (6 << 20), 32 << 20)))

    kernel = _make_cbam_kernel(C, HW, HWp, mid, bn, needs_hw_mask=(HWp != HW))

    def _full(a):
        return pl.BlockSpec(a.shape, lambda n, _nd=a.ndim: (0,) * _nd)

    in_specs = [pl.BlockSpec((bn, C, HWp), lambda n: (n, 0, 0))] + \
               [_full(a) for a in args.values()]

    out = pl.pallas_call(
        kernel,
        out_shape=jax.ShapeDtypeStruct((N, C, HWp), x.dtype),
        grid_spec=pltpu.PrefetchScalarGridSpec(
            num_scalar_prefetch=0,
            grid=grid,
            in_specs=in_specs,
            out_specs=pl.BlockSpec((bn, C, HWp), lambda n: (n, 0, 0)),
        ),
        compiler_params=pltpu.CompilerParams(
            dimension_semantics=("parallel",),
            vmem_limit_bytes=vmem_limit),
    )(x_flat, *args.values())

    if HWp != HW:
        out = out[:, :, :HW]
    return out.reshape(N, C, H, W)


# -------------------- pure-JAX reference (for verification) -----------------
def cbam_reference(x, p):
    eps = 1e-5

    # channel attention (shared MLP on avg & max pools)
    avg = jnp.mean(x, axis=(2, 3))                           # (N, C)
    mx = jnp.max(x, axis=(2, 3))                             # (N, C)

    def mlp(v):
        h = jax.nn.relu(v @ p['fc1_w'].T + p['fc1_b'])
        return h @ p['fc2_w'].T + p['fc2_b']

    ca = jax.nn.sigmoid(mlp(avg) + mlp(mx))[:, :, None, None]
    x1 = x * ca

    # spatial attention
    a = jnp.mean(x1, axis=1, keepdims=True)
    m = jnp.max(x1, axis=1, keepdims=True)
    s = jnp.concatenate([a, m], axis=1)                      # (N, 2, H, W)
    conv = jax.lax.conv_general_dilated(
        s, p['conv_w'], window_strides=(1, 1), padding=((3, 3), (3, 3)),
        dimension_numbers=('NCHW', 'OIHW', 'NCHW'))          # (N, 1, H, W)
    bn_scale = p['bn_gamma'] / jnp.sqrt(p['bn_var'] + eps)
    bn_shift = p['bn_beta'] - p['bn_mean'] * bn_scale
    sp = jax.nn.sigmoid(conv * bn_scale[None, :, None, None]
                        + bn_shift[None, :, None, None])
    return x1 * sp


def init_params(key, n_ch, reduction_ratio=16):
    mid = n_ch // reduction_ratio
    ks = jax.random.split(key, 10)

    def rnd(k, shape, scale=0.2):
        return scale * jax.random.normal(k, shape, dtype=jnp.float32)

    return dict(
        fc1_w=rnd(ks[0], (mid, n_ch)),
        fc1_b=rnd(ks[1], (mid,)),
        fc2_w=rnd(ks[2], (n_ch, mid)),
        fc2_b=rnd(ks[3], (n_ch,)),
        conv_w=rnd(ks[4], (1, 2, 7, 7)),
        bn_gamma=1.0 + rnd(ks[5], (1,), 0.1),
        bn_beta=rnd(ks[6], (1,), 0.1),
        bn_mean=rnd(ks[7], (1,), 0.1),
        bn_var=jnp.abs(rnd(ks[8], (1,), 0.2)) + 0.5,
    )


if __name__ == "__main__":
    jax.config.update("jax_default_matmul_precision", "highest")

    key = jax.random.PRNGKey(0)
    kx, kp = jax.random.split(key)

    N, C, H, W = 2, 32, 16, 16          # n_ch=32, reduction_ratio=16 -> mid=2
    x = jax.random.normal(kx, (N, C, H, W), dtype=jnp.float32)
    params = init_params(kp, C, reduction_ratio=16)

    out = jax.block_until_ready(cbam_pallas(x, params))
    ref = jax.block_until_ready(cbam_reference(x, params))

    assert out.shape == ref.shape == (N, C, H, W)
    max_err = float(jnp.max(jnp.abs(out - ref)))
    if not bool(jnp.allclose(out, ref, atol=2e-2, rtol=2e-2)):
        raise AssertionError(f"Pallas CBAM mismatch vs reference, max abs err={max_err}")
    print("KERNEL_OK")
</pallas_src>

<mosaic_0001>
module attributes {stable_mosaic.version = 11 : i64} {
  func.func @kernel(%arg0: i32, %arg1: memref<1x32x256xf32, #tpu.memory_space<vmem>>, %arg2: memref<32x2xf32, #tpu.memory_space<vmem>>, %arg3: memref<1x2xf32, #tpu.memory_space<vmem>>, %arg4: memref<2x32xf32, #tpu.memory_space<vmem>>, %arg5: memref<1x32xf32, #tpu.memory_space<vmem>>, %arg6: memref<512x256xf32, #tpu.memory_space<vmem>>, %arg7: memref<1x1xf32, #tpu.memory_space<vmem>>, %arg8: memref<1x32x256xf32, #tpu.memory_space<vmem>>) attributes {dimension_semantics = [#tpu.dimension_semantics<parallel>], iteration_bounds = array<i64: 2>, scalar_prefetch = 0 : i64, scratch_operands = 0 : i64, tpu.core_type = #tpu.core_type<tc>, window_params = [{transform_indices = @transform_0, window_bounds = array<i64: 1, 32, 256>}, {pipeline_mode = #tpu.pipeline_mode<synchronous>, transform_indices = @transform_1, window_bounds = array<i64: 32, 2>}, {pipeline_mode = #tpu.pipeline_mode<synchronous>, transform_indices = @transform_2, window_bounds = array<i64: 1, 2>}, {pipeline_mode = #tpu.pipeline_mode<synchronous>, transform_indices = @transform_3, window_bounds = array<i64: 2, 32>}, {pipeline_mode = #tpu.pipeline_mode<synchronous>, transform_indices = @transform_4, window_bounds = array<i64: 1, 32>}, {pipeline_mode = #tpu.pipeline_mode<synchronous>, transform_indices = @transform_5, window_bounds = array<i64: 512, 256>}, {pipeline_mode = #tpu.pipeline_mode<synchronous>, transform_indices = @transform_6, window_bounds = array<i64: 1, 1>}, {transform_indices = @transform_7, window_bounds = array<i64: 1, 32, 256>}]} {
    %c0 = arith.constant 0 : index
    %c0_0 = arith.constant 0 : index
    %c0_1 = arith.constant 0 : index
    %0 = vector.load %arg1[%c0, %c0_0, %c0_1] : memref<1x32x256xf32, #tpu.memory_space<vmem>>, vector<1x32x256xf32>
    %cst = arith.constant dense<0.000000e+00> : vector<1x32xf32>
    %1 = vector.multi_reduction <add>, %0, %cst [2] : vector<1x32x256xf32> to vector<1x32xf32>
    %cst_2 = arith.constant 3.906250e-03 : f32
    %2 = vector.broadcast %cst_2 : f32 to vector<1x32xf32>
    %3 = arith.mulf %1, %2 : vector<1x32xf32>
    %cst_3 = arith.constant dense<0xFF800000> : vector<1x32xf32>
    %4 = vector.multi_reduction <maximumf>, %0, %cst_3 [2] : vector<1x32x256xf32> to vector<1x32xf32>
    %5 = tpu.concatenate %3, %4 in 0 : vector<1x32xf32>, vector<1x32xf32> -> vector<2x32xf32>
    %c0_4 = arith.constant 0 : index
    %c0_5 = arith.constant 0 : index
    %6 = vector.load %arg2[%c0_4, %c0_5] : memref<32x2xf32, #tpu.memory_space<vmem>>, vector<32x2xf32>
    %cst_6 = arith.constant dense<0.000000e+00> : vector<2x2xf32>
    %7 = tpu.matmul %5, %6, %cst_6 {dimension_numbers = #tpu.dot_dimension_numbers<[1], [0], [0], [1], [0, 0, 1, 1], [], []>, precision = #tpu.contract_precision<fp32>} : vector<2x32xf32>, vector<32x2xf32>, vector<2x2xf32> -> vector<2x2xf32>
    %c0_7 = arith.constant 0 : index
    %c0_8 = arith.constant 0 : index
    %8 = vector.load %arg3[%c0_7, %c0_8] : memref<1x2xf32, #tpu.memory_space<vmem>>, vector<1x2xf32>
    %9 = vector.broadcast %8 : vector<1x2xf32> to vector<2x2xf32>
    %10 = arith.addf %7, %9 : vector<2x2xf32>
    %cst_9 = arith.constant 0.000000e+00 : f32
    %11 = vector.broadcast %cst_9 : f32 to vector<2x2xf32>
    %12 = arith.maximumf %10, %11 : vector<2x2xf32>
    %c0_10 = arith.constant 0 : index
    %c0_11 = arith.constant 0 : index
    %13 = vector.load %arg4[%c0_10, %c0_11] : memref<2x32xf32, #tpu.memory_space<vmem>>, vector<2x32xf32>
    %cst_12 = arith.constant dense<0.000000e+00> : vector<2x32xf32>
    %14 = tpu.matmul %12, %13, %cst_12 {dimension_numbers = #tpu.dot_dimension_numbers<[1], [0], [0], [1], [0, 0, 1, 1], [], []>, precision = #tpu.contract_precision<fp32>} : vector<2x2xf32>, vector<2x32xf32>, vector<2x32xf32> -> vector<2x32xf32>
    %c0_13 = arith.constant 0 : index
    %c0_14 = arith.constant 0 : index
    %15 = vector.load %arg5[%c0_13, %c0_14] : memref<1x32xf32, #tpu.memory_space<vmem>>, vector<1x32xf32>
    %16 = vector.broadcast %15 : vector<1x32xf32> to vector<2x32xf32>
    %17 = arith.addf %14, %16 : vector<2x32xf32>
    %18 = vector.extract_strided_slice %17 {offsets = [0, 0], sizes = [1, 32], strides = [1, 1]} : vector<2x32xf32> to vector<1x32xf32>
    %19 = vector.extract_strided_slice %17 {offsets = [1, 0], sizes = [1, 32], strides = [1, 1]} : vector<2x32xf32> to vector<1x32xf32>
    %20 = arith.addf %18, %19 : vector<1x32xf32>
    %21 = arith.negf %20 : vector<1x32xf32>
    %22 = math.exp %21 : vector<1x32xf32>
    %cst_15 = arith.constant 1.000000e+00 : f32
    %23 = vector.broadcast %cst_15 : f32 to vector<1x32xf32>
    %24 = arith.addf %23, %22 : vector<1x32xf32>
    %25 = arith.divf %23, %24 : vector<1x32xf32>
    %26 = vector.shape_cast %25 : vector<1x32xf32> to vector<1x32x1xf32>
    %27 = vector.broadcast %26 : vector<1x32x1xf32> to vector<1x32x256xf32>
    %28 = arith.mulf %0, %27 : vector<1x32x256xf32>
    %cst_16 = arith.constant dense<0.000000e+00> : vector<1x256xf32>
    %29 = vector.multi_reduction <add>, %28, %cst_16 [1] : vector<1x32x256xf32> to vector<1x256xf32>
    %cst_17 = arith.constant 3.200000e+01 : f32
    %30 = vector.broadcast %cst_17 : f32 to vector<1x256xf32>
    %31 = arith.divf %29, %30 : vector<1x256xf32>
    %cst_18 = arith.constant dense<0xFF800000> : vector<1x256xf32>
    %32 = vector.multi_reduction <maximumf>, %28, %cst_18 [1] : vector<1x32x256xf32> to vector<1x256xf32>
    %33 = tpu.concatenate %31, %32 in 1 : vector<1x256xf32>, vector<1x256xf32> -> vector<1x512xf32>
    %c0_19 = arith.constant 0 : index
    %c0_20 = arith.constant 0 : index
    %34 = vector.load %arg6[%c0_19, %c0_20] : memref<512x256xf32, #tpu.memory_space<vmem>>, vector<512x256xf32>
    %cst_21 = arith.constant dense<0.000000e+00> : vector<1x256xf32>
    %35 = tpu.matmul %33, %34, %cst_21 {dimension_numbers = #tpu.dot_dimension_numbers<[1], [0], [0], [1], [0, 0, 1, 1], [], []>, precision = #tpu.contract_precision<fp32>} : vector<1x512xf32>, vector<512x256xf32>, vector<1x256xf32> -> vector<1x256xf32>
    %c0_22 = arith.constant 0 : index
    %c0_23 = arith.constant 0 : index
    %36 = vector.load %arg7[%c0_22, %c0_23] : memref<1x1xf32, #tpu.memory_space<vmem>>, vector<1x1xf32>
    %37 = vector.broadcast %36 : vector<1x1xf32> to vector<1x256xf32>
    %38 = arith.addf %35, %37 : vector<1x256xf32>
    %39 = arith.negf %38 : vector<1x256xf32>
    %40 = math.exp %39 : vector<1x256xf32>
    %cst_24 = arith.constant 1.000000e+00 : f32
    %41 = vector.broadcast %cst_24 : f32 to vector<1x256xf32>
    %42 = arith.addf %41, %40 : vector<1x256xf32>
    %43 = arith.divf %41, %42 : vector<1x256xf32>
    %44 = vector.shape_cast %43 : vector<1x256xf32> to vector<1x1x256xf32>
    %45 = vector.broadcast %44 : vector<1x1x256xf32> to vector<1x32x256xf32>
    %46 = arith.mulf %28, %45 : vector<1x32x256xf32>
    %c0_25 = arith.constant 0 : index
    %c0_26 = arith.constant 0 : index
    %c0_27 = arith.constant 0 : index
    %47 = vector.load %arg8[%c0_25, %c0_26, %c0_27] : memref<1x32x256xf32, #tpu.memory_space<vmem>>, vector<1x32x256xf32>
    tpu.vector_store %arg8[%c0_25, %c0_26, %c0_27], %46 {strides = array<i32>} : memref<1x32x256xf32, #tpu.memory_space<vmem>>, vector<1x32x256xf32>,
    return
  }
  func.func @transform_0(%arg0: i32) -> (i32, i32, i32) {
    %c0_i32 = arith.constant 0 : i32
    %c0_i32_0 = arith.constant 0 : i32
    %c0_i32_1 = arith.constant 0 : i32
    return %arg0, %c0_i32, %c0_i32_0 : i32, i32, i32
  }
  func.func @transform_1(%arg0: i32) -> (i32, i32) {
    %c0_i32 = arith.constant 0 : i32
    %c0_i32_0 = arith.constant 0 : i32
    %c0_i32_1 = arith.constant 0 : i32
    return %c0_i32, %c0_i32_0 : i32, i32
  }
  func.func @transform_2(%arg0: i32) -> (i32, i32) {
    %c0_i32 = arith.constant 0 : i32
    %c0_i32_0 = arith.constant 0 : i32
    %c0_i32_1 = arith.constant 0 : i32
    return %c0_i32, %c0_i32_0 : i32, i32
  }
  func.func @transform_3(%arg0: i32) -> (i32, i32) {
    %c0_i32 = arith.constant 0 : i32
    %c0_i32_0 = arith.constant 0 : i32
    %c0_i32_1 = arith.constant 0 : i32
    return %c0_i32, %c0_i32_0 : i32, i32
  }
  func.func @transform_4(%arg0: i32) -> (i32, i32) {
    %c0_i32 = arith.constant 0 : i32
    %c0_i32_0 = arith.constant 0 : i32
    %c0_i32_1 = arith.constant 0 : i32
    return %c0_i32, %c0_i32_0 : i32, i32
  }
  func.func @transform_5(%arg0: i32) -> (i32, i32) {
    %c0_i32 = arith.constant 0 : i32
    %c0_i32_0 = arith.constant 0 : i32
    %c0_i32_1 = arith.constant 0 : i32
    return %c0_i32, %c0_i32_0 : i32, i32
  }
  func.func @transform_6(%arg0: i32) -> (i32, i32) {
    %c0_i32 = arith.constant 0 : i32
    %c0_i32_0 = arith.constant 0 : i32
    %c0_i32_1 = arith.constant 0 : i32
    return %c0_i32, %c0_i32_0 : i32, i32
  }
  func.func @transform_7(%arg0: i32) -> (i32, i32, i32) {
    %c0_i32 = arith.constant 0 : i32
    %c0_i32_0 = arith.constant 0 : i32
    %c0_i32_1 = arith.constant 0 : i32
    return %arg0, %c0_i32, %c0_i32_0 : i32, i32, i32
  }
}

</mosaic_0001>

<bundles_post_ra>
// kernel: tpu_custom_call.1
= control target key start
LH: loop header
LB: loop body
LE: loop exit
PB: predicated region body
PF: predicated region fallthrough
CT: control target
= control target key end

     0   :  { %s8121_s0 = inlined_call_operand.hbm [shape: f32[2,32,256], index: 0, kind: input, shape index: {}]   ;;  %s8122_s1 = inlined_call_operand.vmem [shape: f32[32,2], index: 1, kind: input, shape index: {}]   ;;  %s8123_s2 = inlined_call_operand.vmem [shape: f32[1,2], index: 2, kind: input, shape index: {}]   ;;  %s8124_s3 = inlined_call_operand.vmem [shape: f32[2,32], index: 3, kind: input, shape index: {}]   ;;  %s8125_s4 = inlined_call_operand.vmem [shape: f32[1,32], index: 4, kind: input, shape index: {}]   ;;  %s8126_s5 = inlined_call_operand.hbm [shape: f32[512,256], index: 5, kind: input, shape index: {}]   ;;  %s8127_s6 = inlined_call_operand.<no memory space> [shape: f32[1,1], index: 6, kind: input, shape index: {}]   ;;  %s8128_s7 = inlined_call_operand.hbm [shape: f32[2,32,256], index: 7, kind: output, shape index: {}]  }
   0x1   :  { %v12_v0 = vstv %s8127_s6 }
   0x2   :  { %13 = vst [vmem:[#allocation2] sm:$0x1] %v12_v0 }
   0x3   :  { %14 = vsyncpa [#allocation4], 0 }
   0x4   :  { %16 = vsyncpa [#allocation4 + $0x1], 0 }
   0x5   :  { %17 = vsyncpa [#allocation7], 0 }
   0x6   :  { %18 = vsyncpa [#allocation5], 0 }
   0x7   :  { %20 = vsyncpa [#allocation5 + $0x1], 0  ;;  %s5566_s26 = smov 0   ;;  %s5568_s27 = smov 0  }
   0x8   :  { %s5570_s28 = smov 0   ;;  %s5572_s29 = smov 0  }
   0x9 LB: > { %s5587_s6 = sadd.s32 4294967295, %s5510_s29   ;;  %s4286_s30 = sadd.s32 4294967294, %s5510_s29   ;;  %s5510_s29 = sphi %s5572_s29, %s9630_s29   ;;  %s5506_s28 = sphi %s5570_s28, %s9629_s28   ;;  %s5502_s27 = sphi %s5568_s27, %s9628_s27   ;;  %s5498_s26 = sphi %s5566_s26, %s9627_s26  }
   0xa   : > { %p46_p0 = scmp.ne.s32.totalorder %s5502_s27, %s5498_s26  ;;  %p8129_p1 = scmp.eq.s32.totalorder %s5587_s6, 0 }
   0xb   : > { %p202_p3 = scmp.eq.s32.totalorder %s4286_s30, 1  ;;  %p4287_p5 = scmp.ge.s32.totalorder %s5510_s29, 1 }
   0xc   : > { %p5596_p4 = por %p8129_p1, %p46_p0  ;;  %p209_p7 = scmp.lt.s32.totalorder %s5510_s29, 3 }
   0xd   : > { %p5601_p6 = por %p202_p3, %p46_p0  ;;  %s5512_s11 = smov [#allocation6]  }
   0xe   : > { %s8582_s8 = scalar_select %p5596_p4, 1, 0 }
   0xf   : > { %s8583_s9 = scalar_select %p5601_p6, 1, 0 }
  0x10   : > { %p5606_p8 = pnand %p4287_p5, %p209_p7  ;;  %s233_s12 = sshll.u32 %s5512_s11, 4  ;;  %s5610_s12 = int_to_ptr.vmem [resolvable:$true] %s233_s12 }
  0x11   : > { %s5622_s14 = sadd.s32 1, %s5510_s29   ;;  %s33_s15 = sadd.s32 1, %s5506_s28 }
  0x12   : > { %s8584_s10 = scalar_select %p5606_p8, 1, 0 }
  0x13   : > { %p5304_p9 = pneg %p5606_p8  ;;  %s30_s16 = ssub.s32 %s5510_s29, %s5622_s14 }
  0x14   : > { %s5382_s19 = scalar_lea.hbm %s8126_s5, 16384 }
  0x15   : > { %p5617_p11 = pnand %p5304_p9, %p8129_p1  ;;  %p5383_p12 = scmp.ne.s32.totalorder %s8126_s5, %s5382_s19 }
  0x16   : > { %p5389_p5 = scmp.lt.u32.totalorder %s5382_s19, %s8126_s5 }
  0x17   : > { %p5384_p13 = pneg %p5617_p11 }
  0x19   : > { %p5385_p0 = pnand %p5384_p13, %p5383_p12 }
  0x1b   : > { %p5386_p3 = pneg %p5385_p0 }
  0x1d   : > { %p5391_p7 = pnand %p5389_p5, %p5386_p3 }
  0x1f   : > { %5394 = shalt.err (!%p5391_p7)
}
  0x20   : > { %s5395_s24 = scalar_lea.vmem %s5610_s12, 16384  ;;  %p5403_p2 = scmp.lt.s32.totalorder %s5610_s12, %s5610_s12 }
  0x21   : > { %p5396_p9 = scmp.ne.s32.totalorder %s5610_s12, %s5395_s24  ;;  %p5404_p6 = scmp.lt.s32.totalorder %s5395_s24, %s5395_s24 }
  0x23   : > { %p5398_p10 = pnand %p5396_p9, %p5384_p13  ;;  %p5405_p4 = por %p5404_p6, %p5403_p2 }
  0x25   : > { %p5399_p1 = pneg %p5398_p10 }
  0x27   : > { %p5406_p8 = pnand %p5405_p4, %p5399_p1 }
  0x29   : > { %5409 = shalt.err (!%p5406_p8)
}
  0x2a   : > { %s5513_s25 = smov 256   ;;  %s5514_s30 = smov 16  }
  0x2b   : > { %5307 = dma.hbm_to_vmem [thread:$0]  (!%p5617_p11), %s8126_s5, 16384, %s5610_s12, [#allocation7], %s5513_s25, %s5513_s25, %s5514_s30  }
  0x2c   : > { %p31_p1 = scmp.eq.s32.totalorder %s30_s16, 0  ;;  %p40_p2 = scmp.ne.s32.totalorder %s5506_s28, %s5502_s27 }
  0x2d   : > { %p41_p4 = scmp.eq.s32.totalorder %s5510_s29, 0  ;;  %p5317_p6 = scmp.lt.s32.totalorder %s5510_s29, 2 }
  0x2e   : > { %s5656_s18 = scalar_select %p31_p1, %s5506_s28, %s33_s15  }
  0x2f   : > { %p42_p8 = por %p41_p4, %p40_p2  ;;  %p8586_p10 = scmp.eq.s32.totalorder %s5587_s6, 1 }
  0x30   : > { %s250_s13 = sand.u32 1, %s5506_s28   ;;  %s4307_s20 = sshll.u32 %s5510_s29, 10 }
  0x31   : > { %p5660_p12 = por %p8586_p10, %p40_p2  ;;  %s4290_s21 = sshll.u32 %s250_s13, 6 }
  0x32   : > { %s5669_s24 = scalar_lea.hbm %s8121_s0, %s4307_s20  ;;  %s254_s12 = scalar_lea.vmem [#allocation3], %s4290_s21 }
  0x33   : > { %s261_s15 = sshll.u32 %s254_s12, 4  ;;  %p5671_p11 = pnand %p5317_p6, %p42_p8  ;;  %s5675_s15 = int_to_ptr.vmem [resolvable:$true] %s261_s15 }
  0x34   : > { %s5677_s11 = scalar_lea.sflag [#allocation4], %s250_s13  ;;  %s5410_s17 = scalar_lea.hbm %s5669_s24, 1024 }
  0x35   : > { %p5411_p13 = scmp.ne.s32.totalorder %s5669_s24, %s5410_s17  ;;  %p5412_p0 = pneg %p5671_p11 }
  0x36   : > { %s5415_s22 = scalar_lea.hbm %s8121_s0, 2048  ;;  %p5416_p7 = scmp.lt.u32.totalorder %s5669_s24, %s8121_s0 }
  0x37   : > { %p5413_p3 = pnand %p5412_p0, %p5411_p13  ;;  %p5417_p9 = scmp.lt.u32.totalorder %s5415_s22, %s5410_s17 }
  0x38   : > { %p5419_p2 = scmp.lt.u32.totalorder %s5410_s17, %s5669_s24 }
  0x39   : > { %p5414_p5 = pneg %p5413_p3  ;;  %p5418_p1 = por %p5417_p9, %p5416_p7 }
  0x3b   : > { %p5420_p4 = por %p5419_p2, %p5418_p1 }
  0x3d   : > { %p5421_p6 = pnand %p5420_p4, %p5414_p5 }
  0x3f   : > { %5424 = shalt.err (!%p5421_p6)
}
  0x40   : > { %s5425_s13 = scalar_lea.vmem %s5675_s15, 1024  ;;  %s5515_s20 = smov [#allocation3]  }
  0x41   : > { %p5426_p8 = scmp.ne.s32.totalorder %s5675_s15, %s5425_s13  ;;  %s5430_s21 = sshll.u32 %s5515_s20, 4  ;;  %s5431_s21 = int_to_ptr.vmem [resolvable:$false] %s5430_s21 }
  0x42   : > { %s5432_s23 = scalar_lea.vmem %s5431_s21, 2048  ;;  %p5433_p3 = scmp.lt.s32.totalorder %s5675_s15, %s5431_s21 }
  0x43   : > { %p5428_p10 = pnand %p5426_p8, %p5412_p0  ;;  %p5434_p7 = scmp.lt.s32.totalorder %s5432_s23, %s5425_s13 }
  0x45   : > { %p5429_p13 = pneg %p5428_p10  ;;  %p5435_p9 = por %p5434_p7, %p5433_p3 }
  0x47   : > { %p5436_p1 = pnand %p5435_p9, %p5429_p13 }
  0x49   : > { %5439 = shalt.err (!%p5436_p1)
}
  0x4a   : > { %5311 = dma.hbm_to_vmem [thread:$0]  (!%p5671_p11), %s5669_s24, 1024, %s5675_s15, %s5677_s11, %s5513_s25, %s5513_s25, %s5514_s30  }
  0x4b   : > { %p8589_p0 = scmp.ne.s32.totalorder %s8584_s10, 0 }
  0x4d   : > { %273 = sbr.rel (%p8589_p0) target bundleno = 1539 (0x603), region = 48 }
  0x54   : > { %s5711_s17 = sand.u32 1, %s5502_s27   ;;  %p8590_p5 = scmp.ne.s32.totalorder %s8582_s8, 0 }
  0x55   : > { %s4294_s22 = sshll.u32 %s5711_s17, 6  ;;  %s276_s12 = scalar_lea.sflag [#allocation4], %s5711_s17 }
  0x56   : > { %s5717_s16 = scalar_lea.vmem [#allocation3], %s4294_s22 }
  0x57   : > { %5485 = dma.done.wait (%p8590_p5), %s276_s12, 1024  }
  0x58   : > { %5487 = vsyncadd (%p8590_p5), %s276_s12, 4294966272  ;;  %p8591_p11 = scmp.eq.s32.totalorder %s5587_s6, 0 }
  0x5a   : > { %5489 = dma.done.wait (%p8591_p11), [#allocation7], 16384   ;;  %p8592_p2 = pmov %p8591_p11 }
  0x5b   : > { %v318_v1 = vld [vmem:[%s5717_s16 + $0x20] sm:$0xff]  ;;  %v319_v2 = vld [vmem:[%s5717_s16 + $0x28] sm:$0xff]  ;;  %v320_v6 = vld [vmem:[%s5717_s16 + $0x30] sm:$0xff]  ;;  %v5516_v37 = vmov 0.0|0.0   ;;  %vm5517_vm0 = vmmov 0   ;;  %v5518_v44 = vmov 0.0   ;;  %v354_v51 = vlaneseq }
  0x5c   : > { %5491 = vsyncadd (%p8592_p2), [#allocation7], 4294950912  ;;  %v314_v3 = vld [vmem:[%s5717_s16] sm:$0xff]  ;;  %v328_v4 = vadd.f32 %v319_v2, %v318_v1  ;;  %v315_v5 = vld [vmem:[%s5717_s16 + $0x8] sm:$0xff]  ;;  %v344_v16 = vmax.f32 %v318_v1, %v319_v2  ;;  %4453 = vmatprep.subr.bf16.mxu0 %v5516_v37  ;;  %4447 = vmatprep.subr.bf16.mxu1 %v5516_v37  ;;  %vm365_vm1 = vcmask 130112   ;;  %vm372_vm2 = vcmask 195712  }
  0x5d   : > { %v321_v7 = vld [vmem:[%s5717_s16 + $0x38] sm:$0xff]  ;;  %v322_v8 = vadd.f32 %v315_v5, %v314_v3  ;;  %v316_v9 = vld [vmem:[%s5717_s16 + $0x10] sm:$0xff]  ;;  %v338_v14 = vmax.f32 %v314_v3, %v315_v5  ;;  %v409_v18 = vld [vmem:[%s8122_s1 + $0x8] sm:$0xff]  ;;  %4370 = vmatprep.mubr.msk.f32.mxu0 %vm5517_vm0, %v5518_v44  ;;  %4359 = vmatprep.mubr.msk.f32.mxu1 %vm5517_vm0, %v5518_v44  ;;  %v355_v52 = vand.u32 127, %v354_v51  ;;  %v5787_v55 = vshrl.u32 %v354_v51, 7  ;;  %s313_s25 = scalar_lea.vmem [#allocation8], %s4294_s22 }
  0x5e   : > { %v317_v10 = vld [vmem:[%s5717_s16 + $0x18] sm:$0xff]  ;;  %329 = vadd.xlane.f32.xlu1 %v328_v4  ;;  %v331_v11 = vadd.f32 %v321_v7, %v320_v6  ;;  %v347_v15 = vmax.f32 %v320_v6, %v321_v7  ;;  %v427_v20 = vand.u32 4294901760, %v409_v18  ;;  %v410_v23 = vld [vmem:[%s8122_s1 + $0x10] sm:$0xff]  ;;  %vm379_vm3 = vcmask 261312   ;;  %s4203_s30 = sshll.u32 %s313_s25, 4  ;;  %s4190_s22 = scalar_lea.sflag [#allocation5], %s5711_s17  ;;  %s8073_s30 = int_to_ptr.vmem [resolvable:$true] %s4203_s30 }
  0x5f   : > { %323 = vadd.xlane.f32.xlu0 %v322_v8  ;;  %v325_v12 = vadd.f32 %v317_v10, %v316_v9  ;;  %v341_v13 = vmax.f32 %v316_v9, %v317_v10  ;;  %v408_v17 = vld [vmem:[%s8122_s1] sm:$0xff]  ;;  %v411_v24 = vld [vmem:[%s8122_s1 + $0x18] sm:$0xff]  ;;  %v430_v27 = vand.u32 4294901760, %v410_v23  ;;  %v360_v54 = vadd.s32 4294967288, %v355_v52  ;;  %s5440_s11 = scalar_lea.vmem %s8073_s30, 1024  ;;  %s5520_s13 = smov [#allocation8]  }
  0x60   : > { %v424_v19 = vand.u32 4294901760, %v408_v17  ;;  %v5743_v22 = vsub.f32 %v409_v18, %v427_v20  ;;  %v433_v28 = vand.u32 4294901760, %v411_v24  ;;  %v367_v57 = vadd.s32 4294967280, %v355_v52  ;;  %p5441_p4 = scmp.ne.s32.totalorder %s8073_s30, %s5440_s11  ;;  %s5444_s20 = sshll.u32 %s5520_s13, 4  ;;  %s5445_s20 = int_to_ptr.vmem [resolvable:$false] %s5444_s20 }
  0x61   : > { %v5755_v31 = vsub.f32 %v410_v23, %v430_v27  ;;  %v363_v59 = vsub.s32 %v360_v54, %v5787_v55  ;;  %v358_v60 = vsub.s32 %v355_v52, %v5787_v55  ;;  %v374_v62 = vadd.s32 4294967272, %v355_v52  ;;  %v1448_v52 = vld [vmem:[#allocation6 + $0x8] sm:$0xff]  ;;  %s5446_s21 = scalar_lea.vmem %s5445_s20, 2048  ;;  %p5447_p10 = scmp.lt.s32.totalorder %s8073_s30, %s5445_s20 }
  0x62   : > { %332 = vadd.xlane.f32.xlu1 %v331_v11  ;;  %v5741_v21 = vsub.f32 %v408_v17, %v424_v19  ;;  %v512_v26 = vand.u32 4294901760, %v5743_v22  ;;  %v5757_v32 = vsub.f32 %v411_v24, %v433_v28  ;;  %v5771_v46 = vpack.c.bf16 %v427_v20, %v424_v19  ;;  %v1512_v54 = vld [vmem:[#allocation6 + $0x208] sm:$0xff]  ;;  %p5442_p6 = pnand %p5441_p4, %p5660_p12  ;;  %p5448_p13 = scmp.lt.s32.totalorder %s5446_s21, %s5440_s11 }
  0x63   : > { %326 = vadd.xlane.f32.xlu0 %v325_v12  ;;  %v519_v35 = vand.u32 4294901760, %v5755_v31  ;;  %v5779_v48 = vpack.c.bf16 %v433_v28, %v430_v27  ;;  %v370_v1 = vsub.s32 %v367_v57, %v5787_v55  ;;  %v377_v6 = vsub.s32 %v374_v62, %v5787_v55 }
  0x64   : > { %v505_v25 = vand.u32 4294901760, %v5741_v21  ;;  %v513_v30 = vsub.f32 %v5743_v22, %v512_v26  ;;  %v526_v36 = vand.u32 4294901760, %v5757_v32  ;;  %v4460_v45 = vpack.c.bf16 %v5743_v22, %v5741_v21  ;;  %4449 = vmatpush3.bf16.msra.mxu1 %v5771_v46  ;;  %p5443_p8 = pneg %p5442_p6  ;;  %p5449_p3 = por %p5448_p13, %p5447_p10 }
  0x65   : > { %v520_v39 = vsub.f32 %v5755_v31, %v519_v35  ;;  %4450 = vmatprep.subr.bf16.mxu1 %v5516_v37  ;;  %v4463_v47 = vpack.c.bf16 %v5757_v32, %v5755_v31  ;;  %vm406_vm4 = vcmask 1040384   ;;  %vm419_vm5 = vcmask 261120  }
  0x66   : > { %342 = vmax.xlane.f32.xlu1 %v341_v13  ;;  %v506_v29 = vsub.f32 %v5741_v21, %v505_v25  ;;  %v514_v34 = vand.u32 4294901760, %v513_v30  ;;  %v527_v40 = vsub.f32 %v5757_v32, %v526_v36  ;;  %v5783_v49 = vpack.c.bf16 %v512_v26, %v505_v25  ;;  %v909_v30 = vld [vmem:[%s8124_s3] sm:$0x3]  ;;  %p5450_p7 = pnand %p5449_p3, %p5443_p8 }
  0x67   : > { %339 = vmax.xlane.f32.xlu0 %v338_v14  ;;  %v521_v41 = vand.u32 4294901760, %v520_v39  ;;  %v5785_v50 = vpack.c.bf16 %v526_v36, %v519_v35  ;;  %vm921_vm6 = vcmask 1041408   ;;  %v4297_v35 = vld [vmem:[%s8123_s2] ss:$0 sm:$0xff]  ;;  %vm917_vm7 = vcmask 15360  }
  0x68   : > { %v507_v33 = vand.u32 4294901760, %v506_v29  ;;  %v528_v42 = vand.u32 4294901760, %v527_v40  ;;  %4452 = vmatpush3.bf16.msra.mxu1 %v5779_v48  ;;  %v923_v31 = vsel %vm921_vm6, %v909_v30, 0  ;;  %v1456_v30 = vld [vmem:[#allocation6 + $0x48] sm:$0xff] }
  0x69   : > { %4417 = vmatprep.subr.mxu1 %v5518_v44  ;;  %v926_v32 = vand.u32 4294901760, %v923_v31 }
  0x6a   : > { %348 = vmax.xlane.f32.xlu1 %v347_v15  ;;  %v4454_v38 = vpack.c.bf16 %v514_v34, %v507_v33  ;;  %v4457_v43 = vpack.c.bf16 %v528_v42, %v521_v41 }
  0x6b   : > { %345 = vmax.xlane.f32.xlu0 %v344_v16  ;;  %v1003_v40 = vsub.f32 %v923_v31, %v926_v32  ;;  %v1458_v31 = vld [vmem:[#allocation6 + $0x58] sm:$0xff] }
  0x6c   : > { %4455 = vmatpush3.bf16.msra.mxu0 %v4454_v38 }
  0x6d   : > { %4456 = vmatprep.subr.bf16.mxu0 %v5516_v37 }
  0x70   : > { %4458 = vmatpush3.bf16.msra.mxu0 %v4457_v43  ;;  %v1004_v43 = vand.u32 4294901760, %v1003_v40 }
  0x71   : > { %4459 = vmatprep.subr.bf16.mxu0 %v5516_v37 }
  0xeb   : > { %v330_v53 = vpop.xlane.xlu1 %329 }
  0xec   : > { %v324_v56 = vpop.xlane.xlu0 %323  ;;  %v336_v2 = vmul.f32 0.00390625, %v330_v53  ;;  %v1450_v53 = vld [vmem:[#allocation6 + $0x18] sm:$0xff] }
  0xed   : > { %v334_v61 = vmul.f32 0.00390625, %v324_v56  ;;  %v1585_v56 = vand.u32 4294901760, %v1448_v52  ;;  %v1589_v57 = vand.u32 4294901760, %v1450_v53 }
  0xee   : > { %v371_v12 = vrot.slane %v336_v2, %v370_v1  ;;  %v1513_v2 = vld [vmem:[#allocation6 + $0x210] sm:$0xff] }
  0xef   : > { %v333_v58 = vpop.xlane.xlu1 %332  ;;  %v359_v5 = vrot.slane %v334_v61, %v358_v60  ;;  %v1449_v61 = vld [vmem:[#allocation6 + $0x10] sm:$0xff] }
  0xf0   : > { %v327_v63 = vpop.xlane.xlu0 %326  ;;  %v337_v7 = vmul.f32 0.00390625, %v333_v58  ;;  %v1514_v58 = vld [vmem:[#allocation6 + $0x218] sm:$0xff] }
  0xf1   : > { %v335_v0 = vmul.f32 0.00390625, %v327_v63  ;;  %v2873_v62 = vand.u32 4294901760, %v1514_v58 }
  0xf2   : > { %v378_v14 = vrot.slane %v337_v7, %v377_v6  ;;  %v1454_v7 = vld [vmem:[#allocation6 + $0x38] sm:$0xff] }
  0xf3   : > { %v364_v3 = vrot.slane %v335_v0, %v363_v59  ;;  %v343_v4 = vpop.xlane.xlu1 %342  ;;  %v1591_v0 = vand.u32 4294901760, %v1449_v61 }
  0xf4   : > { %v340_v8 = vpop.xlane.xlu0 %339  ;;  %v393_v10 = vrot.slane %v343_v4, %v363_v59  ;;  %v2869_v59 = vand.u32 4294901760, %v1512_v54  ;;  %v5839_v4 = vpack.c.bf16 %v1589_v57, %v1585_v56 }
  0xf5   : > { %v366_v9 = vsel %vm365_vm1, %v364_v3, %v359_v5  ;;  %v389_v11 = vrot.slane %v340_v8, %v358_v60  ;;  %v1447_v60 = vld [vmem:[#allocation6] sm:$0xff]  ;;  %v1452_v3 = vld [vmem:[#allocation6 + $0x28] sm:$0xff]  ;;  %v5841_v5 = vsub.f32 %v1448_v52, %v1585_v56 }
  0xf6   : > { %v373_v17 = vsel %vm372_vm2, %v371_v12, %v366_v9  ;;  %v1587_v63 = vand.u32 4294901760, %v1447_v60  ;;  %8593 = vst [vmem:[#allocation12_spill] sm:$0xff] %v5839_v4  ;;  %v1516_v8 = vld [vmem:[#allocation6 + $0x228] sm:$0xff]  ;;  %v1518_v9 = vld [vmem:[#allocation6 + $0x238] sm:$0xff] }
  0xf7   : > { %v349_v13 = vpop.xlane.xlu1 %348  ;;  %v394_v19 = vsel %vm365_vm1, %v393_v10, %v389_v11  ;;  %v380_v21 = vsel %vm379_vm3, %v378_v14, %v373_v17  ;;  %8594 = vst [vmem:[#allocation13_spill] sm:$0xff] %v5841_v5  ;;  %v5847_v10 = vpack.c.bf16 %v2873_v62, %v2869_v59  ;;  %v5849_v11 = vsub.f32 %v1514_v58, %v2873_v62  ;;  %v1451_v14 = vld [vmem:[#allocation6 + $0x20] sm:$0xff]  ;;  %v1460_v56 = vld [vmem:[#allocation6 + $0x68] sm:$0xff] }
  0xf8   : > { %v346_v15 = vpop.xlane.xlu0 %345  ;;  %v403_v16 = vrot.slane %v349_v13, %v377_v6  ;;  %v5845_v6 = vsub.f32 %v1512_v54, %v2869_v59  ;;  %v5851_v12 = vpack.c.bf16 %v1591_v0, %v1587_v63  ;;  %v5853_v13 = vsub.f32 %v1447_v60, %v1587_v63  ;;  %v1521_v54 = vld [vmem:[#allocation6 + $0x250] sm:$0xff]  ;;  %v1524_v62 = vld [vmem:[#allocation6 + $0x268] sm:$0xff]  ;;  %v1526_v63 = vld [vmem:[#allocation6 + $0x278] sm:$0xff] }
  0xf9   : > { %v398_v18 = vrot.slane %v346_v15, %v370_v1  ;;  %v1511_v1 = vld [vmem:[#allocation6 + $0x200] sm:$0xff]  ;;  %8597 = vst [vmem:[#allocation16_spill] sm:$0xff] %v5847_v10  ;;  %8598 = vst [vmem:[#allocation17_spill] sm:$0xff] %v5849_v11  ;;  %v5856_v15 = vsub.f32 %v1449_v61, %v1591_v0  ;;  %v2875_v17 = vand.u32 4294901760, %v1513_v2  ;;  %v1462_v61 = vld [vmem:[#allocation6 + $0x78] sm:$0xff] }
  0xfa   : > { %8596 = vst [vmem:[#allocation15_spill] sm:$0xff] %v5845_v6  ;;  %8599 = vst [vmem:[#allocation18_spill] sm:$0xff] %v5851_v12 }
  0xfb   : > { %v399_v20 = vsel %vm372_vm2, %v398_v18, %v394_v19  ;;  %8600 = vst [vmem:[#allocation19_spill] sm:$0xff] %v5853_v13  ;;  %8601 = vst [vmem:[#allocation20_spill] sm:$0xff] %v5856_v15  ;;  %v1593_v18 = vand.u32 4294901760, %v1452_v3  ;;  %v1453_v19 = vld [vmem:[#allocation6 + $0x30] sm:$0xff] }
  0xfc   : > { %v404_v22 = vsel %vm379_vm3, %v403_v16, %v399_v20  ;;  %v2871_v16 = vand.u32 4294901760, %v1511_v1  ;;  %v1597_v20 = vand.u32 4294901760, %v1454_v7 }
  0xfd   : > { %v407_v23 = vsel %vm406_vm4, %v380_v21, %v404_v22  ;;  %v2877_v21 = vand.u32 4294901760, %v1516_v8  ;;  %v2881_v22 = vand.u32 4294901760, %v1518_v9 }
  0xfe   : > { %v421_v24 = vsel %vm419_vm5, %v407_v23, 0  ;;  %v1595_v23 = vand.u32 4294901760, %v1451_v14 }
  0xff   : > { %v492_v25 = vand.u32 4294901760, %v421_v24 }
 0x101   : > { %4371 = vmatmul.mubr.f32.vlgmr.msra.gmra.mrb[0].mxu0 %v492_v25  ;;  %v493_v26 = vsub.f32 %v421_v24, %v492_v25  ;;  %v1515_v24 = vld [vmem:[#allocation6 + $0x220] sm:$0xff] }
 0x102   : > { %4461 = vmatpush3.bf16.msra.mxu0 %v4460_v45  ;;  %4381 = vmatprep.mubr.msk.f32.mxu0 %vm5517_vm0, %v5518_v44 }
 0x103   : > { %4462 = vmatprep.subr.bf16.mxu0 %v5516_v37  ;;  %v494_v27 = vand.u32 4294901760, %v493_v26 }
 0x105   : > { %v495_v28 = vsub.f32 %v493_v26, %v494_v27 }
 0x106   : > { %4464 = vmatpush3.bf16.msra.mxu0 %v4463_v47  ;;  %v1005_v47 = vsub.f32 %v1003_v40, %v1004_v43 }
 0x107   : > { %4465 = vmatprep.subr.bf16.mxu0 %v5516_v37  ;;  %v496_v29 = vand.u32 4294901760, %v495_v28  ;;  %v5864_v28 = vsub.f32 %v1513_v2, %v2875_v17 }
 0x109   : > { %4360 = vmatmul.mubr.f32.vlgmr.msra.gmra.mrb[0].mxu1 %v496_v29  ;;  %4382 = vmatmul.mubr.f32.vlgmr.msra.gmra.mrb[0].mxu0 %v493_v26  ;;  %v5860_v26 = vpack.c.bf16 %v2875_v17, %v2871_v16  ;;  %8604 = vst [vmem:[#allocation23_spill] sm:$0xff] %v5864_v28  ;;  %v5866_v29 = vsub.f32 %v1452_v3, %v1593_v18  ;;  %v1613_v17 = vand.u32 4294901760, %v1462_v61  ;;  %v6365_v28 = vld [vmem:[#allocation6 + $0x1d0] sm:$0xff] }
 0x10a   : > { %4467 = vmatpush3.bf16.msra.mxu0 %v5771_v46  ;;  %4392 = vmatprep.mubr.msk.f32.mxu0 %vm5517_vm0, %v5518_v44 }
 0x10b   : > { %4468 = vmatprep.subr.bf16.mxu0 %v5516_v37  ;;  %4419 = vmatprep.mubr.msk.f32.mxu1 %vm5517_vm0, %v5518_v44  ;;  %8602 = vst [vmem:[#allocation21_spill] sm:$0xff] %v5860_v26  ;;  %8605 = vst [vmem:[#allocation24_spill] sm:$0xff] %v5866_v29  ;;  %v6363_v29 = vld [vmem:[#allocation6 + $0x1c0] sm:$0xff] }
 0x10c   : > { %4418 = vmatpush3.msra.mxu1 %v926_v32  ;;  %8759 = vst [vmem:[#allocation141_spill] sm:$0xff] %v6363_v29 }
 0x10d   : > { %4422 = vmatprep.subr.mxu1 %v5518_v44 }
 0x10e   : > { %4470 = vmatpush3.bf16.msra.mxu0 %v5779_v48 }
 0x10f   : > { %4471 = vmatprep.subr.bf16.mxu0 %v5516_v37 }
 0x111   : > { %4393 = vmatmul.mubr.f32.vlgmr.msra.gmra.mrb[0].mxu0 %v494_v27  ;;  %v5862_v27 = vsub.f32 %v1511_v1, %v2871_v16  ;;  %v1609_v16 = vand.u32 4294901760, %v1460_v56 }
 0x112   : > { %4473 = vmatpush3.bf16.msra.mxu0 %v5783_v49  ;;  %4403 = vmatprep.mubr.msk.f32.mxu0 %vm5517_vm0, %v5518_v44 }
 0x113   : > { %4474 = vmatprep.subr.bf16.mxu0 %v5516_v37  ;;  %8603 = vst [vmem:[#allocation22_spill] sm:$0xff] %v5862_v27 }
 0x116   : > { %4476 = vmatpush3.bf16.msra.mxu0 %v5785_v50  ;;  %v1006_v50 = vand.u32 4294901760, %v1005_v47  ;;  %v1455_v47 = vld [vmem:[#allocation6 + $0x40] sm:$0xff] }
 0x117   : > { %4477 = vmatprep.subr.bf16.mxu0 %v5516_v37 }
 0x119   : > { %4404 = vmatmul.mubr.f32.vlgmr.msra.gmra.mrb[0].mxu0 %v492_v25 }
 0x11a   : > { %4479 = vmatpush3.bf16.msra.mxu0 %v5771_v46  ;;  %4414 = vmatprep.mubr.msk.f32.mxu0 %vm5517_vm0, %v5518_v44 }
 0x11b   : > { %4480 = vmatprep.subr.bf16.mxu0 %v5516_v37 }
 0x11e   : > { %4482 = vmatpush3.bf16.msra.mxu0 %v5779_v48 }
 0x11f   : > { %4484 = vmatprep.subr.bf16.mxu0 %v5839_v4 }
 0x121   : > { %4415 = vmatmul.mubr.f32.vlgmr.msra.gmra.mrb[0].mxu0 %v492_v25  ;;  %v1517_v25 = vld [vmem:[#allocation6 + $0x230] sm:$0xff] }
 0x122   : > { %4486 = vmatpush1.bf16.msra.mxu0 %v5851_v12 }
 0x1dc   : > { %v498_v33 = vpop.f32.mrb[0].mxu1 }
 0x1dd   : > { %v4361_v34 = vpop.f32.mrb[1].mxu1  ;;  %v499_v36 = vadd.f32 %v4297_v35, %v498_v33  ;;  %v5868_v33 = vpack.c.bf16 %v1597_v20, %v1593_v18  ;;  %v5872_v35 = vpack.c.bf16 %v2881_v22, %v2877_v21  ;;  %v2893_v18 = vand.u32 4294901760, %v1524_v62 }
 0x1de   : > { %v5870_v34 = vsub.f32 %v1454_v7, %v1597_v20  ;;  %v1603_v7 = vand.u32 4294901760, %v1455_v47  ;;  %v1459_v20 = vld [vmem:[#allocation6 + $0x60] sm:$0xff] }
 0x1df   : > { %8606 = vst [vmem:[#allocation25_spill] sm:$0xff] %v5868_v33  ;;  %8608 = vst [vmem:[#allocation27_spill] sm:$0xff] %v5872_v35  ;;  %4488 = vmatprep.subr.bf16.mxu0 %v5868_v33  ;;  %v1532_v33 = vld [vmem:[#allocation6 + $0x2a8] sm:$0xff] }
 0x1e0   : > { %8607 = vst [vmem:[#allocation26_spill] sm:$0xff] %v5870_v34 }
 0x1f4   : > { %v904_v37 = vpop.f32.mrb[0].mxu0 }
 0x1f5   : > { %v5252_v38 = vadd.f32 %v904_v37, %v499_v36  ;;  %v4416_v39 = vpop.f32.mrb[1].mxu0  ;;  %v5874_v36 = vsub.f32 %v1516_v8, %v2877_v21  ;;  %v1522_v37 = vld [vmem:[#allocation6 + $0x258] sm:$0xff] }
 0x1f6   : > { %v1599_v39 = vand.u32 4294901760, %v1453_v19  ;;  %v2889_v52 = vand.u32 4294901760, %v1522_v37 }
 0x1f7   : > { %v908_v41 = vmax.f32 %v5252_v38, 0.0  ;;  %8609 = vst [vmem:[#allocation28_spill] sm:$0xff] %v5874_v36  ;;  %v5877_v38 = vsub.f32 %v1518_v9, %v2881_v22  ;;  %v5911_v22 = vsub.f32 %v1455_v47, %v1603_v7 }
 0x1f8   : > { %v5904_v3 = vsub.f32 %v1522_v37, %v2889_v52 }
 0x1f9   : > { %v919_v42 = vsel %vm917_vm7, %v908_v41, 0  ;;  %8610 = vst [vmem:[#allocation29_spill] sm:$0xff] %v5877_v38  ;;  %v2879_v41 = vand.u32 4294901760, %v1515_v24  ;;  %8624 = vst [vmem:[#allocation43_spill] sm:$0xff] %v5911_v22  ;;  %v6348_v38 = vld [vmem:[#allocation6 + $0x1d8] sm:$0xff] }
 0x1fa   : > { %v991_v45 = vand.u32 4294901760, %v919_v42  ;;  %8622 = vst [vmem:[#allocation41_spill] sm:$0xff] %v5904_v3  ;;  %v1701_v34 = vand.u32 4294901760, %v6348_v38 }
 0x1fc   : > { %v992_v46 = vsub.f32 %v919_v42, %v991_v45  ;;  %v2883_v42 = vand.u32 4294901760, %v1517_v25 }
 0x1fe   : > { %v993_v48 = vand.u32 4294901760, %v992_v46  ;;  %v5891_v58 = vsub.f32 %v1517_v25, %v2883_v42  ;;  %v1461_v25 = vld [vmem:[#allocation6 + $0x70] sm:$0xff] }
 0x200   : > { %v994_v49 = vsub.f32 %v992_v46, %v993_v48  ;;  %8616 = vst [vmem:[#allocation35_spill] sm:$0xff] %v5891_v58 }
 0x202   : > { %v995_v51 = vand.u32 4294901760, %v994_v49  ;;  %v5883_v49 = vpack.c.bf16 %v1599_v39, %v1595_v23 }
 0x204   : > { %4420 = vmatmul.mubr.f32.vlgmr.msra.gmra.mrb[2].mxu1 %v995_v51  ;;  %8612 = vst [vmem:[#allocation31_spill] sm:$0xff] %v5883_v49  ;;  %v5887_v51 = vsub.f32 %v1515_v24, %v2879_v41  ;;  %4490 = vmatpush1.bf16.msra.mxu0 %v5883_v49 }
 0x205   : > { %4423 = vmatpush3.msra.mxu1 %v1006_v50  ;;  %4424 = vmatprep.mubr.msk.f32.mxu1 %vm5517_vm0, %v5518_v44  ;;  %v5885_v50 = vsub.f32 %v1453_v19, %v1599_v39  ;;  %v2897_v19 = vand.u32 4294901760, %v1526_v63  ;;  %v5921_v39 = vpack.c.bf16 %v1613_v17, %v1609_v16 }
 0x206   : > { %4427 = vmatprep.subr.mxu1 %v5518_v44  ;;  %8614 = vst [vmem:[#allocation33_spill] sm:$0xff] %v5887_v51  ;;  %v6312_v51 = vld [vmem:[#allocation6 + $0x3a0] sm:$0xff] }
 0x207   : > { %8613 = vst [vmem:[#allocation32_spill] sm:$0xff] %v5885_v50  ;;  %8629 = vst [vmem:[#allocation48_spill] sm:$0xff] %v5921_v39  ;;  %v5929_v47 = vpack.c.bf16 %v2897_v19, %v2893_v18  ;;  %v8760_v27 = vand.u32 4294901760, %v6312_v51 }
 0x209   : > { %8632 = vst [vmem:[#allocation51_spill] sm:$0xff] %v5929_v47 }
 0x20c   : > { %4425 = vmatmul.mubr.f32.vlgmr.msra.gmra.mrb[2].mxu1 %v991_v45 }
 0x20d   : > { %4428 = vmatpush3.msra.mxu1 %v1003_v40  ;;  %4429 = vmatprep.mubr.msk.f32.mxu1 %vm5517_vm0, %v5518_v44  ;;  %v5879_v40 = vsub.f32 %v1451_v14, %v1595_v23  ;;  %v2891_v14 = vand.u32 4294901760, %v1521_v54 }
 0x20e   : > { %4432 = vmatprep.subr.mxu1 %v5518_v44 }
 0x20f   : > { %8611 = vst [vmem:[#allocation30_spill] sm:$0xff] %v5879_v40  ;;  %v5919_v37 = vsub.f32 %v1521_v54, %v2891_v14  ;;  %v1615_v54 = vand.u32 4294901760, %v1461_v25 }
 0x211   : > { %8628 = vst [vmem:[#allocation47_spill] sm:$0xff] %v5919_v37  ;;  %v6069_v37 = vld [vmem:[#allocation6 + $0x128] sm:$0xff] }
 0x212   : > { %v8762_v11 = vand.u32 4294901760, %v6069_v37 }
 0x214   : > { %4430 = vmatmul.mubr.f32.vlgmr.msra.gmra.mrb[2].mxu1 %v992_v46  ;;  %v6377_v6 = vsub.f32 %v6069_v37, %v8762_v11 }
 0x215   : > { %4433 = vmatpush3.msra.mxu1 %v926_v32  ;;  %4434 = vmatprep.mubr.msk.f32.mxu1 %vm5517_vm0, %v5518_v44 }
 0x216   : > { %4437 = vmatprep.subr.mxu1 %v5518_v44  ;;  %8763 = vst [vmem:[#allocation143_spill] sm:$0xff] %v6377_v6 }
 0x21c   : > { %4435 = vmatmul.mubr.f32.vlgmr.msra.gmra.mrb[2].mxu1 %v993_v48  ;;  %v1457_v48 = vld [vmem:[#allocation6 + $0x50] sm:$0xff] }
 0x21d   : > { %4438 = vmatpush3.msra.mxu1 %v1004_v43  ;;  %4439 = vmatprep.mubr.msk.f32.mxu1 %vm5517_vm0, %v5518_v44  ;;  %v1601_v43 = vand.u32 4294901760, %v1456_v30  ;;  %v1607_v8 = vand.u32 4294901760, %v1457_v48 }
 0x21e   : > { %4442 = vmatprep.subr.mxu1 %v5518_v44 }
 0x21f   : > { %v5895_v60 = vsub.f32 %v1456_v30, %v1601_v43  ;;  %v5909_v21 = vpack.c.bf16 %v1607_v8, %v1603_v7  ;;  %v5913_v23 = vsub.f32 %v1457_v48, %v1607_v8  ;;  %v1523_v30 = vld [vmem:[#allocation6 + $0x260] sm:$0xff]  ;;  %v5931_v48 = vsub.f32 %v1524_v62, %v2893_v18  ;;  %v1530_v8 = vld [vmem:[#allocation6 + $0x298] sm:$0xff] }
 0x220   : > { %v1527_v62 = vld [vmem:[#allocation6 + $0x280] sm:$0xff] }
 0x221   : > { %8618 = vst [vmem:[#allocation37_spill] sm:$0xff] %v5895_v60  ;;  %8623 = vst [vmem:[#allocation42_spill] sm:$0xff] %v5909_v21  ;;  %v6303_v60 = vld [vmem:[#allocation6 + $0x1a0] sm:$0xff] }
 0x222   : > { %8625 = vst [vmem:[#allocation44_spill] sm:$0xff] %v5913_v23  ;;  %8633 = vst [vmem:[#allocation52_spill] sm:$0xff] %v5931_v48  ;;  %v1545_v48 = vld [vmem:[#allocation6 + $0x310] sm:$0xff] }
 0x224   : > { %4440 = vmatmul.mubr.f32.vlgmr.msra.gmra.mrb[2].mxu1 %v991_v45 }
 0x225   : > { %4443 = vmatpush3.msra.mxu1 %v926_v32  ;;  %4444 = vmatprep.mubr.msk.f32.mxu1 %vm5517_vm0, %v5518_v44  ;;  %v5843_v44 = vsub.f32 %v1450_v53, %v1589_v57  ;;  %v1520_v32 = vld [vmem:[#allocation6 + $0x248] sm:$0xff]  ;;  %v1519_v53 = vld [vmem:[#allocation6 + $0x240] sm:$0xff]  ;;  %v5889_v57 = vpack.c.bf16 %v2883_v42, %v2879_v41  ;;  %v5923_v41 = vsub.f32 %v1460_v56, %v1609_v16  ;;  %v2895_v56 = vand.u32 4294901760, %v1523_v30 }
 0x226   : > { %4868 = vmatprep.subr.bf16.mxu1 %v5847_v10  ;;  %v2885_v46 = vand.u32 4294901760, %v1520_v32  ;;  %v2887_v9 = vand.u32 4294901760, %v1519_v53  ;;  %v1464_v42 = vld [vmem:[#allocation6 + $0x88] sm:$0xff] }
 0x227   : > { %8595 = vst [vmem:[#allocation14_spill] sm:$0xff] %v5843_v44  ;;  %8615 = vst [vmem:[#allocation34_spill] sm:$0xff] %v5889_v57 }
 0x228   : > { %v5900_v1 = vpack.c.bf16 %v2889_v52, %v2885_v46  ;;  %v5902_v2 = vsub.f32 %v1520_v32, %v2885_v46  ;;  %v5915_v24 = vpack.c.bf16 %v2891_v14, %v2887_v9  ;;  %v5917_v32 = vsub.f32 %v1519_v53, %v2887_v9  ;;  %8630 = vst [vmem:[#allocation49_spill] sm:$0xff] %v5923_v41 }
 0x229   : > { %v5927_v46 = vsub.f32 %v1462_v61, %v1613_v17  ;;  %v1611_v52 = vand.u32 4294901760, %v1459_v20  ;;  %v5934_v53 = vsub.f32 %v1526_v63, %v2897_v19  ;;  %v1617_v14 = vand.u32 4294901760, %v1464_v42  ;;  %v1463_v17 = vld [vmem:[#allocation6 + $0x80] sm:$0xff] }
 0x22a   : > { %8620 = vst [vmem:[#allocation39_spill] sm:$0xff] %v5900_v1  ;;  %8621 = vst [vmem:[#allocation40_spill] sm:$0xff] %v5902_v2  ;;  %v5945_v19 = vsub.f32 %v1523_v30, %v2895_v56  ;;  %v1619_v30 = vand.u32 4294901760, %v1463_v17 }
 0x22b   : > { %8626 = vst [vmem:[#allocation45_spill] sm:$0xff] %v5915_v24  ;;  %8627 = vst [vmem:[#allocation46_spill] sm:$0xff] %v5917_v32  ;;  %v5937_v9 = vsub.f32 %v1459_v20, %v1611_v52  ;;  %v5939_v18 = vpack.c.bf16 %v1615_v54, %v1611_v52  ;;  %v6257_v32 = vld [vmem:[#allocation6 + $0x380] sm:$0xff] }
 0x22c   : > { %4445 = vmatmul.mubr.f32.vlgmr.msra.gmra.mrb[2].mxu1 %v991_v45  ;;  %v1605_v45 = vand.u32 4294901760, %v1458_v31  ;;  %8631 = vst [vmem:[#allocation50_spill] sm:$0xff] %v5927_v46  ;;  %8634 = vst [vmem:[#allocation53_spill] sm:$0xff] %v5934_v53  ;;  %v8746_v58 = vand.u32 4294901760, %v6257_v32 }
 0x22d   : > { %4870 = vmatpush1.bf16.msra.mxu1 %v5860_v26  ;;  %8635 = vst [vmem:[#allocation54_spill] sm:$0xff] %v5937_v9  ;;  %8636 = vst [vmem:[#allocation55_spill] sm:$0xff] %v5939_v18  ;;  %v1531_v26 = vld [vmem:[#allocation6 + $0x2a0] sm:$0xff] }
 0x22e   : > { %4872 = vmatprep.subr.bf16.mxu1 %v5872_v35  ;;  %v5893_v59 = vpack.c.bf16 %v1605_v45, %v1601_v43  ;;  %v5898_v0 = vsub.f32 %v1458_v31, %v1605_v45  ;;  %v1525_v31 = vld [vmem:[#allocation6 + $0x270] sm:$0xff]  ;;  %v1466_v43 = vld [vmem:[#allocation6 + $0x98] sm:$0xff]  ;;  %v1528_v45 = vld [vmem:[#allocation6 + $0x288] sm:$0xff]  ;;  %8639 = vst [vmem:[#allocation58_spill] sm:$0xff] %v5945_v19 }
 0x22f   : > { %v2899_v7 = vand.u32 4294901760, %v1525_v31  ;;  %v1621_v61 = vand.u32 4294901760, %v1466_v43  ;;  %v2901_v16 = vand.u32 4294901760, %v1528_v45 }
 0x230   : > { %8617 = vst [vmem:[#allocation36_spill] sm:$0xff] %v5893_v59  ;;  %8619 = vst [vmem:[#allocation38_spill] sm:$0xff] %v5898_v0  ;;  %4492 = vmatprep.subr.bf16.mxu0 %v5893_v59  ;;  %v1470_v59 = vld [vmem:[#allocation6 + $0xb8] sm:$0xff] }
 0x231   : > { %4874 = vmatpush1.bf16.msra.mxu1 %v5889_v57  ;;  %4494 = vmatpush1.bf16.msra.mxu0 %v5909_v21  ;;  %v5941_v21 = vsub.f32 %v1461_v25, %v1615_v54  ;;  %v5943_v63 = vpack.c.bf16 %v2899_v7, %v2895_v56  ;;  %v5949_v20 = vpack.c.bf16 %v1621_v61, %v1617_v14  ;;  %v2905_v25 = vand.u32 4294901760, %v1530_v8  ;;  %v8885_v6 = vld [vmem:[#allocation40_spill] sm:$0xff] }
 0x232   : > { %4876 = vmatprep.subr.bf16.mxu1 %v5900_v1  ;;  %4496 = vmatprep.subr.bf16.mxu0 %v5921_v39  ;;  %v1529_v39 = vld [vmem:[#allocation6 + $0x290] sm:$0xff]  ;;  %v1468_v1 = vld [vmem:[#allocation6 + $0xa8] sm:$0xff]  ;;  %v5951_v57 = vsub.f32 %v1464_v42, %v1617_v14  ;;  %v5953_v49 = vsub.f32 %v1466_v43, %v1621_v61  ;;  %v5957_v52 = vsub.f32 %v1528_v45, %v2901_v16  ;;  %v2903_v56 = vand.u32 4294901760, %v1527_v62  ;;  %v1534_v42 = vld [vmem:[#allocation6 + $0x2b8] sm:$0xff] }
 0x233   : > { %8637 = vst [vmem:[#allocation56_spill] sm:$0xff] %v5941_v21  ;;  %8638 = vst [vmem:[#allocation57_spill] sm:$0xff] %v5943_v63  ;;  %v1629_v35 = vand.u32 4294901760, %v1470_v59  ;;  %v5960_v14 = vpack.c.bf16 %v2905_v25, %v2901_v16  ;;  %v5962_v43 = vsub.f32 %v1530_v8, %v2905_v25  ;;  %v1467_v45 = vld [vmem:[#allocation6 + $0xa0] sm:$0xff]  ;;  %v1472_v16 = vld [vmem:[#allocation6 + $0xc8] sm:$0xff] }
 0x234   : > { %8641 = vst [vmem:[#allocation60_spill] sm:$0xff] %v5949_v20  ;;  %8642 = vst [vmem:[#allocation61_spill] sm:$0xff] %v5951_v57  ;;  %v5972_v10 = vsub.f32 %v1527_v62, %v2903_v56  ;;  %v2913_v62 = vand.u32 4294901760, %v1534_v42  ;;  %v1543_v21 = vld [vmem:[#allocation6 + $0x300] sm:$0xff] }
 0x235   : > { %4878 = vmatpush1.bf16.msra.mxu1 %v5915_v24  ;;  %v1465_v24 = vld [vmem:[#allocation6 + $0x90] sm:$0xff]  ;;  %8643 = vst [vmem:[#allocation62_spill] sm:$0xff] %v5953_v49  ;;  %4498 = vmatpush1.bf16.msra.mxu0 %v5939_v18  ;;  %8644 = vst [vmem:[#allocation63_spill] sm:$0xff] %v5957_v52  ;;  %v1474_v49 = vld [vmem:[#allocation6 + $0xd8] sm:$0xff]  ;;  %v5982_v25 = vsub.f32 %v1470_v59, %v1629_v35 }
 0x236   : > { %4880 = vmatprep.subr.bf16.mxu1 %v5929_v47  ;;  %v5947_v47 = vsub.f32 %v1525_v31, %v2899_v7  ;;  %v1623_v54 = vand.u32 4294901760, %v1465_v24  ;;  %4500 = vmatprep.subr.bf16.mxu0 %v5949_v20  ;;  %v2907_v31 = vand.u32 4294901760, %v1529_v39  ;;  %v1625_v7 = vand.u32 4294901760, %v1468_v1  ;;  %8645 = vst [vmem:[#allocation64_spill] sm:$0xff] %v5960_v14  ;;  %8646 = vst [vmem:[#allocation65_spill] sm:$0xff] %v5962_v43  ;;  %v1469_v18 = vld [vmem:[#allocation6 + $0xb0] sm:$0xff] }
 0x237   : > { %8651 = vst [vmem:[#allocation70_spill] sm:$0xff] %v5972_v10  ;;  %v1533_v52 = vld [vmem:[#allocation6 + $0x2b0] sm:$0xff]  ;;  %8655 = vst [vmem:[#allocation74_spill] sm:$0xff] %v5982_v25  ;;  %v1538_v10 = vld [vmem:[#allocation6 + $0x2d8] sm:$0xff] }
 0x238   : > { %8640 = vst [vmem:[#allocation59_spill] sm:$0xff] %v5947_v47  ;;  %v5964_v61 = vpack.c.bf16 %v1623_v54, %v1619_v30  ;;  %v5968_v12 = vsub.f32 %v1465_v24, %v1623_v54  ;;  %v5970_v20 = vpack.c.bf16 %v2907_v31, %v2903_v56  ;;  %v5974_v4 = vsub.f32 %v1529_v39, %v2907_v31  ;;  %v1473_v25 = vld [vmem:[#allocation6 + $0xd0] sm:$0xff] }
 0x239   : > { %4882 = vmatpush1.bf16.msra.mxu1 %v5943_v63  ;;  %v5966_v63 = vsub.f32 %v1463_v17, %v1619_v30  ;;  %v5978_v8 = vpack.c.bf16 %v1629_v35, %v1625_v7  ;;  %v5980_v17 = vsub.f32 %v1468_v1, %v1625_v7  ;;  %v2909_v24 = vand.u32 4294901760, %v1532_v33  ;;  %v1481_v43 = vld [vmem:[#allocation6 + $0x110] sm:$0xff] }
 0x23a   : > { %8647 = vst [vmem:[#allocation66_spill] sm:$0xff] %v5964_v61  ;;  %8649 = vst [vmem:[#allocation68_spill] sm:$0xff] %v5968_v12  ;;  %4884 = vmatprep.subr.bf16.mxu1 %v5960_v14  ;;  %4502 = vmatpush1.bf16.msra.mxu0 %v5964_v61  ;;  %v1627_v30 = vand.u32 4294901760, %v1467_v45  ;;  %v1631_v39 = vand.u32 4294901760, %v1469_v18  ;;  %v2911_v54 = vand.u32 4294901760, %v1531_v26  ;;  %v2915_v31 = vand.u32 4294901760, %v1533_v52 }
 0x23b   : > { %8648 = vst [vmem:[#allocation67_spill] sm:$0xff] %v5966_v63  ;;  %8650 = vst [vmem:[#allocation69_spill] sm:$0xff] %v5970_v20  ;;  %4504 = vmatprep.subr.bf16.mxu0 %v5978_v8  ;;  %v5986_v56 = vsub.f32 %v1532_v33, %v2909_v24  ;;  %v1633_v14 = vand.u32 4294901760, %v1472_v16  ;;  %v1637_v61 = vand.u32 4294901760, %v1474_v49  ;;  %v5988_v1 = vpack.c.bf16 %v2913_v62, %v2909_v24  ;;  %v1537_v63 = vld [vmem:[#allocation6 + $0x2d0] sm:$0xff] }
 0x23c   : > { %8652 = vst [vmem:[#allocation71_spill] sm:$0xff] %v5974_v4  ;;  %8653 = vst [vmem:[#allocation72_spill] sm:$0xff] %v5978_v8  ;;  %v1536_v4 = vld [vmem:[#allocation6 + $0x2c8] sm:$0xff]  ;;  %v5990_v35 = vsub.f32 %v1534_v42, %v2913_v62  ;;  %v5992_v59 = vpack.c.bf16 %v1631_v39, %v1627_v30  ;;  %v5994_v7 = vsub.f32 %v1467_v45, %v1627_v30  ;;  %v1655_v19 = vand.u32 4294901760, %v1481_v43 }
 0x23d   : > { %8654 = vst [vmem:[#allocation73_spill] sm:$0xff] %v5980_v17  ;;  %4886 = vmatpush1.bf16.msra.mxu1 %v5970_v20  ;;  %8656 = vst [vmem:[#allocation75_spill] sm:$0xff] %v5986_v56  ;;  %v1471_v20 = vld [vmem:[#allocation6 + $0xc0] sm:$0xff]  ;;  %v5996_v12 = vsub.f32 %v1469_v18, %v1631_v39  ;;  %v5998_v33 = vpack.c.bf16 %v2915_v31, %v2911_v54  ;;  %v6000_v8 = vsub.f32 %v1531_v26, %v2911_v54 }
 0x23e   : > { %8657 = vst [vmem:[#allocation76_spill] sm:$0xff] %v5988_v1  ;;  %8658 = vst [vmem:[#allocation77_spill] sm:$0xff] %v5990_v35  ;;  %v1535_v17 = vld [vmem:[#allocation6 + $0x2c0] sm:$0xff]  ;;  %v6002_v56 = vsub.f32 %v1533_v52, %v2915_v31  ;;  %4888 = vmatprep.subr.bf16.mxu1 %v5988_v1  ;;  %4506 = vmatpush1.bf16.msra.mxu0 %v5992_v59  ;;  %v6006_v42 = vpack.c.bf16 %v1637_v61, %v1633_v14  ;;  %v2917_v62 = vand.u32 4294901760, %v1536_v4 }
 0x23f   : > { %8659 = vst [vmem:[#allocation78_spill] sm:$0xff] %v5992_v59  ;;  %8660 = vst [vmem:[#allocation79_spill] sm:$0xff] %v5994_v7  ;;  %v6008_v45 = vsub.f32 %v1472_v16, %v1633_v14  ;;  %v6010_v24 = vsub.f32 %v1474_v49, %v1637_v61  ;;  %v2921_v18 = vand.u32 4294901760, %v1538_v10  ;;  %v1635_v30 = vand.u32 4294901760, %v1471_v20  ;;  %v1546_v7 = vld [vmem:[#allocation6 + $0x318] sm:$0xff]  ;;  %v1479_v35 = vld [vmem:[#allocation6 + $0x100] sm:$0xff] }
 0x240   : > { %8661 = vst [vmem:[#allocation80_spill] sm:$0xff] %v5996_v12  ;;  %8662 = vst [vmem:[#allocation81_spill] sm:$0xff] %v5998_v33  ;;  %v1639_v26 = vand.u32 4294901760, %v1473_v25  ;;  %v2919_v39 = vand.u32 4294901760, %v1535_v17  ;;  %4508 = vmatprep.subr.bf16.mxu0 %v6006_v42  ;;  %v6014_v52 = vsub.f32 %v1536_v4, %v2917_v62  ;;  %v2923_v54 = vand.u32 4294901760, %v1537_v63 }
 0x241   : > { %8663 = vst [vmem:[#allocation82_spill] sm:$0xff] %v6000_v8  ;;  %8664 = vst [vmem:[#allocation83_spill] sm:$0xff] %v6002_v56  ;;  %4890 = vmatpush1.bf16.msra.mxu1 %v5998_v33  ;;  %v6016_v31 = vpack.c.bf16 %v2921_v18, %v2917_v62  ;;  %v6018_v59 = vsub.f32 %v1538_v10, %v2921_v18  ;;  %v6022_v49 = vsub.f32 %v1471_v20, %v1635_v30  ;;  %v4298_v4 = vld [vmem:[%s8125_s4] ss:$0 sm:$0xff]  ;;  %v1544_v56 = vld [vmem:[#allocation6 + $0x308] sm:$0xff] }
 0x242   : > { %8665 = vst [vmem:[#allocation84_spill] sm:$0xff] %v6006_v42  ;;  %8666 = vst [vmem:[#allocation85_spill] sm:$0xff] %v6008_v45  ;;  %v6020_v14 = vpack.c.bf16 %v1639_v26, %v1635_v30  ;;  %v6024_v61 = vsub.f32 %v1473_v25, %v1639_v26  ;;  %v6026_v16 = vpack.c.bf16 %v2923_v54, %v2919_v39  ;;  %v1540_v26 = vld [vmem:[#allocation6 + $0x2e8] sm:$0xff]  ;;  %v1475_v42 = vld [vmem:[#allocation6 + $0xe0] sm:$0xff]  ;;  %v2937_v57 = vand.u32 4294901760, %v1546_v7 }
 0x243   : > { %8667 = vst [vmem:[#allocation86_spill] sm:$0xff] %v6010_v24  ;;  %8668 = vst [vmem:[#allocation87_spill] sm:$0xff] %v6014_v52  ;;  %v6028_v33 = vsub.f32 %v1535_v17, %v2919_v39  ;;  %v6030_v1 = vsub.f32 %v1537_v63, %v2923_v54  ;;  %4892 = vmatprep.subr.bf16.mxu1 %v6016_v31  ;;  %v1476_v17 = vld [vmem:[#allocation6 + $0xe8] sm:$0xff]  ;;  %v1478_v63 = vld [vmem:[#allocation6 + $0xf8] sm:$0xff]  ;;  %v1651_v47 = vand.u32 4294901760, %v1479_v35 }
 0x244   : > { %8669 = vst [vmem:[#allocation88_spill] sm:$0xff] %v6016_v31  ;;  %8670 = vst [vmem:[#allocation89_spill] sm:$0xff] %v6018_v59  ;;  %4510 = vmatpush1.bf16.msra.mxu0 %v6020_v14  ;;  %v1641_v39 = vand.u32 4294901760, %v1476_v17  ;;  %v1645_v54 = vand.u32 4294901760, %v1478_v63  ;;  %v1542_v31 = vld [vmem:[#allocation6 + $0x2f8] sm:$0xff]  ;;  %v1539_v59 = vld [vmem:[#allocation6 + $0x2e0] sm:$0xff] }
 0x245   : > { %8671 = vst [vmem:[#allocation90_spill] sm:$0xff] %v6020_v14  ;;  %8672 = vst [vmem:[#allocation91_spill] sm:$0xff] %v6022_v49  ;;  %4894 = vmatpush1.bf16.msra.mxu1 %v6026_v16  ;;  %v2925_v14 = vand.u32 4294901760, %v1540_v26  ;;  %v1480_v24 = vld [vmem:[#allocation6 + $0x108] sm:$0xff]  ;;  %v1482_v45 = vld [vmem:[#allocation6 + $0x118] sm:$0xff] }
 0x246   : > { %8673 = vst [vmem:[#allocation92_spill] sm:$0xff] %v6024_v61  ;;  %8674 = vst [vmem:[#allocation93_spill] sm:$0xff] %v6026_v16  ;;  %v1477_v16 = vld [vmem:[#allocation6 + $0xf0] sm:$0xff]  ;;  %v1643_v61 = vand.u32 4294901760, %v1475_v42  ;;  %v1653_v12 = vand.u32 4294901760, %v1482_v45  ;;  %v6052_v9 = vsub.f32 %v1476_v17, %v1641_v39  ;;  %v6071_v17 = vld [vmem:[#allocation6 + $0x138] sm:$0xff] }
 0x247   : > { %8675 = vst [vmem:[#allocation94_spill] sm:$0xff] %v6028_v33  ;;  %8676 = vst [vmem:[#allocation95_spill] sm:$0xff] %v6030_v1  ;;  %v2929_v33 = vand.u32 4294901760, %v1542_v31  ;;  %v1647_v49 = vand.u32 4294901760, %v1477_v16 }
 0x248   : > { %8682 = vst [vmem:[#allocation101_spill] sm:$0xff] %v6052_v9  ;;  %v6061_v46 = vsub.f32 %v1475_v42, %v1643_v61  ;;  %v2935_v42 = vand.u32 4294901760, %v1543_v21  ;;  %v6293_v9 = vld [vmem:[#allocation6 + $0x1a8] sm:$0xff] }
 0x249   : > { %v6045_v52 = vpack.c.bf16 %v1647_v49, %v1643_v61  ;;  %v6058_v53 = vsub.f32 %v1542_v31, %v2929_v33  ;;  %v6079_v31 = vpack.c.bf16 %v1655_v19, %v1651_v47  ;;  %v6081_v61 = vld [vmem:[#allocation6 + $0x338] sm:$0xff] }
 0x24a   : > { %8686 = vst [vmem:[#allocation105_spill] sm:$0xff] %v6061_v46  ;;  %v6234_v46 = vld [vmem:[#allocation6 + $0x188] sm:$0xff] }
 0x24b   : > { %8680 = vst [vmem:[#allocation99_spill] sm:$0xff] %v6045_v52  ;;  %8685 = vst [vmem:[#allocation104_spill] sm:$0xff] %v6058_v53 }
 0x24c   : > { %8692 = vst [vmem:[#allocation111_spill] sm:$0xff] %v6079_v31 }
 0x2ff   : > { %v1367_v10 = vpop.f32.mrb[2].mxu1 }
 0x300   : > { %v5253_v20 = vadd.f32 %v4298_v4, %v1367_v10  ;;  %v4446_v25 = vpop.f32.mrb[3].mxu1  ;;  %v1541_v4 = vld [vmem:[#allocation6 + $0x2f0] sm:$0xff] }
 0x301   : > { %v6038_v25 = vpack.c.bf16 %v1645_v54, %v1641_v39  ;;  %v6086_v39 = vld [vmem:[#allocation6 + $0x120] sm:$0xff] }
 0x302   : > { %v1372_v62 = vrot.slane %v5253_v20, 1  ;;  %v8770_v11 = vand.u32 4294901760, %v6086_v39 }
 0x303   : > { %8677 = vst [vmem:[#allocation96_spill] sm:$0xff] %v6038_v25  ;;  %4512 = vmatprep.subr.bf16.mxu0 %v6038_v25  ;;  %v6056_v25 = vsub.f32 %v1540_v26, %v2925_v14  ;;  %v6103_v26 = vsub.f32 %v1546_v7, %v2937_v57  ;;  %v8703_v7 = vand.u32 4294901760, %v6071_v17 }
 0x304   : > { %v1374_v18 = vadd.f32 %v5253_v20, %v1372_v62  ;;  %v2927_v20 = vand.u32 4294901760, %v1539_v59  ;;  %v2931_v62 = vand.u32 4294901760, %v1541_v4  ;;  %4514 = vmatpush1.bf16.msra.mxu0 %v6045_v52 }
 0x305   : > { %8684 = vst [vmem:[#allocation103_spill] sm:$0xff] %v6056_v25  ;;  %8696 = vst [vmem:[#allocation115_spill] sm:$0xff] %v6103_v26 }
 0x306   : > { %v4299_v30 = vmul.f32 -1.442695, %v1374_v18  ;;  %v6041_v18 = vsub.s32 0, %v5787_v55  ;;  %v6048_v8 = vpack.c.bf16 %v2931_v62, %v2927_v20  ;;  %v2933_v55 = vand.u32 4294901760, %v1544_v56 }
 0x307   : > { %v6065_v52 = vsub.f32 %v1539_v59, %v2927_v20  ;;  %v6067_v41 = vsub.f32 %v1541_v4, %v2931_v62  ;;  %v6091_v4 = vsub.f32 %v1482_v45, %v1653_v12  ;;  %v6099_v59 = vld [vmem:[#allocation6 + $0x320] sm:$0xff]  ;;  %v6118_v62 = vsub.f32 %v1543_v21, %v2935_v42 }
 0x308   : > { %5362 = vpow2.f32 %v4299_v30  ;;  %8678 = vst [vmem:[#allocation97_spill] sm:$0xff] %v6041_v18  ;;  %v6043_v30 = vpack.c.bf16 %v2929_v33, %v2925_v14  ;;  %8681 = vst [vmem:[#allocation100_spill] sm:$0xff] %v6048_v8  ;;  %v6077_v33 = vpack.c.bf16 %v2937_v57, %v2933_v55  ;;  %v6094_v20 = vsub.f32 %v1544_v56, %v2933_v55  ;;  %v6112_v56 = vld [vmem:[#allocation6 + $0x148] sm:$0xff] }
 0x309   : > { %8688 = vst [vmem:[#allocation107_spill] sm:$0xff] %v6065_v52  ;;  %8689 = vst [vmem:[#allocation108_spill] sm:$0xff] %v6067_v41  ;;  %v6116_v55 = vld [vmem:[#allocation6 + $0x348] sm:$0xff]  ;;  %v8702_v57 = vand.u32 4294901760, %v6069_v37  ;;  %v6398_v37 = vsub.f32 %v6086_v39, %v8770_v11 }
 0x30a   : > { %8679 = vst [vmem:[#allocation98_spill] sm:$0xff] %v6043_v30  ;;  %4896 = vmatprep.subr.bf16.mxu1 %v6043_v30  ;;  %v6063_v30 = vsub.f32 %v1477_v16, %v1647_v49  ;;  %8691 = vst [vmem:[#allocation110_spill] sm:$0xff] %v6077_v33  ;;  %v2939_v49 = vand.u32 4294901760, %v1545_v48  ;;  %v6101_v16 = vld [vmem:[#allocation6 + $0x330] sm:$0xff] }
 0x30b   : > { %4898 = vmatpush1.bf16.msra.mxu1 %v6048_v8  ;;  %8694 = vst [vmem:[#allocation113_spill] sm:$0xff] %v6091_v4  ;;  %8695 = vst [vmem:[#allocation114_spill] sm:$0xff] %v6094_v20  ;;  %v6097_v8 = vld [vmem:[#allocation6 + $0x130] sm:$0xff]  ;;  %v6191_v20 = vld [vmem:[#allocation6 + $0x378] sm:$0xff] }
 0x30c   : > { %8687 = vst [vmem:[#allocation106_spill] sm:$0xff] %v6063_v30  ;;  %4900 = vmatprep.subr.bf16.mxu1 %v6077_v33  ;;  %v6110_v45 = vpack.c.bf16 %v2939_v49, %v2935_v42  ;;  %8700 = vst [vmem:[#allocation119_spill] sm:$0xff] %v6118_v62  ;;  %v6120_v33 = vsub.f32 %v1545_v48, %v2939_v49  ;;  %v6153_v42 = vld [vmem:[#allocation6 + $0x350] sm:$0xff]  ;;  %v8709_v62 = vand.u32 4294901760, %v6097_v8  ;;  %v6171_v48 = vld [vmem:[#allocation6 + $0x168] sm:$0xff] }
 0x30d   : > { %v6193_v4 = vld [vmem:[#allocation6 + $0x160] sm:$0xff]  ;;  %8771 = vst [vmem:[#allocation147_spill] sm:$0xff] %v6398_v37 }
 0x30e   : > { %8699 = vst [vmem:[#allocation118_spill] sm:$0xff] %v6110_v45  ;;  %8701 = vst [vmem:[#allocation120_spill] sm:$0xff] %v6120_v33  ;;  %v8708_v33 = vand.u32 4294901760, %v6086_v39  ;;  %v6214_v30 = vld [vmem:[#allocation6 + $0x360] sm:$0xff]  ;;  %v8778_v39 = vand.u32 4294901760, %v6112_v56 }
 0x30f   : > { %4902 = vmatpush1.bf16.msra.mxu1 %v6110_v45  ;;  %v8734_v23 = vand.u32 4294901760, %v6214_v30 }
 0x310   : > { %v6419_v11 = vsub.f32 %v6112_v56, %v8778_v39 }
 0x312   : > { %v5363_v1 = vpop.eup %5362  ;;  %8779 = vst [vmem:[#allocation151_spill] sm:$0xff] %v6419_v11 }
 0x313   : > { %v1378_v10 = vadd.f32 1.0, %v5363_v1  ;;  %v1649_v1 = vand.u32 4294901760, %v1480_v24 }
 0x315   : > { %5364 = vrcp.f32 %v1378_v10  ;;  %v6054_v10 = vsub.f32 %v1478_v63, %v1645_v54  ;;  %v6073_v63 = vld [vmem:[#allocation6 + $0x328] sm:$0xff]  ;;  %v6075_v14 = vpack.c.bf16 %v1653_v12, %v1649_v1  ;;  %v6089_v54 = vsub.f32 %v1480_v24, %v1649_v1  ;;  %v6114_v1 = vld [vmem:[#allocation6 + $0x158] sm:$0xff] }
 0x316   : > { %v6106_v24 = vsub.f32 %v1479_v35, %v1651_v47  ;;  %v6108_v12 = vsub.f32 %v1481_v43, %v1655_v19  ;;  %v6126_v47 = vpack.c.bf16 %v8703_v7, %v8702_v57  ;;  %v8705_v19 = vand.u32 4294901760, %v6073_v63  ;;  %v6143_v57 = vld [vmem:[#allocation6 + $0x150] sm:$0xff]  ;;  %v6145_v7 = vld [vmem:[#allocation6 + $0x340] sm:$0xff] }
 0x317   : > { %8683 = vst [vmem:[#allocation102_spill] sm:$0xff] %v6054_v10  ;;  %8690 = vst [vmem:[#allocation109_spill] sm:$0xff] %v6075_v14  ;;  %4516 = vmatprep.subr.bf16.mxu0 %v6075_v14  ;;  %v8706_v43 = vand.u32 4294901760, %v6081_v61  ;;  %v6136_v14 = vld [vmem:[#allocation6 + $0x140] sm:$0xff]  ;;  %v8766_v5 = vand.u32 4294901760, %v6073_v63 }
 0x318   : > { %8693 = vst [vmem:[#allocation112_spill] sm:$0xff] %v6089_v54  ;;  %4518 = vmatpush1.bf16.msra.mxu0 %v6079_v31  ;;  %8697 = vst [vmem:[#allocation116_spill] sm:$0xff] %v6106_v24  ;;  %v6134_v31 = vld [vmem:[#allocation6 + $0x358] sm:$0xff]  ;;  %v8715_v24 = vand.u32 4294901760, %v6114_v1  ;;  %v6195_v54 = vld [vmem:[#allocation6 + $0x170] sm:$0xff]  ;;  %v8720_v21 = vand.u32 4294901760, %v6136_v14 }
 0x319   : > { %8698 = vst [vmem:[#allocation117_spill] sm:$0xff] %v6108_v12  ;;  %8704 = vst [vmem:[#allocation121_spill] sm:$0xff] %v6126_v47  ;;  %v6132_v35 = vpack.c.bf16 %v8706_v43, %v8705_v19  ;;  %4520 = vmatprep.subr.bf16.mxu0 %v6126_v47  ;;  %v6162_v47 = vpack.c.bf16 %v8709_v62, %v8708_v33  ;;  %v8712_v43 = vand.u32 4294901760, %v6101_v16  ;;  %v6173_v12 = vld [vmem:[#allocation6 + $0x178] sm:$0xff]  ;;  %v8717_v62 = vand.u32 4294901760, %v6116_v55 }
 0x31a   : > { %v8718_v26 = vand.u32 4294901760, %v6134_v31 }
 0x31b   : > { %8707 = vst [vmem:[#allocation122_spill] sm:$0xff] %v6132_v35  ;;  %4904 = vmatprep.subr.bf16.mxu1 %v6132_v35  ;;  %8710 = vst [vmem:[#allocation123_spill] sm:$0xff] %v6162_v47  ;;  %v8711_v35 = vand.u32 4294901760, %v6099_v59 }
 0x31c   : > { %4522 = vmatpush1.bf16.msra.mxu0 %v6162_v47  ;;  %v6252_v47 = vld [vmem:[#allocation6 + $0x190] sm:$0xff] }
 0x31d   : > { %v6168_v45 = vpack.c.bf16 %v8712_v43, %v8711_v35  ;;  %v6187_v35 = vpack.c.bf16 %v8718_v26, %v8717_v62  ;;  %v8256_v43 = vand.u32 4294901760, %v6143_v57  ;;  %v6216_v26 = vld [vmem:[#allocation6 + $0x370] sm:$0xff]  ;;  %v8722_v62 = vand.u32 4294901760, %v6145_v7 }
 0x31e   : > { %v8735_v10 = vand.u32 4294901760, %v6216_v26  ;;  %v8744_v0 = vand.u32 4294901760, %v6252_v47 }
 0x31f   : > { %v5365_v19 = vpop.eup %5364  ;;  %8713 = vst [vmem:[#allocation124_spill] sm:$0xff] %v6168_v45  ;;  %8719 = vst [vmem:[#allocation126_spill] sm:$0xff] %v6187_v35  ;;  %4906 = vmatpush1.bf16.msra.mxu1 %v6168_v45  ;;  %v6209_v41 = vpack.c.bf16 %v8256_v43, %v8720_v21  ;;  %v8723_v45 = vand.u32 4294901760, %v6153_v42  ;;  %v8725_v43 = vand.u32 4294901760, %v6171_v48 }
 0x320   : > { %v6156_v49 = vrot.slane %v5365_v19, %v6041_v18  ;;  %v6175_v19 = vld [vmem:[#allocation6 + $0x368] sm:$0xff]  ;;  %v8714_v18 = vand.u32 4294901760, %v6112_v56  ;;  %4908 = vmatprep.subr.bf16.mxu1 %v6187_v35  ;;  %v6273_v22 = vpack.c.bf16 %v8735_v10, %v8734_v23  ;;  %v8786_v56 = vand.u32 4294901760, %v6136_v14 }
 0x321   : > { %8721 = vst [vmem:[#allocation127_spill] sm:$0xff] %v6209_v41  ;;  %v6224_v21 = vpack.c.bf16 %v8723_v45, %v8722_v62  ;;  %v6238_v35 = vld [vmem:[#allocation6 + $0x388] sm:$0xff]  ;;  %v8728_v53 = vand.u32 4294901760, %v6175_v19  ;;  %v8729_v45 = vand.u32 4294901760, %v6191_v20 }
 0x322   : > { %v6181_v33 = vpack.c.bf16 %v8715_v24, %v8714_v18  ;;  %1390 = vbcast.lane.b32.xlu1 %v6156_v49, 264  ;;  %1386 = vbcast.lane.b32.xlu0 %v6156_v49, 256  ;;  %v8726_v18 = vand.u32 4294901760, %v6173_v12  ;;  %v6250_v24 = vld [vmem:[#allocation6 + $0x180] sm:$0xff]  ;;  %8736 = vst [vmem:[#allocation132_spill] sm:$0xff] %v6273_v22  ;;  %v6440_v39 = vsub.f32 %v6136_v14, %v8786_v56  ;;  %v8794_v14 = vand.u32 4294901760, %v6171_v48 }
 0x323   : > { %8724 = vst [vmem:[#allocation128_spill] sm:$0xff] %v6224_v21  ;;  %v6244_v62 = vpack.c.bf16 %v8729_v45, %v8728_v53  ;;  %v6259_v53 = vld [vmem:[#allocation6 + $0x390] sm:$0xff]  ;;  %4910 = vmatpush1.bf16.msra.mxu1 %v6224_v21  ;;  %v8731_v45 = vand.u32 4294901760, %v6193_v4  ;;  %v8737_v21 = vand.u32 4294901760, %v6234_v46 }
 0x324   : > { %8716 = vst [vmem:[#allocation125_spill] sm:$0xff] %v6181_v33  ;;  %4524 = vmatprep.subr.bf16.mxu0 %v6181_v33  ;;  %v6230_v52 = vpack.c.bf16 %v8726_v18, %v8725_v43  ;;  %v6236_v33 = vld [vmem:[#allocation6 + $0x198] sm:$0xff]  ;;  %v8732_v43 = vand.u32 4294901760, %v6195_v54  ;;  %v8747_v10 = vand.u32 4294901760, %v6259_v53  ;;  %8787 = vst [vmem:[#allocation155_spill] sm:$0xff] %v6440_v39  ;;  %v6461_v56 = vsub.f32 %v6171_v48, %v8794_v14 }
 0x325   : > { %8730 = vst [vmem:[#allocation130_spill] sm:$0xff] %v6244_v62  ;;  %v6248_v18 = vld [vmem:[#allocation6 + $0x398] sm:$0xff]  ;;  %4526 = vmatpush1.bf16.msra.mxu0 %v6209_v41  ;;  %4912 = vmatprep.subr.bf16.mxu1 %v6244_v62  ;;  %v8738_v41 = vand.u32 4294901760, %v6236_v33  ;;  %v6297_v62 = vld [vmem:[#allocation6 + $0x3a8] sm:$0xff]  ;;  %v8800_v48 = vand.u32 4294901760, %v6193_v4 }
 0x326   : > { %8727 = vst [vmem:[#allocation129_spill] sm:$0xff] %v6230_v52  ;;  %1394 = vbcast.lane.b32.xlu1 %v6156_v49, 272  ;;  %v6267_v25 = vpack.c.bf16 %v8732_v43, %v8731_v45  ;;  %4528 = vmatprep.subr.bf16.mxu0 %v6230_v52  ;;  %v8740_v45 = vand.u32 4294901760, %v6238_v35  ;;  %v8741_v2 = vand.u32 4294901760, %v6248_v18  ;;  %v6295_v52 = vld [vmem:[#allocation6 + $0x1b8] sm:$0xff]  ;;  %8795 = vst [vmem:[#allocation159_spill] sm:$0xff] %v6461_v56 }
 0x327   : > { %v6283_v43 = vpack.c.bf16 %v8738_v41, %v8737_v21  ;;  %v6301_v21 = vld [vmem:[#allocation6 + $0x3b8] sm:$0xff]  ;;  %4914 = vmatpush1.bf16.msra.mxu1 %v6273_v22  ;;  %v8743_v41 = vand.u32 4294901760, %v6250_v24  ;;  %v8749_v22 = vand.u32 4294901760, %v6293_v9  ;;  %v6482_v14 = vsub.f32 %v6193_v4, %v8800_v48 }
 0x328   : > { %8733 = vst [vmem:[#allocation131_spill] sm:$0xff] %v6267_v25  ;;  %v6289_v23 = vpack.c.bf16 %v8741_v2, %v8740_v45  ;;  %v6305_v2 = vld [vmem:[#allocation6 + $0x1b0] sm:$0xff]  ;;  %v6331_v45 = vpack.c.bf16 %v8747_v10, %v8746_v58  ;;  %v8753_v3 = vand.u32 4294901760, %v6301_v21  ;;  %v6350_v58 = vld [vmem:[#allocation6 + $0x3c8] sm:$0xff]  ;;  %v8755_v10 = vand.u32 4294901760, %v6303_v60 }
 0x329   : > { %8739 = vst [vmem:[#allocation133_spill] sm:$0xff] %v6283_v43  ;;  %4530 = vmatpush1.bf16.msra.mxu0 %v6267_v25  ;;  %v6320_v50 = vpack.c.bf16 %v8744_v0, %v8743_v41  ;;  %v8750_v25 = vand.u32 4294901760, %v6295_v52  ;;  %v8752_v41 = vand.u32 4294901760, %v6297_v62  ;;  %v8756_v36 = vand.u32 4294901760, %v6305_v2  ;;  %8801 = vst [vmem:[#allocation161_spill] sm:$0xff] %v6482_v14 }
 0x32a   : > { %8742 = vst [vmem:[#allocation134_spill] sm:$0xff] %v6289_v23  ;;  %1398 = vbcast.lane.b32.xlu1 %v6156_v49, 280  ;;  %v6322_v49 = vld [vmem:[#allocation6 + $0x3b0] sm:$0xff]  ;;  %4532 = vmatprep.subr.bf16.mxu0 %v6283_v43  ;;  %8748 = vst [vmem:[#allocation136_spill] sm:$0xff] %v6331_v45  ;;  %v6346_v43 = vld [vmem:[#allocation6 + $0x1c8] sm:$0xff]  ;;  %v8808_v4 = vand.u32 4294901760, %v6234_v46 }
 0x32b   : > { %8745 = vst [vmem:[#allocation135_spill] sm:$0xff] %v6320_v50  ;;  %4916 = vmatprep.subr.bf16.mxu1 %v6289_v23  ;;  %v6337_v0 = vpack.c.bf16 %v8750_v25, %v8749_v22  ;;  %v6343_v40 = vpack.c.bf16 %v8753_v3, %v8752_v41  ;;  %v2979_v23 = vand.u32 4294901760, %v6322_v49  ;;  %v6356_v22 = vpack.c.bf16 %v8756_v36, %v8755_v10  ;;  %v6360_v3 = vld [vmem:[#allocation6 + $0x3d8] sm:$0xff] }
 0x32c   : > { %v1697_v25 = vand.u32 4294901760, %v6346_v43  ;;  %8758 = vst [vmem:[#allocation140_spill] sm:$0xff] %v6360_v3  ;;  %v2985_v13 = vand.u32 4294901760, %v6360_v3  ;;  %v1699_v36 = vand.u32 4294901760, %v6363_v29  ;;  %v8764_v41 = vand.u32 4294901760, %v6071_v17  ;;  %4918 = vmatpush1.bf16.msra.mxu1 %v6331_v45 }
 0x32d   : > { %8751 = vst [vmem:[#allocation137_spill] sm:$0xff] %v6337_v0  ;;  %8754 = vst [vmem:[#allocation138_spill] sm:$0xff] %v6343_v40  ;;  %v6369_v15 = vpack.c.bf16 %v2979_v23, %v8760_v27  ;;  %v6387_v27 = vsub.f32 %v6073_v63, %v8766_v5  ;;  %v8768_v3 = vand.u32 4294901760, %v6081_v61  ;;  %4534 = vmatpush1.bf16.msra.mxu0 %v6320_v50  ;;  %v8774_v5 = vand.u32 4294901760, %v6099_v59 }
 0x32e   : > { %8757 = vst [vmem:[#allocation139_spill] sm:$0xff] %v6356_v22  ;;  %v6382_v44 = vsub.f32 %v6071_v17, %v8764_v41  ;;  %v8772_v17 = vand.u32 4294901760, %v6097_v8  ;;  %4536 = vmatprep.subr.bf16.mxu0 %v6337_v0  ;;  %4920 = vmatprep.subr.bf16.mxu1 %v6343_v40  ;;  %v6503_v48 = vsub.f32 %v6234_v46, %v8808_v4  ;;  %v8816_v10 = vand.u32 4294901760, %v6250_v24  ;;  %v1507_v0 = vld [vmem:[#allocation6 + $0x1e0] sm:$0xff] }
 0x32f   : > { %8761 = vst [vmem:[#allocation142_spill] sm:$0xff] %v6369_v15  ;;  %8767 = vst [vmem:[#allocation145_spill] sm:$0xff] %v6387_v27  ;;  %v6392_v29 = vsub.f32 %v6081_v61, %v8768_v3  ;;  %v6408_v63 = vsub.f32 %v6099_v59, %v8774_v5  ;;  %v8776_v61 = vand.u32 4294901760, %v6101_v16  ;;  %v8782_v59 = vand.u32 4294901760, %v6116_v55 }
 0x330   : > { %8765 = vst [vmem:[#allocation144_spill] sm:$0xff] %v6382_v44  ;;  %v6403_v41 = vsub.f32 %v6097_v8, %v8772_v17  ;;  %v8780_v8 = vand.u32 4294901760, %v6114_v1  ;;  %4922 = vmatpush1.bf16.msra.mxu1 %v6369_v15  ;;  %8809 = vst [vmem:[#allocation165_spill] sm:$0xff] %v6503_v48  ;;  %v6523_v46 = vsub.f32 %v6250_v24, %v8816_v10  ;;  %v8818_v4 = vand.u32 4294901760, %v6252_v47  ;;  %v8884_v44 = vld [vmem:[#allocation38_spill] sm:$0xff] }
 0x331   : > { %8769 = vst [vmem:[#allocation146_spill] sm:$0xff] %v6392_v29  ;;  %8775 = vst [vmem:[#allocation149_spill] sm:$0xff] %v6408_v63  ;;  %v6413_v3 = vsub.f32 %v6101_v16, %v8776_v61  ;;  %v6429_v5 = vsub.f32 %v6116_v55, %v8782_v59  ;;  %v8784_v16 = vand.u32 4294901760, %v6134_v31  ;;  %v8790_v55 = vand.u32 4294901760, %v6145_v7  ;;  %4538 = vmatpush1.bf16.msra.mxu0 %v6356_v22  ;;  %v1510_v22 = vld [vmem:[#allocation6 + $0x1f8] sm:$0xff]  ;;  %v8873_v63 = vld [vmem:[#allocation22_spill] sm:$0xff] }
 0x332   : > { %8773 = vst [vmem:[#allocation148_spill] sm:$0xff] %v6403_v41  ;;  %v6424_v17 = vsub.f32 %v6114_v1, %v8780_v8  ;;  %v8788_v1 = vand.u32 4294901760, %v6143_v57  ;;  %8817 = vst [vmem:[#allocation169_spill] sm:$0xff] %v6523_v46  ;;  %v8825_v10 = vand.u32 4294901760, %v6295_v52  ;;  %v8831_v15 = vand.u32 4294901760, %v6303_v60  ;;  %v8882_v29 = vld [vmem:[#allocation35_spill] sm:$0xff] }
 0x333   : > { %8777 = vst [vmem:[#allocation150_spill] sm:$0xff] %v6413_v3  ;;  %8783 = vst [vmem:[#allocation153_spill] sm:$0xff] %v6429_v5  ;;  %v6434_v61 = vsub.f32 %v6134_v31, %v8784_v16  ;;  %v6450_v59 = vsub.f32 %v6145_v7, %v8790_v55  ;;  %v8792_v31 = vand.u32 4294901760, %v6153_v42  ;;  %v8798_v7 = vand.u32 4294901760, %v6175_v19  ;;  %v8843_v45 = vld [vmem:[#allocation140_spill] sm:$0xff] }
 0x334   : > { %8781 = vst [vmem:[#allocation152_spill] sm:$0xff] %v6424_v17  ;;  %v6445_v8 = vsub.f32 %v6143_v57, %v8788_v1  ;;  %v8796_v57 = vand.u32 4294901760, %v6173_v12  ;;  %v6578_v40 = vpack.c.bf16 %v1701_v34, %v1697_v25  ;;  %v6596_v50 = vsub.f32 %v8843_v45, %v2985_v13 }
 0x335   : > { %8785 = vst [vmem:[#allocation154_spill] sm:$0xff] %v6434_v61  ;;  %8791 = vst [vmem:[#allocation157_spill] sm:$0xff] %v6450_v59  ;;  %v6455_v16 = vsub.f32 %v6153_v42, %v8792_v31  ;;  %v6471_v55 = vsub.f32 %v6175_v19, %v8798_v7  ;;  %v8799_v42 = vand.u32 4294901760, %v6191_v20  ;;  %v8804_v19 = vand.u32 4294901760, %v6214_v30 }
 0x336   : > { %8789 = vst [vmem:[#allocation156_spill] sm:$0xff] %v6445_v8  ;;  %v6466_v1 = vsub.f32 %v6173_v12, %v8796_v57  ;;  %v8802_v12 = vand.u32 4294901760, %v6195_v54  ;;  %8836 = vst [vmem:[#allocation178_spill] sm:$0xff] %v6578_v40  ;;  %4540 = vmatprep.subr.bf16.mxu0 %v6578_v40  ;;  %v1709_v45 = vand.u32 4294901760, %v1510_v22 }
 0x337   : > { %8793 = vst [vmem:[#allocation158_spill] sm:$0xff] %v6455_v16  ;;  %v6476_v31 = vsub.f32 %v6191_v20, %v8799_v42  ;;  %v6492_v7 = vsub.f32 %v6214_v30, %v8804_v19  ;;  %v8806_v20 = vand.u32 4294901760, %v6216_v26  ;;  %v8812_v30 = vand.u32 4294901760, %v6238_v35  ;;  %8844 = vst [vmem:[#allocation140_spill] sm:$0xff] %v6596_v50  ;;  %v1509_v16 = vld [vmem:[#allocation6 + $0x1f0] sm:$0xff] }
 0x338   : > { %8797 = vst [vmem:[#allocation160_spill] sm:$0xff] %v6466_v1  ;;  %v6487_v57 = vsub.f32 %v6195_v54, %v8802_v12  ;;  %v8810_v54 = vand.u32 4294901760, %v6236_v33  ;;  %v6623_v39 = vsub.f32 %v1510_v22, %v1709_v45  ;;  %v1711_v17 = vand.u32 4294901760, %v1509_v16 }
 0x339   : > { %8805 = vst [vmem:[#allocation163_spill] sm:$0xff] %v6492_v7  ;;  %v6497_v42 = vsub.f32 %v6216_v26, %v8806_v20  ;;  %v6513_v19 = vsub.f32 %v6238_v35, %v8812_v30  ;;  %v8814_v26 = vand.u32 4294901760, %v6248_v18  ;;  %v8821_v30 = vand.u32 4294901760, %v6259_v53 }
 0x33a   : > { %8803 = vst [vmem:[#allocation162_spill] sm:$0xff] %v6487_v57  ;;  %v6508_v12 = vsub.f32 %v6236_v33, %v8810_v54  ;;  %v6528_v33 = vsub.f32 %v6252_v47, %v8818_v4  ;;  %v8820_v54 = vand.u32 4294901760, %v6257_v32  ;;  %v6548_v47 = vsub.f32 %v6295_v52, %v8825_v10  ;;  %8856 = vst [vmem:[#allocation190_spill] sm:$0xff] %v6623_v39 }
 0x33b   : > { %8807 = vst [vmem:[#allocation164_spill] sm:$0xff] %v6497_v42  ;;  %8813 = vst [vmem:[#allocation167_spill] sm:$0xff] %v6513_v19  ;;  %v6518_v20 = vsub.f32 %v6248_v18, %v8814_v26  ;;  %v6538_v18 = vsub.f32 %v6259_v53, %v8821_v30  ;;  %v8823_v26 = vand.u32 4294901760, %v6293_v9  ;;  %v8827_v4 = vand.u32 4294901760, %v6297_v62  ;;  %v1567_v30 = vld [vmem:[#allocation6 + $0x3c0] sm:$0xff] }
 0x33c   : > { %8811 = vst [vmem:[#allocation166_spill] sm:$0xff] %v6508_v12  ;;  %8819 = vst [vmem:[#allocation170_spill] sm:$0xff] %v6528_v33  ;;  %v6533_v35 = vsub.f32 %v6257_v32, %v8820_v54  ;;  %v8829_v54 = vand.u32 4294901760, %v6301_v21  ;;  %v8833_v10 = vand.u32 4294901760, %v6312_v51 }
 0x33d   : > { %8815 = vst [vmem:[#allocation168_spill] sm:$0xff] %v6518_v20  ;;  %8822 = vst [vmem:[#allocation171_spill] sm:$0xff] %v6538_v18  ;;  %v6543_v24 = vsub.f32 %v6293_v9, %v8823_v26  ;;  %v6553_v32 = vsub.f32 %v6297_v62, %v8827_v4  ;;  %v6563_v9 = vsub.f32 %v6303_v60, %v8831_v15  ;;  %v8832_v26 = vand.u32 4294901760, %v6305_v2 }
 0x33e   : > { %8826 = vst [vmem:[#allocation173_spill] sm:$0xff] %v6548_v47  ;;  %v6558_v53 = vsub.f32 %v6301_v21, %v8829_v54  ;;  %v6573_v62 = vsub.f32 %v6312_v51, %v8833_v10  ;;  %v6576_v4 = vsub.f32 %v6322_v49, %v2979_v23  ;;  %v1569_v21 = vld [vmem:[#allocation6 + $0x3d0] sm:$0xff]  ;;  %v1508_v54 = vld [vmem:[#allocation6 + $0x1e8] sm:$0xff]  ;;  %v6581_v15 = vsub.f32 %v6346_v43, %v1697_v25  ;;  %v1574_v10 = vld [vmem:[#allocation6 + $0x3f8] sm:$0xff] }
 0x33f   : > { %8824 = vst [vmem:[#allocation172_spill] sm:$0xff] %v6543_v24  ;;  %8828 = vst [vmem:[#allocation174_spill] sm:$0xff] %v6553_v32  ;;  %v6568_v52 = vsub.f32 %v6305_v2, %v8832_v26  ;;  %v6584_v60 = vsub.f32 %v6348_v38, %v1701_v34  ;;  %v8839_v2 = vand.u32 4294901760, %v6350_v58  ;;  %v1572_v51 = vld [vmem:[#allocation6 + $0x3e8] sm:$0xff]  ;;  %v8845_v43 = vand.u32 4294901760, %v6365_v28 }
 0x340   : > { %8830 = vst [vmem:[#allocation175_spill] sm:$0xff] %v6558_v53  ;;  %8834 = vst [vmem:[#allocation176_spill] sm:$0xff] %v6573_v62  ;;  %v8847_v34 = vld [vmem:[#allocation141_spill] sm:$0xff]  ;;  %v2993_v56 = vand.u32 4294901760, %v1574_v10 }
 0x341   : > { %8835 = vst [vmem:[#allocation177_spill] sm:$0xff] %v6576_v4  ;;  %8837 = vst [vmem:[#allocation179_spill] sm:$0xff] %v6581_v15  ;;  %v6588_v26 = vpack.c.bf16 %v2985_v13, %v8839_v2  ;;  %v8841_v23 = vmov %v8839_v2  ;;  %v6600_v25 = vpack.c.bf16 %v8845_v43, %v1699_v36  ;;  %v6603_v38 = vsub.f32 %v8847_v34, %v1699_v36  ;;  %v1571_v34 = vld [vmem:[#allocation6 + $0x3e0] sm:$0xff] }
 0x342   : > { %8838 = vst [vmem:[#allocation180_spill] sm:$0xff] %v6584_v60  ;;  %v6593_v49 = vsub.f32 %v6350_v58, %v8841_v23  ;;  %v8849_v2 = vmov %v8845_v43  ;;  %v2983_v58 = vand.u32 4294901760, %v1567_v30  ;;  %v2987_v23 = vand.u32 4294901760, %v1569_v21 }
 0x343   : > { %8840 = vst [vmem:[#allocation181_spill] sm:$0xff] %v6588_v26  ;;  %8846 = vst [vmem:[#allocation183_spill] sm:$0xff] %v6600_v25  ;;  %4924 = vmatprep.subr.bf16.mxu1 %v6588_v26  ;;  %v6610_v1 = vsub.f32 %v6365_v28, %v8849_v2  ;;  %v1705_v13 = vand.u32 4294901760, %v1508_v54  ;;  %4542 = vmatpush1.bf16.msra.mxu0 %v6600_v25  ;;  %v2989_v43 = vand.u32 4294901760, %v1572_v51  ;;  %v1707_v36 = vand.u32 4294901760, %v1507_v0  ;;  %v1573_v28 = vld [vmem:[#allocation6 + $0x3f0] sm:$0xff] }
 0x344   : > { %8842 = vst [vmem:[#allocation182_spill] sm:$0xff] %v6593_v49  ;;  %8848 = vst [vmem:[#allocation141_spill] sm:$0xff] %v6603_v38  ;;  %v6613_v59 = vpack.c.bf16 %v2987_v23, %v2983_v58  ;;  %v6615_v40 = vsub.f32 %v1567_v30, %v2983_v58  ;;  %v6617_v26 = vsub.f32 %v1569_v21, %v2987_v23  ;;  %v2991_v21 = vand.u32 4294901760, %v1571_v34  ;;  %v8861_v58 = vld [vmem:[#allocation13_spill] sm:$0xff]  ;;  %v8862_v23 = vld [vmem:[#allocation14_spill] sm:$0xff] }
 0x345   : > { %8850 = vst [vmem:[#allocation184_spill] sm:$0xff] %v6610_v1  ;;  %v6619_v8 = vsub.f32 %v1508_v54, %v1705_v13  ;;  %v6621_v2 = vpack.c.bf16 %v1709_v45, %v1705_v13  ;;  %v6625_v25 = vpack.c.bf16 %v2993_v56, %v2989_v43  ;;  %v6627_v61 = vsub.f32 %v1572_v51, %v2989_v43  ;;  %v8863_v45 = vld [vmem:[#allocation15_spill] sm:$0xff] }
 0x346   : > { %8851 = vst [vmem:[#allocation185_spill] sm:$0xff] %v6613_v59  ;;  %8852 = vst [vmem:[#allocation186_spill] sm:$0xff] %v6615_v40  ;;  %4926 = vmatpush1.bf16.msra.mxu1 %v6613_v59  ;;  %v6630_v5 = vsub.f32 %v1574_v10, %v2993_v56  ;;  %v6632_v30 = vsub.f32 %v1507_v0, %v1707_v36  ;;  %v2995_v54 = vand.u32 4294901760, %v1573_v28  ;;  %v8343_v22 = vand.u32 4294901760, %v8861_v58  ;;  %v8867_v0 = vld [vmem:[#allocation17_spill] sm:$0xff] }
 0x347   : > { %8853 = vst [vmem:[#allocation187_spill] sm:$0xff] %v6617_v26  ;;  %8854 = vst [vmem:[#allocation188_spill] sm:$0xff] %v6619_v8  ;;  %4544 = vmatprep.subr.bf16.mxu0 %v6621_v2  ;;  %4928 = vmatprep.subr.bf16.mxu1 %v6625_v25  ;;  %v8345_v13 = vand.u32 4294901760, %v8862_v23  ;;  %v6639_v43 = vpack.c.bf16 %v1711_v17, %v1707_v36  ;;  %v6641_v59 = vsub.f32 %v1509_v16, %v1711_v17 }
 0x348   : > { %8855 = vst [vmem:[#allocation189_spill] sm:$0xff] %v6621_v2  ;;  %8857 = vst [vmem:[#allocation191_spill] sm:$0xff] %v6625_v25  ;;  %v6643_v56 = vsub.f32 %v1571_v34, %v2991_v21  ;;  %v8353_v10 = vand.u32 4294901760, %v8867_v0  ;;  %v6646_v11 = vpack.c.bf16 %v2995_v54, %v2991_v21  ;;  %v6648_v2 = vsub.f32 %v1573_v28, %v2995_v54 }
 0x349   : > { %8858 = vst [vmem:[#allocation192_spill] sm:$0xff] %v6627_v61  ;;  %8859 = vst [vmem:[#allocation193_spill] sm:$0xff] %v6630_v5  ;;  %v1733_v25 = vsub.f32 %v8861_v58, %v8343_v22  ;;  %v1745_v51 = vsub.f32 %v8862_v23, %v8345_v13  ;;  %4546 = vmatpush1.bf16.msra.mxu0 %v6639_v43  ;;  %v8870_v17 = vand.u32 4294901760, %v8863_v45  ;;  %v8871_v13 = vld [vmem:[#allocation19_spill] sm:$0xff]  ;;  %v8872_v23 = vld [vmem:[#allocation20_spill] sm:$0xff] }
 0x34a   : > { %8860 = vst [vmem:[#allocation194_spill] sm:$0xff] %v6632_v30  ;;  %8864 = vst [vmem:[#allocation195_spill] sm:$0xff] %v6639_v43  ;;  %v3029_v36 = vsub.f32 %v8867_v0, %v8353_v10  ;;  %4930 = vmatpush1.bf16.msra.mxu1 %v6646_v11  ;;  %v8354_v43 = vand.u32 4294901760, %v8871_v13  ;;  %v8359_v3 = vand.u32 4294901760, %v8872_v23  ;;  %v8880_v0 = vld [vmem:[#allocation32_spill] sm:$0xff]  ;;  %v8901_v5 = vld [vmem:[#allocation46_spill] sm:$0xff] }
 0x34b   : > { %8865 = vst [vmem:[#allocation196_spill] sm:$0xff] %v6641_v59  ;;  %8866 = vst [vmem:[#allocation197_spill] sm:$0xff] %v6643_v56  ;;  %v3017_v16 = vsub.f32 %v8863_v45, %v8870_v17  ;;  %v1734_v34 = vand.u32 4294901760, %v1733_v25  ;;  %v1746_v28 = vand.u32 4294901760, %v1745_v51  ;;  %v8363_v17 = vand.u32 4294901760, %v8873_v63  ;;  %v8874_v45 = vld [vmem:[#allocation23_spill] sm:$0xff] }
 0x34c   : > { %8868 = vst [vmem:[#allocation198_spill] sm:$0xff] %v6646_v11  ;;  %8869 = vst [vmem:[#allocation199_spill] sm:$0xff] %v6648_v2  ;;  %v3030_v54 = vand.u32 4294901760, %v3029_v36  ;;  %v8367_v41 = vand.u32 4294901760, %v8874_v45  ;;  %v1739_v10 = vsub.f32 %v8871_v13, %v8354_v43  ;;  %v1751_v25 = vsub.f32 %v8872_v23, %v8359_v3  ;;  %v8875_v51 = vld [vmem:[#allocation24_spill] sm:$0xff]  ;;  %v8876_v36 = vld [vmem:[#allocation26_spill] sm:$0xff] }
 0x34d   : > { %v3018_v21 = vand.u32 4294901760, %v3017_v16  ;;  %v4547_v22 = vpack.c.bf16 %v1746_v28, %v1734_v34  ;;  %v8877_v28 = vld [vmem:[#allocation28_spill] sm:$0xff]  ;;  %v8879_v11 = vld [vmem:[#allocation30_spill] sm:$0xff]  ;;  %v8881_v23 = vld [vmem:[#allocation33_spill] sm:$0xff]  ;;  %v8887_v13 = vand.u32 4294901760, %v8875_v51  ;;  %v8888_v37 = vand.u32 4294901760, %v8876_v36 }
 0x34e   : > { %v1752_v16 = vand.u32 4294901760, %v1751_v25  ;;  %v8886_v2 = vld [vmem:[#allocation41_spill] sm:$0xff]  ;;  %v8889_v27 = vand.u32 4294901760, %v8877_v28  ;;  %v8893_v34 = vand.u32 4294901760, %v8881_v23  ;;  %v8900_v59 = vld [vmem:[#allocation44_spill] sm:$0xff] }
 0x34f   : > { %v4931_v58 = vpack.c.bf16 %v3030_v54, %v3018_v21  ;;  %4548 = vmatprep.subr.bf16.mxu0 %v4547_v22  ;;  %v3035_v22 = vsub.f32 %v8874_v45, %v8367_v41  ;;  %v8878_v54 = vld [vmem:[#allocation29_spill] sm:$0xff]  ;;  %v1740_v45 = vand.u32 4294901760, %v1739_v10  ;;  %v1757_v3 = vsub.f32 %v8875_v51, %v8887_v13 }
 0x350   : > { %v3041_v41 = vsub.f32 %v8877_v28, %v8889_v27  ;;  %v8890_v10 = vand.u32 4294901760, %v8878_v54  ;;  %v8891_v21 = vand.u32 4294901760, %v8879_v11 }
 0x351   : > { %4932 = vmatprep.subr.bf16.mxu1 %v4931_v58  ;;  %v3023_v58 = vsub.f32 %v8873_v63, %v8363_v17  ;;  %v8883_v63 = vld [vmem:[#allocation37_spill] sm:$0xff]  ;;  %v3036_v43 = vand.u32 4294901760, %v3035_v22  ;;  %v1769_v17 = vsub.f32 %v8876_v36, %v8888_v37  ;;  %v8892_v22 = vand.u32 4294901760, %v8880_v0 }
 0x352   : > { %v3053_v25 = vsub.f32 %v8878_v54, %v8890_v10  ;;  %v3047_v37 = vsub.f32 %v8881_v23, %v8893_v34  ;;  %v8894_v36 = vand.u32 4294901760, %v8882_v29  ;;  %v8895_v28 = vand.u32 4294901760, %v8883_v63  ;;  %v8899_v23 = vld [vmem:[#allocation43_spill] sm:$0xff] }
 0x353   : > { %v3024_v56 = vand.u32 4294901760, %v3023_v58  ;;  %v1763_v58 = vsub.f32 %v8879_v11, %v8891_v21  ;;  %v1775_v13 = vsub.f32 %v8880_v0, %v8892_v22  ;;  %v8896_v54 = vand.u32 4294901760, %v8884_v44 }
 0x354   : > { %v3059_v27 = vsub.f32 %v8882_v29, %v8894_v36  ;;  %v1781_v10 = vsub.f32 %v8883_v63, %v8895_v28  ;;  %v8897_v11 = vand.u32 4294901760, %v8885_v6  ;;  %v8898_v0 = vand.u32 4294901760, %v8886_v2  ;;  %v8902_v63 = vld [vmem:[#allocation47_spill] sm:$0xff] }
 0x355   : > { %v1793_v21 = vsub.f32 %v8884_v44, %v8896_v54  ;;  %v8393_v51 = vand.u32 4294901760, %v8899_v23  ;;  %v1758_v29 = vand.u32 4294901760, %v1757_v3  ;;  %v1770_v30 = vand.u32 4294901760, %v1769_v17 }
 0x356   : > { %v3065_v22 = vsub.f32 %v8885_v6, %v8897_v11  ;;  %v3077_v34 = vsub.f32 %v8886_v2, %v8898_v0  ;;  %v8392_v28 = vand.u32 4294901760, %v8901_v5  ;;  %v8395_v61 = vand.u32 4294901760, %v8902_v63 }
 0x357   : > { %v3042_v39 = vand.u32 4294901760, %v3041_v41  ;;  %v3054_v54 = vand.u32 4294901760, %v3053_v25  ;;  %v1764_v44 = vand.u32 4294901760, %v1763_v58  ;;  %v1776_v8 = vand.u32 4294901760, %v1775_v13  ;;  %v8904_v58 = vld [vmem:[#allocation49_spill] sm:$0xff] }
 0x358   : > { %v3048_v26 = vand.u32 4294901760, %v3047_v37  ;;  %v3060_v11 = vand.u32 4294901760, %v3059_v27  ;;  %v1782_v6 = vand.u32 4294901760, %v1781_v10  ;;  %v1794_v40 = vand.u32 4294901760, %v1793_v21  ;;  %v8905_v37 = vld [vmem:[#allocation50_spill] sm:$0xff] }
 0x359   : > { %v3066_v1 = vand.u32 4294901760, %v3065_v22  ;;  %v3078_v0 = vand.u32 4294901760, %v3077_v34  ;;  %v6735_v36 = vsub.f32 %v8899_v23, %v8393_v51  ;;  %v8903_v3 = vand.u32 4294901760, %v8900_v59  ;;  %v8912_v51 = vld [vmem:[#allocation52_spill] sm:$0xff] }
 0x35a   : > { %v6745_v41 = vsub.f32 %v8901_v5, %v8392_v28  ;;  %v6750_v25 = vsub.f32 %v8902_v63, %v8395_v61  ;;  %v8398_v27 = vand.u32 4294901760, %v8905_v37  ;;  %v6754_v10 = vpack.c.bf16 %v1752_v16, %v1740_v45  ;;  %v8913_v61 = vld [vmem:[#allocation53_spill] sm:$0xff]  ;;  %v8926_v23 = vld [vmem:[#allocation68_spill] sm:$0xff] }
 0x35b   : > { %v6740_v17 = vsub.f32 %v8900_v59, %v8903_v3  ;;  %v6756_v21 = vpack.c.bf16 %v3036_v43, %v3024_v56  ;;  %v6758_v22 = vpack.c.bf16 %v1770_v30, %v1758_v29  ;;  %v6760_v34 = vpack.c.bf16 %v3054_v54, %v3042_v39  ;;  %v8919_v56 = vld [vmem:[#allocation58_spill] sm:$0xff] }
 0x35c   : > { %8906 = vst [vmem:[#allocation200_spill] sm:$0xff] %v6754_v10  ;;  %v6762_v3 = vpack.c.bf16 %v1776_v8, %v1764_v44  ;;  %v6764_v28 = vpack.c.bf16 %v3060_v11, %v3048_v26  ;;  %v8403_v5 = vand.u32 4294901760, %v8912_v51  ;;  %v8405_v63 = vand.u32 4294901760, %v8913_v61  ;;  %v8943_v10 = vld [vmem:[#allocation75_spill] sm:$0xff] }
 0x35d   : > { %8907 = vst [vmem:[#allocation201_spill] sm:$0xff] %v6756_v21  ;;  %8908 = vst [vmem:[#allocation202_spill] sm:$0xff] %v6758_v22  ;;  %v6768_v59 = vpack.c.bf16 %v1794_v40, %v1782_v6  ;;  %v6770_v13 = vpack.c.bf16 %v3078_v0, %v3066_v1  ;;  %v1788_v45 = vand.u32 4294901760, %v6735_v36  ;;  %v1800_v43 = vand.u32 4294901760, %v6740_v17  ;;  %v8917_v6 = vld [vmem:[#allocation54_spill] sm:$0xff]  ;;  %v8918_v1 = vld [vmem:[#allocation56_spill] sm:$0xff] }
 0x35e   : > { %8909 = vst [vmem:[#allocation203_spill] sm:$0xff] %v6760_v34  ;;  %8910 = vst [vmem:[#allocation204_spill] sm:$0xff] %v6762_v3  ;;  %v3072_v29 = vand.u32 4294901760, %v6745_v41  ;;  %v3084_v39 = vand.u32 4294901760, %v6750_v25  ;;  %v8916_v44 = vand.u32 4294901760, %v8904_v58  ;;  %v1817_v26 = vsub.f32 %v8905_v37, %v8398_v27  ;;  %v8920_v36 = vld [vmem:[#allocation59_spill] sm:$0xff] }
 0x35f   : > { %8911 = vst [vmem:[#allocation205_spill] sm:$0xff] %v6764_v28  ;;  %8914 = vst [vmem:[#allocation206_spill] sm:$0xff] %v6768_v59  ;;  %v3089_v11 = vsub.f32 %v8912_v51, %v8403_v5  ;;  %v3101_v0 = vsub.f32 %v8913_v61, %v8405_v63  ;;  %v8921_v17 = vld [vmem:[#allocation61_spill] sm:$0xff]  ;;  %v8922_v25 = vld [vmem:[#allocation62_spill] sm:$0xff]  ;;  %v8929_v63 = vand.u32 4294901760, %v8917_v6  ;;  %v8931_v30 = vand.u32 4294901760, %v8919_v56 }
 0x360   : > { %8915 = vst [vmem:[#allocation207_spill] sm:$0xff] %v6770_v13  ;;  %v1805_v8 = vsub.f32 %v8904_v58, %v8916_v44  ;;  %v8923_v27 = vld [vmem:[#allocation63_spill] sm:$0xff]  ;;  %v8924_v37 = vld [vmem:[#allocation65_spill] sm:$0xff]  ;;  %v1818_v13 = vand.u32 4294901760, %v1817_v26  ;;  %v8927_v59 = vld [vmem:[#allocation70_spill] sm:$0xff]  ;;  %v8930_v44 = vand.u32 4294901760, %v8918_v1 }
 0x361   : > { %v8925_v58 = vld [vmem:[#allocation67_spill] sm:$0xff]  ;;  %v1811_v41 = vsub.f32 %v8917_v6, %v8929_v63  ;;  %v3095_v16 = vsub.f32 %v8919_v56, %v8931_v30  ;;  %v8932_v54 = vand.u32 4294901760, %v8920_v36  ;;  %v3090_v26 = vand.u32 4294901760, %v3089_v11  ;;  %v8942_v3 = vld [vmem:[#allocation74_spill] sm:$0xff] }
 0x362   : > { %v1806_v2 = vand.u32 4294901760, %v1805_v8  ;;  %v8928_v51 = vld [vmem:[#allocation71_spill] sm:$0xff]  ;;  %v1823_v40 = vsub.f32 %v8918_v1, %v8930_v44  ;;  %v3102_v5 = vand.u32 4294901760, %v3101_v0  ;;  %v8933_v28 = vand.u32 4294901760, %v8921_v17 }
 0x363   : > { %v3107_v8 = vsub.f32 %v8920_v36, %v8932_v54  ;;  %v8934_v63 = vand.u32 4294901760, %v8922_v25  ;;  %v8935_v44 = vand.u32 4294901760, %v8923_v27  ;;  %v8936_v30 = vand.u32 4294901760, %v8924_v37 }
 0x364   : > { %v1829_v61 = vsub.f32 %v8921_v17, %v8933_v28  ;;  %v8937_v54 = vand.u32 4294901760, %v8925_v58  ;;  %v8938_v0 = vand.u32 4294901760, %v8926_v23  ;;  %v8939_v17 = vand.u32 4294901760, %v8927_v59 }
 0x365   : > { %v1841_v6 = vsub.f32 %v8922_v25, %v8934_v63  ;;  %v3113_v1 = vsub.f32 %v8923_v27, %v8935_v44  ;;  %v3125_v56 = vsub.f32 %v8924_v37, %v8936_v30  ;;  %v8940_v25 = vand.u32 4294901760, %v8928_v51  ;;  %v8941_v27 = vld [vmem:[#allocation73_spill] sm:$0xff] }
 0x366   : > { %v1835_v11 = vsub.f32 %v8925_v58, %v8937_v54  ;;  %v1847_v28 = vsub.f32 %v8926_v23, %v8938_v0  ;;  %v3119_v63 = vsub.f32 %v8927_v59, %v8939_v17  ;;  %v8425_v36 = vand.u32 4294901760, %v8941_v27  ;;  %v8944_v23 = vld [vmem:[#allocation77_spill] sm:$0xff] }
 0x367   : > { %v3131_v44 = vsub.f32 %v8928_v51, %v8940_v25  ;;  %v1812_v37 = vand.u32 4294901760, %v1811_v41  ;;  %v1824_v34 = vand.u32 4294901760, %v1823_v40  ;;  %v3096_v22 = vand.u32 4294901760, %v3095_v16  ;;  %v8947_v41 = vld [vmem:[#allocation80_spill] sm:$0xff] }
 0x368   : > { %v3108_v54 = vand.u32 4294901760, %v3107_v8  ;;  %v1830_v58 = vand.u32 4294901760, %v1829_v61  ;;  %v1842_v21 = vand.u32 4294901760, %v1841_v6  ;;  %v8424_v0 = vand.u32 4294901760, %v8943_v10 }
 0x369   : > { %v8423_v38 = vand.u32 4294901760, %v8944_v23  ;;  %v3114_v50 = vand.u32 4294901760, %v3113_v1  ;;  %v3126_v17 = vand.u32 4294901760, %v3125_v56  ;;  %v1836_v59 = vand.u32 4294901760, %v1835_v11  ;;  %v8946_v1 = vld [vmem:[#allocation79_spill] sm:$0xff] }
 0x36a   : > { %v1848_v49 = vand.u32 4294901760, %v1847_v28  ;;  %v3120_v60 = vand.u32 4294901760, %v3119_v63  ;;  %v3132_v25 = vand.u32 4294901760, %v3131_v44  ;;  %v6843_v30 = vsub.f32 %v8941_v27, %v8425_v36  ;;  %v8961_v36 = vld [vmem:[#allocation92_spill] sm:$0xff]  ;;  %v8970_v27 = vld [vmem:[#allocation103_spill] sm:$0xff] }
 0x36b   : > { %v8945_v40 = vand.u32 4294901760, %v8942_v3  ;;  %v6850_v6 = vpack.c.bf16 %v1800_v43, %v1788_v45  ;;  %v6852_v16 = vpack.c.bf16 %v3084_v39, %v3072_v29  ;;  %v8422_v56 = vand.u32 4294901760, %v8946_v1 }
 0x36c   : > { %v8426_v8 = vand.u32 4294901760, %v8947_v41  ;;  %v6856_v11 = vpack.c.bf16 %v1818_v13, %v1806_v2  ;;  %v6858_v28 = vpack.c.bf16 %v3102_v5, %v3090_v26  ;;  %v6863_v63 = vsub.f32 %v8943_v10, %v8424_v0  ;;  %v8965_v10 = vld [vmem:[#allocation102_spill] sm:$0xff] }
 0x36d   : > { %v6848_v61 = vsub.f32 %v8942_v3, %v8945_v40  ;;  %v6868_v45 = vsub.f32 %v8944_v23, %v8423_v38  ;;  %v6870_v43 = vpack.c.bf16 %v1824_v34, %v1812_v37  ;;  %v6872_v29 = vpack.c.bf16 %v3108_v54, %v3096_v22  ;;  %v8960_v38 = vld [vmem:[#allocation91_spill] sm:$0xff]  ;;  %v8964_v23 = vld [vmem:[#allocation101_spill] sm:$0xff] }
 0x36e   : > { %v6874_v39 = vpack.c.bf16 %v1842_v21, %v1830_v58  ;;  %v6876_v2 = vpack.c.bf16 %v3126_v17, %v3114_v50  ;;  %v6878_v5 = vpack.c.bf16 %v1848_v49, %v1836_v59  ;;  %v6880_v13 = vpack.c.bf16 %v3132_v25, %v3120_v60  ;;  %v8954_v58 = vld [vmem:[#allocation82_spill] sm:$0xff]  ;;  %v8955_v50 = vld [vmem:[#allocation83_spill] sm:$0xff]  ;;  %v8956_v49 = vld [vmem:[#allocation85_spill] sm:$0xff] }
 0x36f   : > { %8948 = vst [vmem:[#allocation208_spill] sm:$0xff] %v6870_v43  ;;  %8949 = vst [vmem:[#allocation209_spill] sm:$0xff] %v6872_v29  ;;  %v1854_v26 = vand.u32 4294901760, %v6843_v30  ;;  %v1866_v44 = vand.u32 4294901760, %v6848_v61  ;;  %v1859_v40 = vsub.f32 %v8946_v1, %v8422_v56  ;;  %v1871_v37 = vsub.f32 %v8947_v41, %v8426_v8  ;;  %v8957_v30 = vld [vmem:[#allocation86_spill] sm:$0xff]  ;;  %v8958_v17 = vld [vmem:[#allocation87_spill] sm:$0xff] }
 0x370   : > { %8950 = vst [vmem:[#allocation210_spill] sm:$0xff] %v6874_v39  ;;  %8951 = vst [vmem:[#allocation211_spill] sm:$0xff] %v6876_v2  ;;  %v3138_v59 = vand.u32 4294901760, %v6863_v63  ;;  %v3150_v60 = vand.u32 4294901760, %v6868_v45  ;;  %v8959_v61 = vld [vmem:[#allocation89_spill] sm:$0xff]  ;;  %v8962_v41 = vld [vmem:[#allocation94_spill] sm:$0xff] }
 0x371   : > { %8952 = vst [vmem:[#allocation212_spill] sm:$0xff] %v6878_v5  ;;  %8953 = vst [vmem:[#allocation213_spill] sm:$0xff] %v6880_v13  ;;  %v8963_v1 = vld [vmem:[#allocation95_spill] sm:$0xff]  ;;  %v1860_v3 = vand.u32 4294901760, %v1859_v40  ;;  %v1872_v34 = vand.u32 4294901760, %v1871_v37  ;;  %v8966_v54 = vand.u32 4294901760, %v8954_v58 }
 0x372   : > { %v8967_v56 = vand.u32 4294901760, %v8955_v50  ;;  %v8968_v8 = vand.u32 4294901760, %v8956_v49  ;;  %v8969_v22 = vand.u32 4294901760, %v8957_v30  ;;  %v8971_v40 = vld [vmem:[#allocation104_spill] sm:$0xff]  ;;  %v8972_v51 = vand.u32 4294901760, %v8958_v17  ;;  %v8980_v5 = vld [vmem:[#allocation105_spill] sm:$0xff] }
 0x373   : > { %v3143_v25 = vsub.f32 %v8954_v58, %v8966_v54  ;;  %v8973_v58 = vand.u32 4294901760, %v8959_v61  ;;  %v8976_v45 = vand.u32 4294901760, %v8962_v41  ;;  %v8984_v2 = vand.u32 4294901760, %v8980_v5 }
 0x374   : > { %v3155_v0 = vsub.f32 %v8955_v50, %v8967_v56  ;;  %v1877_v21 = vsub.f32 %v8956_v49, %v8968_v8  ;;  %v1889_v63 = vsub.f32 %v8957_v30, %v8969_v22  ;;  %v3161_v54 = vsub.f32 %v8958_v17, %v8972_v51 }
 0x375   : > { %v3173_v56 = vsub.f32 %v8959_v61, %v8973_v58  ;;  %v8974_v50 = vand.u32 4294901760, %v8960_v38  ;;  %v8975_v49 = vand.u32 4294901760, %v8961_v36  ;;  %v3167_v37 = vsub.f32 %v8962_v41, %v8976_v45 }
 0x376   : > { %v8977_v30 = vand.u32 4294901760, %v8963_v1  ;;  %v8978_v17 = vand.u32 4294901760, %v8964_v23  ;;  %v8979_v61 = vand.u32 4294901760, %v8965_v10  ;;  %v3156_v13 = vand.u32 4294901760, %v3155_v0 }
 0x377   : > { %v1883_v8 = vsub.f32 %v8960_v38, %v8974_v50  ;;  %v1895_v22 = vsub.f32 %v8961_v36, %v8975_v49  ;;  %v3144_v38 = vand.u32 4294901760, %v3143_v25  ;;  %v8981_v36 = vld [vmem:[#allocation106_spill] sm:$0xff]  ;;  %v1878_v39 = vand.u32 4294901760, %v1877_v21 }
 0x378   : > { %v3179_v51 = vsub.f32 %v8963_v1, %v8977_v30  ;;  %v1901_v58 = vsub.f32 %v8964_v23, %v8978_v17  ;;  %v1913_v50 = vsub.f32 %v8965_v10, %v8979_v61  ;;  %v1890_v45 = vand.u32 4294901760, %v1889_v63 }
 0x379   : > { %v8982_v41 = vand.u32 4294901760, %v8970_v27  ;;  %v8983_v1 = vand.u32 4294901760, %v8971_v40  ;;  %v3162_v23 = vand.u32 4294901760, %v3161_v54  ;;  %v3174_v29 = vand.u32 4294901760, %v3173_v56  ;;  %v8987_v54 = vld [vmem:[#allocation108_spill] sm:$0xff] }
 0x37a   : > { %v1884_v43 = vand.u32 4294901760, %v1883_v8  ;;  %v1896_v61 = vand.u32 4294901760, %v1895_v22  ;;  %v3168_v25 = vand.u32 4294901760, %v3167_v37  ;;  %v3180_v0 = vand.u32 4294901760, %v3179_v51  ;;  %v8988_v51 = vld [vmem:[#allocation112_spill] sm:$0xff] }
 0x37b   : > { %v3185_v30 = vsub.f32 %v8970_v27, %v8982_v41  ;;  %v3197_v17 = vsub.f32 %v8971_v40, %v8983_v1  ;;  %v1902_v10 = vand.u32 4294901760, %v1901_v58  ;;  %v1914_v49 = vand.u32 4294901760, %v1913_v50  ;;  %v8986_v27 = vld [vmem:[#allocation107_spill] sm:$0xff] }
 0x37c   : > { %v6953_v21 = vsub.f32 %v8980_v5, %v8984_v2  ;;  %v8985_v63 = vand.u32 4294901760, %v8981_v36  ;;  %v8451_v56 = vand.u32 4294901760, %v8987_v54  ;;  %v6962_v8 = vpack.c.bf16 %v1866_v44, %v1854_v26 }
 0x37d   : > { %v3186_v37 = vand.u32 4294901760, %v3185_v30  ;;  %v3198_v22 = vand.u32 4294901760, %v3197_v17  ;;  %v8450_v58 = vand.u32 4294901760, %v8988_v51  ;;  %v6965_v50 = vpack.c.bf16 %v3150_v60, %v3138_v59  ;;  %v9002_v60 = vld [vmem:[#allocation120_spill] sm:$0xff] }
 0x37e   : > { %v6958_v41 = vsub.f32 %v8981_v36, %v8985_v63  ;;  %v6967_v40 = vpack.c.bf16 %v1872_v34, %v1860_v3  ;;  %v6969_v2 = vpack.c.bf16 %v3156_v13, %v3144_v38  ;;  %v6971_v5 = vpack.c.bf16 %v1890_v45, %v1878_v39  ;;  %v8997_v13 = vld [vmem:[#allocation114_spill] sm:$0xff]  ;;  %v8998_v34 = vld [vmem:[#allocation115_spill] sm:$0xff] }
 0x37f   : > { %v6973_v63 = vpack.c.bf16 %v3174_v29, %v3162_v23  ;;  %v6975_v36 = vpack.c.bf16 %v1896_v61, %v1884_v43  ;;  %v6977_v1 = vpack.c.bf16 %v3180_v0, %v3168_v25  ;;  %v6979_v26 = vpack.c.bf16 %v1914_v49, %v1902_v10  ;;  %v8996_v43 = vld [vmem:[#allocation113_spill] sm:$0xff]  ;;  %v8999_v61 = vld [vmem:[#allocation116_spill] sm:$0xff] }
 0x380   : > { %8989 = vst [vmem:[#allocation214_spill] sm:$0xff] %v6971_v5  ;;  %v8994_v59 = vand.u32 4294901760, %v8986_v27  ;;  %v6991_v38 = vsub.f32 %v8987_v54, %v8451_v56  ;;  %v6993_v23 = vpack.c.bf16 %v3198_v22, %v3186_v37  ;;  %v6998_v10 = vsub.f32 %v8988_v51, %v8450_v58  ;;  %v9000_v0 = vld [vmem:[#allocation117_spill] sm:$0xff]  ;;  %v9001_v58 = vld [vmem:[#allocation119_spill] sm:$0xff] }
 0x381   : > { %8990 = vst [vmem:[#allocation215_spill] sm:$0xff] %v6973_v63  ;;  %8991 = vst [vmem:[#allocation216_spill] sm:$0xff] %v6975_v36  ;;  %v8452_v39 = vand.u32 4294901760, %v6471_v55  ;;  %v8453_v45 = vand.u32 4294901760, %v6476_v31  ;;  %v8455_v17 = vand.u32 4294901760, %v6482_v14  ;;  %v8459_v25 = vand.u32 4294901760, %v6492_v7 }
 0x382   : > { %8992 = vst [vmem:[#allocation217_spill] sm:$0xff] %v6977_v1  ;;  %8993 = vst [vmem:[#allocation218_spill] sm:$0xff] %v6979_v26  ;;  %v6986_v3 = vsub.f32 %v8986_v27, %v8994_v59  ;;  %v8458_v59 = vand.u32 4294901760, %v6487_v57  ;;  %v8460_v49 = vand.u32 4294901760, %v6497_v42  ;;  %v8461_v56 = vand.u32 4294901760, %v6503_v48  ;;  %v5374_v26 = vld [vmem:[%s5717_s16 + $0x10] sm:$0xff] }
 0x383   : > { %8995 = vst [vmem:[#allocation219_spill] sm:$0xff] %v6993_v23  ;;  %v3281_v22 = vsub.f32 %v6471_v55, %v8452_v39  ;;  %v3293_v30 = vsub.f32 %v6476_v31, %v8453_v45  ;;  %v2003_v44 = vsub.f32 %v6482_v14, %v8455_v17  ;;  %v3287_v17 = vsub.f32 %v6492_v7, %v8459_v25  ;;  %v5376_v25 = vld [vmem:[%s5717_s16] sm:$0xff]  ;;  %v9116_v14 = vld [vmem:[#allocation182_spill] sm:$0xff] }
 0x384   : > { %v2015_v39 = vsub.f32 %v6487_v57, %v8458_v59  ;;  %v3299_v59 = vsub.f32 %v6497_v42, %v8460_v49  ;;  %v2021_v23 = vsub.f32 %v6503_v48, %v8461_v56 }
 0x385   : > { %v3282_v37 = vand.u32 4294901760, %v3281_v22  ;;  %v3294_v29 = vand.u32 4294901760, %v3293_v30  ;;  %v2004_v51 = vand.u32 4294901760, %v2003_v44  ;;  %v5375_v44 = vld [vmem:[%s5717_s16 + $0x18] sm:$0xff]  ;;  %v3288_v56 = vand.u32 4294901760, %v3287_v17  ;;  %v5378_v17 = vld [vmem:[%s5717_s16 + $0x20] sm:$0xff] }
 0x386   : > { %v2016_v27 = vand.u32 4294901760, %v2015_v39  ;;  %v5377_v39 = vld [vmem:[%s5717_s16 + $0x8] sm:$0xff]  ;;  %v3300_v45 = vand.u32 4294901760, %v3299_v59 }
 0x387   : > { %v7048_v49 = vpack.c.bf16 %v3294_v29, %v3282_v37  ;;  %v8464_v29 = vand.u32 4294901760, %v6513_v19  ;;  %v5379_v59 = vld [vmem:[%s5717_s16 + $0x28] sm:$0xff] }
 0x388   : > { %v7050_v5 = vpack.c.bf16 %v2016_v27, %v2004_v51  ;;  %v8465_v27 = vand.u32 4294901760, %v6518_v20  ;;  %v8472_v51 = vand.u32 4294901760, %v6523_v46 }
 0x389   : > { %9007 = vst [vmem:[#allocation224_spill] sm:$0xff] %v7048_v49 }
 0x38a   : > { %9008 = vst [vmem:[#allocation225_spill] sm:$0xff] %v7050_v5 }
 0x394   : > { %v1391_v22 = vpop.permute.xlu1 %1390  ;;  %v1387_v54 = vpop.permute.xlu0 %1386 }
 0x395   : > { %v7037_v30 = vmul.f32 %v5374_v26, %v1391_v22  ;;  %v7040_v1 = vmul.f32 %v5375_v44, %v1391_v22  ;;  %v7043_v36 = vmul.f32 %v5376_v25, %v1387_v54  ;;  %v7046_v63 = vmul.f32 %v5377_v39, %v1387_v54 }
 0x396   : > { %v2022_v44 = vand.u32 4294901760, %v2021_v23  ;;  %v9009_v25 = vand.u32 4294901760, %v6508_v12  ;;  %v7059_v39 = vpack.c.bf16 %v3300_v45, %v3288_v56  ;;  %v3305_v56 = vsub.f32 %v6513_v19, %v8464_v29 }
 0x397   : > { %9003 = vst [vmem:[#allocation220_spill] sm:$0xff] %v7037_v30  ;;  %9004 = vst [vmem:[#allocation221_spill] sm:$0xff] %v7040_v1  ;;  %v1408_v26 = vadd.f32 %v7037_v30, %v7043_v36  ;;  %v1417_v22 = vadd.f32 %v7040_v1, %v7046_v63  ;;  %v3317_v45 = vsub.f32 %v6518_v20, %v8465_v27 }
 0x398   : > { %9005 = vst [vmem:[#allocation222_spill] sm:$0xff] %v7043_v36  ;;  %9006 = vst [vmem:[#allocation223_spill] sm:$0xff] %v7046_v63  ;;  %v2033_v48 = vsub.f32 %v6508_v12, %v9009_v25  ;;  %v1395_v54 = vpop.permute.xlu1 %1394  ;;  %v2027_v25 = vsub.f32 %v6523_v46, %v8472_v51  ;;  %v3306_v27 = vand.u32 4294901760, %v3305_v56  ;;  %v5380_v12 = vld [vmem:[%s5717_s16 + $0x30] sm:$0xff] }
 0x399   : > { %9010 = vst [vmem:[#allocation226_spill] sm:$0xff] %v7059_v39  ;;  %v7065_v37 = vmul.f32 %v5378_v17, %v1395_v54  ;;  %v7068_v5 = vmul.f32 %v5379_v59, %v1395_v54  ;;  %v3318_v20 = vand.u32 4294901760, %v3317_v45  ;;  %v5381_v54 = vld [vmem:[%s5717_s16 + $0x38] sm:$0xff]  ;;  %s4308_s16 = sshll.u32 %s5587_s6, 10 }
 0x39a   : > { %v2034_v23 = vand.u32 4294901760, %v2033_v48  ;;  %v2028_v19 = vand.u32 4294901760, %v2027_v25  ;;  %s8071_s6 = scalar_lea.hbm %s8128_s7, %s4308_s16 }
 0x39b   : > { %9011 = vst [vmem:[#allocation227_spill] sm:$0xff] %v7065_v37  ;;  %9012 = vst [vmem:[#allocation228_spill] sm:$0xff] %v7068_v5  ;;  %v1409_v17 = vadd.f32 %v1408_v26, %v7065_v37  ;;  %v1418_v48 = vadd.f32 %v1417_v22, %v7068_v5  ;;  %v1429_v59 = vmax.f32 %v7043_v36, %v7065_v37  ;;  %v9016_v26 = vand.u32 4294901760, %v6528_v33 }
 0x39c   : > { %v1438_v29 = vmax.f32 %v7046_v63, %v7068_v5  ;;  %v1399_v49 = vpop.permute.xlu1 %1398  ;;  %v7087_v39 = vpack.c.bf16 %v2034_v23, %v2022_v44  ;;  %v9017_v37 = vand.u32 4294901760, %v6533_v35  ;;  %v7101_v63 = vpack.c.bf16 %v3318_v20, %v3306_v27 }
 0x39d   : > { %v7090_v51 = vmul.f32 %v5380_v12, %v1399_v49  ;;  %v7093_v46 = vmul.f32 %v5381_v54, %v1399_v49  ;;  %v2039_v22 = vsub.f32 %v6528_v33, %v9016_v26  ;;  %v8483_v44 = vand.u32 4294901760, %v6538_v18 }
 0x39e   : > { %9013 = vst [vmem:[#allocation229_spill] sm:$0xff] %v7087_v39  ;;  %v3311_v5 = vsub.f32 %v6533_v35, %v9017_v37  ;;  %9018 = vst [vmem:[#allocation232_spill] sm:$0xff] %v7101_v63  ;;  %v8486_v23 = vand.u32 4294901760, %v6543_v24 }
 0x39f   : > { %9014 = vst [vmem:[#allocation230_spill] sm:$0xff] %v7090_v51  ;;  %9015 = vst [vmem:[#allocation231_spill] sm:$0xff] %v7093_v46  ;;  %v1410_v56 = vadd.f32 %v1409_v17, %v7090_v51  ;;  %v1419_v49 = vadd.f32 %v1418_v48, %v7093_v46  ;;  %v1430_v45 = vmax.f32 %v7037_v30, %v7090_v51  ;;  %v2040_v54 = vand.u32 4294901760, %v2039_v22 }
 0x3a0   : > { %v1439_v25 = vmax.f32 %v7040_v1, %v7093_v46  ;;  %v3312_v37 = vand.u32 4294901760, %v3311_v5  ;;  %v3323_v20 = vsub.f32 %v6538_v18, %v8483_v44  ;;  %v2045_v27 = vsub.f32 %v6543_v24, %v8486_v23  ;;  %v9127_v24 = vld [vmem:[#allocation219_spill] sm:$0xff] }
 0x3a1   : > { %v1411_v26 = vrot.slane %v1410_v56, 4  ;;  %v1420_v17 = vrot.slane %v1419_v49, 4  ;;  %v1431_v12 = vmax.f32 %v1429_v59, %v1430_v45  ;;  %v7118_v36 = vpack.c.bf16 %v2040_v54, %v2028_v19 }
 0x3a2   : > { %v1440_v48 = vmax.f32 %v1438_v29, %v1439_v25  ;;  %v3324_v51 = vand.u32 4294901760, %v3323_v20  ;;  %v2046_v30 = vand.u32 4294901760, %v2045_v27  ;;  %v9020_v46 = vand.u32 4294901760, %v6548_v47 }
 0x3a3   : > { %9019 = vst [vmem:[#allocation233_spill] sm:$0xff] %v7118_v36  ;;  %v1412_v22 = vadd.f32 %v1411_v26, %v1410_v56  ;;  %v1421_v1 = vadd.f32 %v1420_v17, %v1419_v49  ;;  %v1432_v63 = vrot.slane %v1431_v12, 4  ;;  %v8489_v23 = vand.u32 4294901760, %v6553_v32 }
 0x3a4   : > { %v2057_v5 = vsub.f32 %v6548_v47, %v9020_v46  ;;  %v1441_v44 = vrot.slane %v1440_v48, 4  ;;  %v7123_v39 = vpack.c.bf16 %v3324_v51, %v3312_v37  ;;  %v8487_v59 = vand.u32 4294901760, %v6558_v53  ;;  %v9130_v47 = vld [vmem:[#allocation159_spill] sm:$0xff] }
 0x3a5   : > { %v1413_v29 = vrot.slane %v1412_v22, 2  ;;  %v1422_v19 = vrot.slane %v1421_v1, 2  ;;  %v1433_v45 = vmax.f32 %v1431_v12, %v1432_v63  ;;  %v3329_v46 = vsub.f32 %v6553_v32, %v8489_v23 }
 0x3a6   : > { %9021 = vst [vmem:[#allocation234_spill] sm:$0xff] %v7123_v39  ;;  %v2058_v18 = vand.u32 4294901760, %v2057_v5  ;;  %v1442_v25 = vmax.f32 %v1440_v48, %v1441_v44  ;;  %v3341_v51 = vsub.f32 %v6558_v53, %v8487_v59  ;;  %v8488_v56 = vand.u32 4294901760, %v6563_v9  ;;  %v9121_v53 = vld [vmem:[#allocation216_spill] sm:$0xff] }
 0x3a7   : > { %v1414_v49 = vadd.f32 %v1413_v29, %v1412_v22  ;;  %v1423_v37 = vadd.f32 %v1422_v19, %v1421_v1  ;;  %v1434_v20 = vrot.slane %v1433_v45, 2  ;;  %v3330_v26 = vand.u32 4294901760, %v3329_v46 }
 0x3a8   : > { %v7127_v54 = vpack.c.bf16 %v2058_v18, %v2046_v30  ;;  %v1443_v27 = vrot.slane %v1442_v25, 2  ;;  %v3342_v17 = vand.u32 4294901760, %v3341_v51  ;;  %v2051_v18 = vsub.f32 %v6563_v9, %v8488_v56 }
 0x3a9   : > { %v8490_v63 = vand.u32 4294901760, %v6568_v52  ;;  %v1415_v30 = vrot.slane %v1414_v49, 1  ;;  %v1424_v44 = vrot.slane %v1423_v37, 1  ;;  %v1435_v12 = vmax.f32 %v1433_v45, %v1434_v20 }
 0x3aa   : > { %9022 = vst [vmem:[#allocation235_spill] sm:$0xff] %v7127_v54  ;;  %v1444_v48 = vmax.f32 %v1442_v25, %v1443_v27  ;;  %v7140_v5 = vpack.c.bf16 %v3342_v17, %v3330_v26  ;;  %v2052_v59 = vand.u32 4294901760, %v2051_v18  ;;  %v8493_v22 = vand.u32 4294901760, %v6573_v62 }
 0x3ab   : > { %v2063_v1 = vsub.f32 %v6568_v52, %v8490_v63  ;;  %v1416_v29 = vadd.f32 %v1415_v30, %v1414_v49  ;;  %v1425_v19 = vadd.f32 %v1424_v44, %v1423_v37  ;;  %v1436_v46 = vrot.slane %v1435_v12, 1 }
 0x3ac   : > { %9023 = vst [vmem:[#allocation236_spill] sm:$0xff] %v7140_v5  ;;  %v1445_v51 = vrot.slane %v1444_v48, 1  ;;  %v3335_v23 = vsub.f32 %v6573_v62, %v8493_v22  ;;  %v8492_v45 = vand.u32 4294901760, %v6576_v4  ;;  %v8491_v25 = vand.u32 4294901760, %v6581_v15 }
 0x3ad   : > { %v2064_v56 = vand.u32 4294901760, %v2063_v1  ;;  %v1427_v20 = vmul.f32 0.03125, %v1416_v29  ;;  %v1437_v27 = vmax.f32 %v1435_v12, %v1436_v46  ;;  %v1428_v26 = vmul.f32 0.03125, %v1425_v19  ;;  %v9030_v29 = vld [vmem:[#allocation182_spill] sm:$0xff] }
 0x3ae   : > { %v1446_v17 = vmax.f32 %v1444_v48, %v1445_v51  ;;  %v3336_v63 = vand.u32 4294901760, %v3335_v23  ;;  %v3347_v49 = vsub.f32 %v6576_v4, %v8492_v45  ;;  %v2069_v37 = vsub.f32 %v6581_v15, %v8491_v25  ;;  %v9131_v4 = vld [vmem:[#allocation160_spill] sm:$0xff] }
 0x3af   : > { %v7151_v18 = vpack.c.bf16 %v2064_v56, %v2052_v59  ;;  %v7159_v30 = vand.u32 4294901760, %v1427_v20  ;;  %v7161_v44 = vand.u32 4294901760, %v1437_v27  ;;  %v7163_v1 = vand.u32 4294901760, %v1428_v26  ;;  %v9029_v56 = vld [vmem:[#allocation180_spill] sm:$0xff] }
 0x3b0   : > { %v7165_v12 = vand.u32 4294901760, %v1446_v17  ;;  %v3348_v48 = vand.u32 4294901760, %v3347_v49  ;;  %v2070_v59 = vand.u32 4294901760, %v2069_v37  ;;  %v8496_v23 = vand.u32 4294901760, %v9029_v56  ;;  %v9036_v37 = vld [vmem:[#allocation140_spill] sm:$0xff] }
 0x3b1   : > { %9024 = vst [vmem:[#allocation237_spill] sm:$0xff] %v7151_v18  ;;  %9025 = vst [vmem:[#allocation238_spill] sm:$0xff] %v7159_v30  ;;  %v8499_v19 = vand.u32 4294901760, %v9030_v29  ;;  %v7170_v46 = vsub.f32 %v1428_v26, %v7163_v1  ;;  %v7176_v25 = vsub.f32 %v1427_v20, %v7159_v30  ;;  %v7179_v45 = vsub.f32 %v1437_v27, %v7161_v44 }
 0x3b2   : > { %9026 = vst [vmem:[#allocation239_spill] sm:$0xff] %v7161_v44  ;;  %9027 = vst [vmem:[#allocation240_spill] sm:$0xff] %v7163_v1  ;;  %v7173_v51 = vsub.f32 %v1446_v17, %v7165_v12  ;;  %v7181_v22 = vpack.c.bf16 %v3348_v48, %v3336_v63  ;;  %v2081_v49 = vsub.f32 %v9029_v56, %v8496_v23  ;;  %v8500_v18 = vand.u32 4294901760, %v9036_v37  ;;  %v9037_v44 = vld [vmem:[#allocation141_spill] sm:$0xff] }
 0x3b3   : > { %9028 = vst [vmem:[#allocation241_spill] sm:$0xff] %v7165_v12  ;;  %9031 = vst [vmem:[#allocation242_spill] sm:$0xff] %v7170_v46  ;;  %v3353_v26 = vsub.f32 %v9030_v29, %v8499_v19  ;;  %v8501_v17 = vand.u32 4294901760, %v7170_v46  ;;  %v8509_v30 = vand.u32 4294901760, %v7176_v25  ;;  %v8567_v15 = vand.u32 4294901760, %v9130_v47 }
 0x3b4   : > { %9032 = vst [vmem:[#allocation243_spill] sm:$0xff] %v7173_v51  ;;  %9033 = vst [vmem:[#allocation244_spill] sm:$0xff] %v7176_v25  ;;  %v8505_v20 = vand.u32 4294901760, %v7173_v51  ;;  %v2082_v63 = vand.u32 4294901760, %v2081_v49  ;;  %v3365_v23 = vsub.f32 %v9036_v37, %v8500_v18  ;;  %v9038_v49 = vand.u32 4294901760, %v7179_v45 }
 0x3b5   : > { %9034 = vst [vmem:[#allocation245_spill] sm:$0xff] %v7179_v45  ;;  %9035 = vst [vmem:[#allocation246_spill] sm:$0xff] %v7181_v22  ;;  %v3354_v48 = vand.u32 4294901760, %v3353_v26  ;;  %v8512_v22 = vand.u32 4294901760, %v9037_v44  ;;  %v1716_v19 = vsub.f32 %v7170_v46, %v8501_v17  ;;  %v1722_v27 = vsub.f32 %v7176_v25, %v8509_v30  ;;  %v9040_v17 = vld [vmem:[#allocation184_spill] sm:$0xff] }
 0x3b6   : > { %v3000_v5 = vsub.f32 %v7173_v51, %v8505_v20  ;;  %v3006_v26 = vsub.f32 %v7179_v45, %v9038_v49  ;;  %v7210_v54 = vpack.c.bf16 %v2082_v63, %v2070_v59  ;;  %v3366_v18 = vand.u32 4294901760, %v3365_v23  ;;  %v9042_v59 = vld [vmem:[#allocation186_spill] sm:$0xff]  ;;  %v9043_v23 = vld [vmem:[#allocation187_spill] sm:$0xff]  ;;  %v9050_v45 = vld [vmem:[#allocation201_spill] sm:$0xff] }
 0x3b7   : > { %v2075_v39 = vsub.f32 %v9037_v44, %v8512_v22  ;;  %v8515_v46 = vand.u32 4294901760, %v9040_v17  ;;  %v1717_v36 = vand.u32 4294901760, %v1716_v19  ;;  %v1723_v20 = vand.u32 4294901760, %v1722_v27  ;;  %v9044_v22 = vld [vmem:[#allocation188_spill] sm:$0xff]  ;;  %v9126_v44 = vld [vmem:[#allocation218_spill] sm:$0xff] }
 0x3b8   : > { %9039 = vst [vmem:[#allocation247_spill] sm:$0xff] %v7210_v54  ;;  %v3001_v37 = vand.u32 4294901760, %v3000_v5  ;;  %v3007_v51 = vand.u32 4294901760, %v3006_v26  ;;  %v7216_v29 = vpack.c.bf16 %v3366_v18, %v3354_v48  ;;  %v8516_v63 = vand.u32 4294901760, %v9042_v59  ;;  %v9045_v54 = vld [vmem:[#allocation190_spill] sm:$0xff]  ;;  %v9046_v5 = vld [vmem:[#allocation192_spill] sm:$0xff] }
 0x3b9   : > { %v2076_v30 = vand.u32 4294901760, %v2075_v39  ;;  %v2087_v49 = vsub.f32 %v9040_v17, %v8515_v46  ;;  %1718 = vmatprep.mubr.f32.mxu0 %v1717_v36  ;;  %v9047_v48 = vld [vmem:[#allocation193_spill] sm:$0xff]  ;;  %v9048_v46 = vld [vmem:[#allocation194_spill] sm:$0xff]  ;;  %v9051_v25 = vand.u32 4294901760, %v9043_v23  ;;  %v9054_v27 = vld [vmem:[#allocation196_spill] sm:$0xff]  ;;  %v9056_v36 = vand.u32 4294901760, %v9046_v5 }
 0x3ba   : > { %9041 = vst [vmem:[#allocation248_spill] sm:$0xff] %v7216_v29  ;;  %3002 = vmatprep.mubr.f32.mxu1 %v3001_v37  ;;  %1724 = vmatmul.mubr.f32.vlgmr.msra.gmra.mrb[2].mxu0 %v1723_v20  ;;  %v3359_v39 = vsub.f32 %v9042_v59, %v8516_v63  ;;  %v9049_v37 = vld [vmem:[#allocation200_spill] sm:$0xff]  ;;  %v9052_v20 = vand.u32 4294901760, %v9044_v22  ;;  %v9057_v29 = vand.u32 4294901760, %v9047_v48 }
 0x3bb   : > { %3008 = vmatmul.mubr.f32.vlgmr.msra.gmra.mrb[4].mxu1 %v3007_v51  ;;  %v2088_v18 = vand.u32 4294901760, %v2087_v49  ;;  %4550 = vmatpush1.bf16.msra.mxu0 %v9049_v37  ;;  %v3371_v19 = vsub.f32 %v9043_v23, %v9051_v25  ;;  %v9053_v49 = vand.u32 4294901760, %v9045_v54  ;;  %v3377_v25 = vsub.f32 %v9046_v5, %v9056_v36  ;;  %v9062_v5 = vld [vmem:[#allocation197_spill] sm:$0xff] }
 0x3bc   : > { %4934 = vmatpush1.bf16.msra.mxu1 %v9050_v45  ;;  %v2093_v51 = vsub.f32 %v9044_v22, %v9052_v20  ;;  %2115 = vmatprep.mubr.f32.mxu0 %v7163_v1  ;;  %v3360_v45 = vand.u32 4294901760, %v3359_v39  ;;  %v3389_v20 = vsub.f32 %v9047_v48, %v9057_v29  ;;  %v9058_v22 = vld [vmem:[#allocation202_spill] sm:$0xff]  ;;  %v9063_v29 = vld [vmem:[#allocation204_spill] sm:$0xff] }
 0x3bd   : > { %v2105_v63 = vsub.f32 %v9045_v54, %v9053_v49  ;;  %3399 = vmatprep.mubr.f32.mxu1 %v7165_v12  ;;  %v7245_v37 = vpack.c.bf16 %v2088_v18, %v2076_v30  ;;  %4552 = vmatprep.subr.bf16.mxu0 %v9058_v22  ;;  %v9059_v49 = vld [vmem:[#allocation203_spill] sm:$0xff]  ;;  %v3372_v26 = vand.u32 4294901760, %v3371_v19  ;;  %v9060_v12 = vand.u32 4294901760, %v9048_v46  ;;  %v9064_v22 = vld [vmem:[#allocation205_spill] sm:$0xff] }
 0x3be   : > { %4936 = vmatprep.subr.bf16.mxu1 %v9059_v49  ;;  %v2094_v54 = vand.u32 4294901760, %v2093_v51  ;;  %v3378_v18 = vand.u32 4294901760, %v3377_v25  ;;  %v3390_v39 = vand.u32 4294901760, %v3389_v20  ;;  %v9065_v51 = vld [vmem:[#allocation199_spill] sm:$0xff]  ;;  %v9068_v20 = vand.u32 4294901760, %v8996_v43 }
 0x3bf   : > { %9055 = vst [vmem:[#allocation186_spill] sm:$0xff] %v7245_v37  ;;  %v2106_v1 = vand.u32 4294901760, %v2105_v63  ;;  %v2099_v30 = vsub.f32 %v9048_v46, %v9060_v12  ;;  %v9061_v37 = vand.u32 4294901760, %v9054_v27  ;;  %4554 = vmatpush1.bf16.msra.mxu0 %v9063_v29  ;;  %v7264_v49 = vpack.c.bf16 %v3372_v26, %v3360_v45  ;;  %v9066_v12 = vld [vmem:[#allocation206_spill] sm:$0xff]  ;;  %v9067_v25 = vld [vmem:[#allocation207_spill] sm:$0xff] }
 0x3c0   : > { %4938 = vmatpush1.bf16.msra.mxu1 %v9064_v22  ;;  %v8527_v48 = vand.u32 4294901760, %v9065_v51  ;;  %4556 = vmatprep.subr.bf16.mxu0 %v9066_v12  ;;  %v7274_v23 = vpack.c.bf16 %v3390_v39, %v3378_v18  ;;  %v9070_v22 = vand.u32 4294901760, %v9062_v5  ;;  %v9072_v45 = vand.u32 4294901760, %v8998_v34 }
 0x3c1   : > { %v2111_v36 = vsub.f32 %v9054_v27, %v9061_v37  ;;  %v7266_v19 = vpack.c.bf16 %v2106_v1, %v2094_v54  ;;  %v2100_v63 = vand.u32 4294901760, %v2099_v30  ;;  %4940 = vmatprep.subr.bf16.mxu1 %v9067_v25  ;;  %v1937_v37 = vsub.f32 %v8996_v43, %v9068_v20 }
 0x3c2   : > { %9069 = vst [vmem:[#allocation200_spill] sm:$0xff] %v7274_v23  ;;  %v3383_v26 = vsub.f32 %v9062_v5, %v9070_v22  ;;  %v9071_v54 = vand.u32 4294901760, %v8997_v13  ;;  %v3221_v30 = vsub.f32 %v8998_v34, %v9072_v45  ;;  %v9073_v12 = vand.u32 4294901760, %v8999_v61  ;;  %v9079_v34 = vld [vmem:[#allocation144_spill] sm:$0xff] }
 0x3c3   : > { %v2112_v29 = vand.u32 4294901760, %v2111_v36  ;;  %v3395_v18 = vsub.f32 %v9065_v51, %v8527_v48  ;;  %v9074_v39 = vand.u32 4294901760, %v9000_v0  ;;  %v9075_v20 = vand.u32 4294901760, %v9001_v58  ;;  %4558 = vmatpush1.bf16.msra.mxu0 %v6850_v6  ;;  %v9078_v48 = vld [vmem:[#allocation143_spill] sm:$0xff]  ;;  %v9080_v6 = vld [vmem:[#allocation145_spill] sm:$0xff]  ;;  %v9098_v23 = vld [vmem:[#allocation212_spill] sm:$0xff] }
 0x3c4   : > { %v3209_v1 = vsub.f32 %v8997_v13, %v9071_v54  ;;  %v1931_v25 = vsub.f32 %v8999_v61, %v9073_v12  ;;  %v3384_v13 = vand.u32 4294901760, %v3383_v26  ;;  %4942 = vmatpush1.bf16.msra.mxu1 %v6852_v16  ;;  %v9077_v45 = vand.u32 4294901760, %v9002_v60  ;;  %4560 = vmatprep.subr.bf16.mxu0 %v6856_v11  ;;  %v9081_v16 = vld [vmem:[#allocation146_spill] sm:$0xff] }
 0x3c5   : > { %v1943_v36 = vsub.f32 %v9000_v0, %v9074_v39  ;;  %v3215_v22 = vsub.f32 %v9001_v58, %v9075_v20  ;;  %v7297_v54 = vpack.c.bf16 %v2112_v29, %v2100_v63  ;;  %v3396_v39 = vand.u32 4294901760, %v3395_v18  ;;  %4944 = vmatprep.subr.bf16.mxu1 %v6858_v28  ;;  %v9084_v28 = vld [vmem:[#allocation209_spill] sm:$0xff] }
 0x3c6   : > { %v3227_v12 = vsub.f32 %v9002_v60, %v9077_v45  ;;  %v3192_v63 = vand.u32 4294901760, %v6986_v3  ;;  %v3204_v29 = vand.u32 4294901760, %v6991_v38  ;;  %v8537_v20 = vand.u32 4294901760, %v9081_v16 }
 0x3c7   : > { %9076 = vst [vmem:[#allocation201_spill] sm:$0xff] %v7297_v54  ;;  %v1926_v58 = vand.u32 4294901760, %v6998_v10  ;;  %v1938_v45 = vand.u32 4294901760, %v1937_v37  ;;  %v3210_v60 = vand.u32 4294901760, %v3209_v1  ;;  %v7313_v61 = vpack.c.bf16 %v3396_v39, %v3384_v13  ;;  %v9083_v54 = vld [vmem:[#allocation208_spill] sm:$0xff]  ;;  %v9087_v13 = vld [vmem:[#allocation147_spill] sm:$0xff] }
 0x3c8   : > { %v3222_v43 = vand.u32 4294901760, %v3221_v30  ;;  %v1932_v18 = vand.u32 4294901760, %v1931_v25  ;;  %v1944_v0 = vand.u32 4294901760, %v1943_v36  ;;  %v3216_v11 = vand.u32 4294901760, %v3215_v22  ;;  %4562 = vmatpush1.bf16.msra.mxu0 %v9083_v54  ;;  %4946 = vmatpush1.bf16.msra.mxu1 %v9084_v28  ;;  %v9088_v30 = vld [vmem:[#allocation210_spill] sm:$0xff]  ;;  %v9089_v25 = vld [vmem:[#allocation211_spill] sm:$0xff] }
 0x3c9   : > { %9082 = vst [vmem:[#allocation202_spill] sm:$0xff] %v7313_v61  ;;  %v3228_v3 = vand.u32 4294901760, %v3227_v12  ;;  %v9085_v38 = vand.u32 4294901760, %v9078_v48  ;;  %v9086_v10 = vand.u32 4294901760, %v9079_v34  ;;  %4564 = vmatprep.subr.bf16.mxu0 %v9088_v30  ;;  %4948 = vmatprep.subr.bf16.mxu1 %v9089_v25  ;;  %v9090_v36 = vand.u32 4294901760, %v9080_v6  ;;  %v9091_v12 = vld [vmem:[#allocation148_spill] sm:$0xff] }
 0x3ca   : > { %v7338_v54 = vsub.f32 %v9081_v16, %v8537_v20  ;;  %v9092_v28 = vld [vmem:[#allocation149_spill] sm:$0xff]  ;;  %v9094_v30 = vand.u32 4294901760, %v6958_v41  ;;  %v7348_v25 = vpack.c.bf16 %v3204_v29, %v3192_v63  ;;  %v7352_v61 = vpack.c.bf16 %v1938_v45, %v1926_v58  ;;  %v9097_v39 = vld [vmem:[#allocation152_spill] sm:$0xff] }
 0x3cb   : > { %v7320_v26 = vsub.f32 %v9078_v48, %v9085_v38  ;;  %v7325_v37 = vsub.f32 %v9079_v34, %v9086_v10  ;;  %v7333_v22 = vsub.f32 %v9080_v6, %v9090_v36  ;;  %v9093_v10 = vand.u32 4294901760, %v6953_v21  ;;  %v9095_v34 = vld [vmem:[#allocation150_spill] sm:$0xff]  ;;  %v9096_v6 = vld [vmem:[#allocation151_spill] sm:$0xff]  ;;  %v9099_v21 = vld [vmem:[#allocation213_spill] sm:$0xff] }
 0x3cc   : > { %v8540_v36 = vand.u32 4294901760, %v9095_v34  ;;  %v8539_v48 = vand.u32 4294901760, %v9096_v6  ;;  %v7354_v20 = vpack.c.bf16 %v3222_v43, %v3210_v60  ;;  %v7356_v16 = vpack.c.bf16 %v1944_v0, %v1932_v18  ;;  %4566 = vmatpush1.bf16.msra.mxu0 %v9098_v23  ;;  %4950 = vmatpush1.bf16.msra.mxu1 %v9099_v21  ;;  %v9103_v18 = vld [vmem:[#allocation153_spill] sm:$0xff]  ;;  %v9112_v21 = vld [vmem:[#allocation215_spill] sm:$0xff] }
 0x3cd   : > { %v7346_v1 = vpack.c.bf16 %v9094_v30, %v9093_v10  ;;  %v8541_v38 = vand.u32 4294901760, %v9097_v39  ;;  %v7361_v41 = vpack.c.bf16 %v3228_v3, %v3216_v11  ;;  %v1950_v63 = vand.u32 4294901760, %v7320_v26  ;;  %4568 = vmatprep.subr.bf16.mxu0 %v6962_v8  ;;  %4952 = vmatprep.subr.bf16.mxu1 %v6965_v50  ;;  %v9104_v3 = vld [vmem:[#allocation154_spill] sm:$0xff]  ;;  %v9109_v11 = vld [vmem:[#allocation167_spill] sm:$0xff]  ;;  %v9110_v30 = vld [vmem:[#allocation168_spill] sm:$0xff] }
 0x3ce   : > { %v1962_v29 = vand.u32 4294901760, %v7325_v37  ;;  %v9100_v10 = vand.u32 4294901760, %v9087_v13  ;;  %v3234_v43 = vand.u32 4294901760, %v7333_v22  ;;  %v3246_v60 = vand.u32 4294901760, %v7338_v54  ;;  %v9105_v54 = vld [vmem:[#allocation155_spill] sm:$0xff]  ;;  %v9120_v37 = vld [vmem:[#allocation190_spill] sm:$0xff] }
 0x3cf   : > { %v9101_v0 = vand.u32 4294901760, %v9091_v12  ;;  %v9102_v26 = vand.u32 4294901760, %v9092_v28  ;;  %v3251_v8 = vsub.f32 %v9095_v34, %v8540_v36  ;;  %v7390_v50 = vsub.f32 %v9096_v6, %v8539_v48  ;;  %v9107_v36 = vld [vmem:[#allocation165_spill] sm:$0xff]  ;;  %v9111_v6 = vld [vmem:[#allocation214_spill] sm:$0xff]  ;;  %v9118_v48 = vld [vmem:[#allocation187_spill] sm:$0xff] }
 0x3d0   : > { %v7368_v58 = vsub.f32 %v9087_v13, %v9100_v10  ;;  %v7397_v22 = vsub.f32 %v9097_v39, %v8541_v38  ;;  %4570 = vmatpush1.bf16.msra.mxu0 %v6967_v40  ;;  %4954 = vmatpush1.bf16.msra.mxu1 %v6969_v2  ;;  %v9108_v38 = vld [vmem:[#allocation166_spill] sm:$0xff]  ;;  %v9113_v10 = vld [vmem:[#allocation157_spill] sm:$0xff]  ;;  %v9117_v2 = vld [vmem:[#allocation140_spill] sm:$0xff]  ;;  %v9128_v32 = vand.u32 4294901760, %v9103_v18  ;;  %v4583_v40 = vpack.c.bf16 %v1962_v29, %v1950_v63 }
 0x3d1   : > { %v7377_v23 = vsub.f32 %v9091_v12, %v9101_v0  ;;  %v7382_v45 = vsub.f32 %v9092_v28, %v9102_v26  ;;  %v9106_v0 = vld [vmem:[#allocation156_spill] sm:$0xff]  ;;  %4572 = vmatprep.subr.bf16.mxu0 %v9111_v6  ;;  %4956 = vmatprep.subr.bf16.mxu1 %v9112_v21  ;;  %v9115_v26 = vld [vmem:[#allocation171_spill] sm:$0xff]  ;;  %v9122_v39 = vld [vmem:[#allocation217_spill] sm:$0xff]  ;;  %v8568_v21 = vand.u32 4294901760, %v9131_v4  ;;  %v4967_v46 = vpack.c.bf16 %v3246_v60, %v3234_v43 }
 0x3d2   : > { %v9123_v6 = vld [vmem:[#allocation158_spill] sm:$0xff]  ;;  %v1956_v57 = vand.u32 4294901760, %v7368_v58  ;;  %v3252_v5 = vand.u32 4294901760, %v3251_v8  ;;  %v1974_v51 = vand.u32 4294901760, %v7390_v50  ;;  %v1986_v63 = vand.u32 4294901760, %v7397_v22 }
 0x3d3   : > { %v9133_v29 = vand.u32 4294901760, %v9106_v0  ;;  %v9134_v43 = vand.u32 4294901760, %v9113_v10  ;;  %v1997_v8 = vsub.f32 %v9130_v47, %v8567_v15  ;;  %v2009_v50 = vsub.f32 %v9131_v4, %v8568_v21 }
 0x3d4   : > { %4574 = vmatpush1.bf16.msra.mxu0 %v9121_v53  ;;  %4958 = vmatpush1.bf16.msra.mxu1 %v9122_v39  ;;  %v3257_v53 = vsub.f32 %v9103_v18, %v9128_v32  ;;  %v9129_v39 = vand.u32 4294901760, %v9104_v3  ;;  %v9132_v32 = vand.u32 4294901760, %v9105_v54 }
 0x3d5   : > { %4576 = vmatprep.subr.bf16.mxu0 %v9126_v44  ;;  %4960 = vmatprep.subr.bf16.mxu1 %v9127_v24  ;;  %v1968_v44 = vand.u32 4294901760, %v7377_v23  ;;  %v3240_v24 = vand.u32 4294901760, %v7382_v45  ;;  %v1991_v58 = vsub.f32 %v9106_v0, %v9133_v29  ;;  %v3263_v60 = vsub.f32 %v9113_v10, %v9134_v43 }
 0x3d6   : > { %v3269_v62 = vsub.f32 %v9104_v3, %v9129_v39  ;;  %v1979_v27 = vsub.f32 %v9105_v54, %v9132_v32  ;;  %v9135_v23 = vand.u32 4294901760, %v9123_v6  ;;  %v1998_v43 = vand.u32 4294901760, %v1997_v8 }
 0x3d7   : > { %v4585_v22 = vpack.c.bf16 %v1968_v44, %v1956_v57  ;;  %v4969_v39 = vpack.c.bf16 %v3252_v5, %v3240_v24  ;;  %v3264_v29 = vand.u32 4294901760, %v3263_v60  ;;  %v9136_v5 = vld [vmem:[#allocation224_spill] sm:$0xff]  ;;  %v9143_v44 = vld [vmem:[#allocation235_spill] sm:$0xff]  ;;  %v9149_v60 = vld [vmem:[#allocation186_spill] sm:$0xff] }
 0x3d8   : > { %4578 = vmatpush1.bf16.msra.mxu0 %v7346_v1  ;;  %4962 = vmatpush1.bf16.msra.mxu1 %v7348_v25  ;;  %v3275_v45 = vsub.f32 %v9123_v6, %v9135_v23  ;;  %v3258_v1 = vand.u32 4294901760, %v3257_v53  ;;  %v3270_v25 = vand.u32 4294901760, %v3269_v62  ;;  %v1980_v32 = vand.u32 4294901760, %v1979_v27  ;;  %v9137_v27 = vld [vmem:[#allocation225_spill] sm:$0xff]  ;;  %v9144_v24 = vld [vmem:[#allocation236_spill] sm:$0xff] }
 0x3d9   : > { %4580 = vmatprep.subr.bf16.mxu0 %v7352_v61  ;;  %4964 = vmatprep.subr.bf16.mxu1 %v7354_v20  ;;  %v1992_v61 = vand.u32 4294901760, %v1991_v58  ;;  %v4587_v62 = vpack.c.bf16 %v1986_v63, %v1974_v51  ;;  %v2010_v23 = vand.u32 4294901760, %v2009_v50  ;;  %v9140_v51 = vld [vmem:[#allocation232_spill] sm:$0xff]  ;;  %v9147_v63 = vld [vmem:[#allocation247_spill] sm:$0xff] }
 0x3da   : > { %v3276_v20 = vand.u32 4294901760, %v3275_v45  ;;  %v4971_v53 = vpack.c.bf16 %v3270_v25, %v3258_v1  ;;  %v9148_v58 = vld [vmem:[#allocation248_spill] sm:$0xff]  ;;  %v9151_v1 = vld [vmem:[#allocation13_spill] sm:$0xff]  ;;  %v9152_v25 = vld [vmem:[#allocation14_spill] sm:$0xff] }
 0x3db   : > { %v4589_v15 = vpack.c.bf16 %v1992_v61, %v1980_v32  ;;  %v4591_v57 = vpack.c.bf16 %v2010_v23, %v1998_v43  ;;  %v9150_v45 = vld [vmem:[#allocation200_spill] sm:$0xff]  ;;  %v4611_v8 = vpack.c.bf16 %v9152_v25, %v9151_v1  ;;  %v9153_v50 = vld [vmem:[#allocation15_spill] sm:$0xff]  ;;  %v9155_v32 = vld [vmem:[#allocation201_spill] sm:$0xff] }
 0x3dc   : > { %4582 = vmatpush1.bf16.msra.mxu0 %v7356_v16  ;;  %4966 = vmatpush1.bf16.msra.mxu1 %v7361_v41  ;;  %v4973_v21 = vpack.c.bf16 %v3276_v20, %v3264_v29  ;;  %v9138_v16 = vld [vmem:[#allocation226_spill] sm:$0xff]  ;;  %v9141_v41 = vld [vmem:[#allocation233_spill] sm:$0xff]  ;;  %v9157_v29 = vld [vmem:[#allocation19_spill] sm:$0xff] }
 0x3dd   : > { %4584 = vmatprep.subr.bf16.mxu0 %v4583_v40  ;;  %4968 = vmatprep.subr.bf16.mxu1 %v4967_v46  ;;  %v9139_v46 = vld [vmem:[#allocation229_spill] sm:$0xff]  ;;  %v9142_v40 = vld [vmem:[#allocation234_spill] sm:$0xff]  ;;  %v9158_v20 = vld [vmem:[#allocation20_spill] sm:$0xff] }
 0x3de   : > { %v9156_v61 = vld [vmem:[#allocation202_spill] sm:$0xff]  ;;  %v9161_v43 = vld [vmem:[#allocation24_spill] sm:$0xff] }
 0x3df   : > { %v9162_v23 = vld [vmem:[#allocation26_spill] sm:$0xff] }
 0x3e0   : > { %4586 = vmatpush1.bf16.msra.mxu0 %v4585_v22  ;;  %4970 = vmatpush1.bf16.msra.mxu1 %v4969_v39  ;;  %v9154_v22 = vld [vmem:[#allocation17_spill] sm:$0xff] }
 0x3e1   : > { %4588 = vmatprep.subr.bf16.mxu0 %v4587_v62  ;;  %4972 = vmatprep.subr.bf16.mxu1 %v4971_v53  ;;  %v4995_v39 = vpack.c.bf16 %v9154_v22, %v9153_v50  ;;  %v4613_v62 = vpack.c.bf16 %v9158_v20, %v9157_v29  ;;  %v9160_v53 = vld [vmem:[#allocation23_spill] sm:$0xff] }
 0x3e4   : > { %4590 = vmatpush1.bf16.msra.mxu0 %v4589_v15  ;;  %4974 = vmatpush1.bf16.msra.mxu1 %v4973_v21  ;;  %v9145_v15 = vld [vmem:[#allocation237_spill] sm:$0xff]  ;;  %v9146_v21 = vld [vmem:[#allocation246_spill] sm:$0xff] }
 0x3e5   : > { %4592 = vmatprep.subr.bf16.mxu0 %v4591_v57  ;;  %4976 = vmatprep.subr.bf16.mxu1 %v9136_v5  ;;  %v4615_v57 = vpack.c.bf16 %v9162_v23, %v9161_v43  ;;  %v9163_v5 = vld [vmem:[#allocation28_spill] sm:$0xff] }
 0x3e8   : > { %4594 = vmatpush1.bf16.msra.mxu0 %v9137_v27  ;;  %4978 = vmatpush1.bf16.msra.mxu1 %v9138_v16  ;;  %v9164_v27 = vld [vmem:[#allocation29_spill] sm:$0xff] }
 0x3e9   : > { %4596 = vmatprep.subr.bf16.mxu0 %v9139_v46  ;;  %4980 = vmatprep.subr.bf16.mxu1 %v9140_v51  ;;  %v4999_v16 = vpack.c.bf16 %v9164_v27, %v9163_v5  ;;  %v9165_v46 = vld [vmem:[#allocation238_spill] sm:$0xff]  ;;  %v9166_v51 = vld [vmem:[#allocation239_spill] sm:$0xff]  ;;  %v9181_v27 = vld [vmem:[#allocation49_spill] sm:$0xff] }
 0x3ea   : > { %v9182_v5 = vld [vmem:[#allocation50_spill] sm:$0xff] }
 0x3ec   : > { %4598 = vmatpush1.bf16.msra.mxu0 %v9141_v41  ;;  %4982 = vmatpush1.bf16.msra.mxu1 %v9142_v40  ;;  %v9167_v41 = vld [vmem:[#allocation242_spill] sm:$0xff] }
 0x3ed   : > { %4600 = vmatprep.subr.bf16.mxu0 %v9143_v44  ;;  %4984 = vmatprep.subr.bf16.mxu1 %v9144_v24  ;;  %v9168_v40 = vld [vmem:[#allocation30_spill] sm:$0xff]  ;;  %v9169_v44 = vld [vmem:[#allocation32_spill] sm:$0xff] }
 0x3ee   : > { %v4617_v24 = vpack.c.bf16 %v9169_v44, %v9168_v40  ;;  %v9180_v44 = vld [vmem:[#allocation47_spill] sm:$0xff] }
 0x3f0   : > { %4602 = vmatpush1.bf16.msra.mxu0 %v9145_v15  ;;  %4986 = vmatpush1.bf16.msra.mxu1 %v9146_v21  ;;  %v9170_v15 = vld [vmem:[#allocation243_spill] sm:$0xff]  ;;  %v9171_v21 = vld [vmem:[#allocation33_spill] sm:$0xff] }
 0x3f1   : > { %4604 = vmatprep.subr.bf16.mxu0 %v9147_v63  ;;  %4988 = vmatprep.subr.bf16.mxu1 %v9148_v58  ;;  %v9172_v63 = vld [vmem:[#allocation35_spill] sm:$0xff] }
 0x3f2   : > { %v5001_v58 = vpack.c.bf16 %v9172_v63, %v9171_v21  ;;  %v4623_v63 = vpack.c.bf16 %v9182_v5, %v9181_v27  ;;  %v9183_v21 = vld [vmem:[#allocation52_spill] sm:$0xff] }
 0x3f3   : > { %v9194_v27 = vld [vmem:[#allocation68_spill] sm:$0xff] }
 0x3f4   : > { %4606 = vmatpush1.bf16.msra.mxu0 %v9149_v60  ;;  %4990 = vmatpush1.bf16.msra.mxu1 %v7264_v49  ;;  %v9159_v49 = vld [vmem:[#allocation22_spill] sm:$0xff]  ;;  %v9173_v60 = vld [vmem:[#allocation37_spill] sm:$0xff] }
 0x3f5   : > { %4608 = vmatprep.subr.bf16.mxu0 %v7266_v19  ;;  %4992 = vmatprep.subr.bf16.mxu1 %v9150_v45  ;;  %v4997_v19 = vpack.c.bf16 %v9160_v53, %v9159_v49  ;;  %v9174_v45 = vld [vmem:[#allocation38_spill] sm:$0xff] }
 0x3f8   : > { %4610 = vmatpush1.bf16.msra.mxu0 %v9155_v32  ;;  %4994 = vmatpush1.bf16.msra.mxu1 %v9156_v61  ;;  %v9176_v32 = vld [vmem:[#allocation41_spill] sm:$0xff] }
 0x3f9   : > { %4612 = vmatprep.subr.bf16.mxu0 %v4611_v8  ;;  %4996 = vmatprep.subr.bf16.mxu1 %v4995_v39  ;;  %v4619_v8 = vpack.c.bf16 %v9174_v45, %v9173_v60  ;;  %v9175_v39 = vld [vmem:[#allocation40_spill] sm:$0xff]  ;;  %v9184_v45 = vld [vmem:[#allocation53_spill] sm:$0xff] }
 0x3fa   : > { %v5003_v61 = vpack.c.bf16 %v9176_v32, %v9175_v39  ;;  %v9186_v60 = vld [vmem:[#allocation56_spill] sm:$0xff] }
 0x3fb   : > { %2117 = vmatmul.mubr.f32.vlgmr.msra.gmra.mrb[2].mxu0 %v9165_v46  ;;  %3401 = vmatmul.mubr.f32.vlgmr.msra.gmra.mrb[4].mxu1 %v9166_v51  ;;  %v9178_v51 = vld [vmem:[#allocation44_spill] sm:$0xff] }
 0x3fc   : > { %4614 = vmatpush1.bf16.msra.mxu0 %v4613_v62  ;;  %2317 = vmatprep.mubr.f32.mxu0 %v9167_v41  ;;  %v9177_v62 = vld [vmem:[#allocation43_spill] sm:$0xff] }
 0x3fd   : > { %4998 = vmatpush1.bf16.msra.mxu1 %v4997_v19  ;;  %3601 = vmatprep.mubr.f32.mxu1 %v9170_v15  ;;  %v4621_v46 = vpack.c.bf16 %v9178_v51, %v9177_v62  ;;  %v9179_v19 = vld [vmem:[#allocation46_spill] sm:$0xff]  ;;  %v9188_v51 = vld [vmem:[#allocation59_spill] sm:$0xff] }
 0x3fe   : > { %4616 = vmatprep.subr.bf16.mxu0 %v4615_v57  ;;  %5000 = vmatprep.subr.bf16.mxu1 %v4999_v16  ;;  %v5005_v40 = vpack.c.bf16 %v9180_v44, %v9179_v19  ;;  %v5007_v57 = vpack.c.bf16 %v9184_v45, %v9183_v21  ;;  %v9185_v16 = vld [vmem:[#allocation54_spill] sm:$0xff]  ;;  %v9191_v44 = vld [vmem:[#allocation63_spill] sm:$0xff]  ;;  %v9192_v19 = vld [vmem:[#allocation65_spill] sm:$0xff] }
 0x3ff   : > { %v4625_v32 = vpack.c.bf16 %v9186_v60, %v9185_v16  ;;  %v9190_v62 = vld [vmem:[#allocation62_spill] sm:$0xff]  ;;  %v5011_v5 = vpack.c.bf16 %v9192_v19, %v9191_v44  ;;  %v9196_v60 = vld [vmem:[#allocation71_spill] sm:$0xff] }
 0x400   : > { %4618 = vmatpush1.bf16.msra.mxu0 %v4617_v24  ;;  %v9187_v24 = vld [vmem:[#allocation58_spill] sm:$0xff] }
 0x401   : > { %5002 = vmatpush1.bf16.msra.mxu1 %v5001_v58  ;;  %4620 = vmatprep.subr.bf16.mxu0 %v4619_v8  ;;  %v5009_v58 = vpack.c.bf16 %v9188_v51, %v9187_v24  ;;  %v9189_v8 = vld [vmem:[#allocation61_spill] sm:$0xff]  ;;  %v9198_v16 = vld [vmem:[#allocation74_spill] sm:$0xff]  ;;  %v9199_v51 = vld [vmem:[#allocation75_spill] sm:$0xff] }
 0x402   : > { %5004 = vmatprep.subr.bf16.mxu1 %v5003_v61  ;;  %v4627_v39 = vpack.c.bf16 %v9190_v62, %v9189_v8  ;;  %v9193_v61 = vld [vmem:[#allocation67_spill] sm:$0xff]  ;;  %v9200_v24 = vld [vmem:[#allocation77_spill] sm:$0xff]  ;;  %v9202_v8 = vld [vmem:[#allocation80_spill] sm:$0xff] }
 0x403   : > { %v4629_v45 = vpack.c.bf16 %v9194_v27, %v9193_v61  ;;  %v5015_v62 = vpack.c.bf16 %v9200_v24, %v9199_v51  ;;  %v9204_v27 = vld [vmem:[#allocation83_spill] sm:$0xff]  ;;  %v9206_v61 = vld [vmem:[#allocation86_spill] sm:$0xff] }
 0x404   : > { %4622 = vmatpush1.bf16.msra.mxu0 %v4621_v46  ;;  %v9195_v46 = vld [vmem:[#allocation70_spill] sm:$0xff] }
 0x405   : > { %5006 = vmatpush1.bf16.msra.mxu1 %v5005_v40  ;;  %4624 = vmatprep.subr.bf16.mxu0 %v4623_v63  ;;  %v5013_v40 = vpack.c.bf16 %v9196_v60, %v9195_v46  ;;  %v9197_v63 = vld [vmem:[#allocation73_spill] sm:$0xff]  ;;  %v9207_v60 = vld [vmem:[#allocation87_spill] sm:$0xff] }
 0x406   : > { %5008 = vmatprep.subr.bf16.mxu1 %v5007_v57  ;;  %v4631_v21 = vpack.c.bf16 %v9198_v16, %v9197_v63  ;;  %v9201_v57 = vld [vmem:[#allocation79_spill] sm:$0xff]  ;;  %v9208_v46 = vld [vmem:[#allocation89_spill] sm:$0xff]  ;;  %v9210_v63 = vld [vmem:[#allocation92_spill] sm:$0xff] }
 0x407   : > { %v4633_v19 = vpack.c.bf16 %v9202_v8, %v9201_v57  ;;  %v5019_v16 = vpack.c.bf16 %v9208_v46, %v9207_v60  ;;  %v9212_v8 = vld [vmem:[#allocation95_spill] sm:$0xff]  ;;  %v9214_v57 = vld [vmem:[#allocation102_spill] sm:$0xff] }
 0x408   : > { %4626 = vmatpush1.bf16.msra.mxu0 %v4625_v32  ;;  %v9203_v32 = vld [vmem:[#allocation82_spill] sm:$0xff] }
 0x409   : > { %5010 = vmatpush1.bf16.msra.mxu1 %v5009_v58  ;;  %4628 = vmatprep.subr.bf16.mxu0 %v4627_v39  ;;  %v5017_v58 = vpack.c.bf16 %v9204_v27, %v9203_v32  ;;  %v9205_v39 = vld [vmem:[#allocation85_spill] sm:$0xff]  ;;  %v9215_v27 = vld [vmem:[#allocation103_spill] sm:$0xff]  ;;  %v9216_v32 = vld [vmem:[#allocation104_spill] sm:$0xff] }
 0x40a   : > { %5012 = vmatprep.subr.bf16.mxu1 %v5011_v5  ;;  %v4635_v44 = vpack.c.bf16 %v9206_v61, %v9205_v39  ;;  %v9209_v5 = vld [vmem:[#allocation91_spill] sm:$0xff]  ;;  %v5023_v61 = vpack.c.bf16 %v9216_v32, %v9215_v27  ;;  %v9218_v39 = vld [vmem:[#allocation106_spill] sm:$0xff] }
 0x40b   : > { %v4637_v24 = vpack.c.bf16 %v9210_v63, %v9209_v5  ;;  %v9220_v63 = vld [vmem:[#allocation108_spill] sm:$0xff]  ;;  %v9222_v5 = vld [vmem:[#allocation113_spill] sm:$0xff] }
 0x40c   : > { %4630 = vmatpush1.bf16.msra.mxu0 %v4629_v45  ;;  %v9211_v45 = vld [vmem:[#allocation94_spill] sm:$0xff] }
 0x40d   : > { %5014 = vmatpush1.bf16.msra.mxu1 %v5013_v40  ;;  %4632 = vmatprep.subr.bf16.mxu0 %v4631_v21  ;;  %v5021_v40 = vpack.c.bf16 %v9212_v8, %v9211_v45  ;;  %v9213_v21 = vld [vmem:[#allocation101_spill] sm:$0xff]  ;;  %v9223_v8 = vld [vmem:[#allocation114_spill] sm:$0xff]  ;;  %v9224_v45 = vld [vmem:[#allocation115_spill] sm:$0xff] }
 0x40e   : > { %5016 = vmatprep.subr.bf16.mxu1 %v5015_v62  ;;  %v4639_v51 = vpack.c.bf16 %v9214_v57, %v9213_v21  ;;  %v9217_v62 = vld [vmem:[#allocation105_spill] sm:$0xff]  ;;  %v5027_v57 = vpack.c.bf16 %v9224_v45, %v9223_v8 }
 0x40f   : > { %v4641_v46 = vpack.c.bf16 %v9218_v39, %v9217_v62  ;;  %v9226_v21 = vld [vmem:[#allocation117_spill] sm:$0xff]  ;;  %v9228_v39 = vld [vmem:[#allocation120_spill] sm:$0xff] }
 0x410   : > { %4634 = vmatpush1.bf16.msra.mxu0 %v4633_v19  ;;  %v9219_v19 = vld [vmem:[#allocation107_spill] sm:$0xff]  ;;  %v9230_v62 = vld [vmem:[#allocation144_spill] sm:$0xff] }
 0x411   : > { %5018 = vmatpush1.bf16.msra.mxu1 %v5017_v58  ;;  %4636 = vmatprep.subr.bf16.mxu0 %v4635_v44  ;;  %v5025_v58 = vpack.c.bf16 %v9220_v63, %v9219_v19  ;;  %v9221_v44 = vld [vmem:[#allocation112_spill] sm:$0xff]  ;;  %v9231_v63 = vld [vmem:[#allocation145_spill] sm:$0xff]  ;;  %v9232_v19 = vld [vmem:[#allocation146_spill] sm:$0xff] }
 0x412   : > { %5020 = vmatprep.subr.bf16.mxu1 %v5019_v16  ;;  %v4643_v60 = vpack.c.bf16 %v9222_v5, %v9221_v44  ;;  %v9225_v16 = vld [vmem:[#allocation116_spill] sm:$0xff]  ;;  %v5031_v5 = vpack.c.bf16 %v9232_v19, %v9231_v63 }
 0x413   : > { %v4645_v32 = vpack.c.bf16 %v9226_v21, %v9225_v16 }
 0x414   : > { %4638 = vmatpush1.bf16.msra.mxu0 %v4637_v24  ;;  %v9227_v24 = vld [vmem:[#allocation119_spill] sm:$0xff] }
 0x415   : > { %5022 = vmatpush1.bf16.msra.mxu1 %v5021_v40  ;;  %4640 = vmatprep.subr.bf16.mxu0 %v4639_v51  ;;  %v5029_v40 = vpack.c.bf16 %v9228_v39, %v9227_v24  ;;  %v9229_v51 = vld [vmem:[#allocation143_spill] sm:$0xff] }
 0x416   : > { %5024 = vmatprep.subr.bf16.mxu1 %v5023_v61  ;;  %v4647_v27 = vpack.c.bf16 %v9230_v62, %v9229_v51  ;;  %v4649_v61 = vpack.c.bf16 %v9091_v12, %v9087_v13  ;;  %v5035_v62 = vpack.c.bf16 %v9104_v3, %v9103_v18 }
 0x418   : > { %4642 = vmatpush1.bf16.msra.mxu0 %v4641_v46  ;;  %v5033_v46 = vpack.c.bf16 %v9095_v34, %v9092_v28 }
 0x419   : > { %5026 = vmatpush1.bf16.msra.mxu1 %v5025_v58  ;;  %4644 = vmatprep.subr.bf16.mxu0 %v4643_v60  ;;  %v9233_v60 = vld [vmem:[#allocation151_spill] sm:$0xff]  ;;  %v9234_v58 = vld [vmem:[#allocation152_spill] sm:$0xff] }
 0x41a   : > { %5028 = vmatprep.subr.bf16.mxu1 %v5027_v57  ;;  %v4651_v21 = vpack.c.bf16 %v9234_v58, %v9233_v60  ;;  %v4653_v57 = vpack.c.bf16 %v9106_v0, %v9105_v54 }
 0x41c   : > { %4646 = vmatpush1.bf16.msra.mxu0 %v4645_v32  ;;  %v5037_v32 = vpack.c.bf16 %v9123_v6, %v9113_v10 }
 0x41d   : > { %5030 = vmatpush1.bf16.msra.mxu1 %v5029_v40  ;;  %4648 = vmatprep.subr.bf16.mxu0 %v4647_v27  ;;  %v4655_v27 = vpack.c.bf16 %v9131_v4, %v9130_v47  ;;  %v9236_v40 = vld [vmem:[#allocation162_spill] sm:$0xff] }
 0x41e   : > { %5032 = vmatprep.subr.bf16.mxu1 %v5031_v5  ;;  %v9235_v5 = vpack.c.bf16 %v6476_v31, %v6471_v55 }
 0x420   : > { %4650 = vmatpush1.bf16.msra.mxu0 %v4649_v61  ;;  %v9237_v61 = vld [vmem:[#allocation161_spill] sm:$0xff] }
 0x421   : > { %5034 = vmatpush1.bf16.msra.mxu1 %v5033_v46  ;;  %4652 = vmatprep.subr.bf16.mxu0 %v4651_v21  ;;  %v9238_v3 = vpack.c.bf16 %v9236_v40, %v9237_v61  ;;  %v9239_v21 = vpack.c.bf16 %v6497_v42, %v6492_v7  ;;  %v9240_v46 = vpack.c.bf16 %v9108_v38, %v9107_v36  ;;  %v9249_v7 = vld [vmem:[#allocation174_spill] sm:$0xff] }
 0x422   : > { %5036 = vmatprep.subr.bf16.mxu1 %v5035_v62  ;;  %v9241_v62 = vpack.c.bf16 %v9110_v30, %v9109_v11  ;;  %v9253_v30 = vld [vmem:[#allocation176_spill] sm:$0xff] }
 0x424   : > { %4654 = vmatpush1.bf16.msra.mxu0 %v4653_v57  ;;  %v9242_v57 = vld [vmem:[#allocation169_spill] sm:$0xff] }
 0x425   : > { %5038 = vmatpush1.bf16.msra.mxu1 %v5037_v32  ;;  %4656 = vmatprep.subr.bf16.mxu0 %v4655_v27  ;;  %v9243_v32 = vpack.c.bf16 %v6528_v33, %v9242_v57  ;;  %v9244_v27 = vpack.c.bf16 %v9115_v26, %v6533_v35 }
 0x426   : > { %5040 = vmatprep.subr.bf16.mxu1 %v9235_v5  ;;  %v9246_v5 = vld [vmem:[#allocation172_spill] sm:$0xff] }
 0x428   : > { %4658 = vmatpush1.bf16.msra.mxu0 %v9238_v3  ;;  %v9245_v3 = vld [vmem:[#allocation173_spill] sm:$0xff] }
 0x429   : > { %5042 = vmatpush1.bf16.msra.mxu1 %v9239_v21  ;;  %4660 = vmatprep.subr.bf16.mxu0 %v9240_v46  ;;  %v9247_v42 = vpack.c.bf16 %v9245_v3, %v9246_v5  ;;  %v9248_v21 = vld [vmem:[#allocation175_spill] sm:$0xff]  ;;  %v9251_v46 = vpack.c.bf16 %v6568_v52, %v6563_v9 }
 0x42a   : > { %5044 = vmatprep.subr.bf16.mxu1 %v9241_v62  ;;  %v9250_v38 = vpack.c.bf16 %v9248_v21, %v9249_v7  ;;  %v9252_v62 = vld [vmem:[#allocation177_spill] sm:$0xff] }
 0x42b   : > { %v9254_v33 = vpack.c.bf16 %v9252_v62, %v9253_v30  ;;  %v9264_v30 = vld [vmem:[#allocation192_spill] sm:$0xff] }
 0x42c   : > { %4662 = vmatpush1.bf16.msra.mxu0 %v9243_v32  ;;  %v9255_v32 = vld [vmem:[#allocation179_spill] sm:$0xff] }
 0x42d   : > { %5046 = vmatpush1.bf16.msra.mxu1 %v9244_v27  ;;  %4664 = vmatprep.subr.bf16.mxu0 %v9247_v42  ;;  %v9256_v26 = vpack.c.bf16 %v9029_v56, %v9255_v32  ;;  %v9257_v27 = vpack.c.bf16 %v9117_v2, %v9116_v14  ;;  %v9258_v42 = vld [vmem:[#allocation141_spill] sm:$0xff]  ;;  %v9267_v32 = vld [vmem:[#allocation194_spill] sm:$0xff] }
 0x42e   : > { %5048 = vmatprep.subr.bf16.mxu1 %v9250_v38  ;;  %v9259_v21 = vpack.c.bf16 %v9040_v17, %v9258_v42  ;;  %v9260_v38 = vpack.c.bf16 %v9118_v48, %v9042_v59  ;;  %v9270_v14 = vld [vmem:[#allocation197_spill] sm:$0xff]  ;;  %v9273_v48 = vld [vmem:[#allocation16_spill] sm:$0xff] }
 0x430   : > { %4666 = vmatpush1.bf16.msra.mxu0 %v9251_v46  ;;  %v9261_v46 = vld [vmem:[#allocation188_spill] sm:$0xff] }
 0x431   : > { %5050 = vmatpush1.bf16.msra.mxu1 %v9254_v33  ;;  %4668 = vmatprep.subr.bf16.mxu0 %v9256_v26  ;;  %v9262_v62 = vpack.c.bf16 %v9120_v37, %v9261_v46  ;;  %v9263_v33 = vld [vmem:[#allocation193_spill] sm:$0xff]  ;;  %v9266_v26 = vld [vmem:[#allocation196_spill] sm:$0xff] }
 0x432   : > { %5052 = vmatprep.subr.bf16.mxu1 %v9257_v27  ;;  %v9265_v56 = vpack.c.bf16 %v9263_v33, %v9264_v30  ;;  %v9268_v2 = vpack.c.bf16 %v9266_v26, %v9267_v32  ;;  %v9269_v27 = vld [vmem:[#allocation199_spill] sm:$0xff]  ;;  %v9275_v37 = vld [vmem:[#allocation245_spill] sm:$0xff] }
 0x433   : > { %v9271_v17 = vpack.c.bf16 %v9269_v27, %v9270_v14  ;;  %v9278_v33 = vld [vmem:[#allocation21_spill] sm:$0xff]  ;;  %v9284_v14 = vld [vmem:[#allocation36_spill] sm:$0xff]  ;;  %v9285_v26 = vld [vmem:[#allocation39_spill] sm:$0xff] }
 0x434   : > { %4670 = vmatpush1.bf16.msra.mxu0 %v9259_v21  ;;  %v9272_v21 = vld [vmem:[#allocation12_spill] sm:$0xff]  ;;  %v9280_v27 = vld [vmem:[#allocation25_spill] sm:$0xff] }
 0x435   : > { %5054 = vmatpush1.bf16.msra.mxu1 %v9260_v38  ;;  %4672 = vmatprep.subr.bf16.mxu0 %v9262_v62  ;;  %v9274_v38 = vld [vmem:[#allocation244_spill] sm:$0xff]  ;;  %v9276_v62 = vld [vmem:[#allocation18_spill] sm:$0xff] }
 0x436   : > { %5056 = vmatprep.subr.bf16.mxu1 %v9265_v56  ;;  %v9277_v56 = vand.u32 4294901760, %v9167_v41  ;;  %v9287_v41 = vld [vmem:[#allocation45_spill] sm:$0xff] }
 0x438   : > { %4674 = vmatpush1.bf16.msra.mxu0 %v9268_v2  ;;  %v9279_v2 = vand.u32 4294901760, %v9170_v15  ;;  %v9289_v15 = vld [vmem:[#allocation51_spill] sm:$0xff] }
 0x439   : > { %5058 = vmatpush1.bf16.msra.mxu1 %v9271_v17  ;;  %4676 = vmatprep.subr.bf16.mxu0 %v9272_v21  ;;  %v9281_v17 = vld [vmem:[#allocation27_spill] sm:$0xff] }
 0x43a   : > { %5060 = vmatprep.subr.bf16.mxu1 %v9273_v48  ;;  %v9282_v21 = vld [vmem:[#allocation31_spill] sm:$0xff]  ;;  %v9283_v48 = vld [vmem:[#allocation34_spill] sm:$0xff] }
 0x43b   : > { %2320 = vmatmul.mubr.f32.vlgmr.msra.gmra.mrb[2].mxu0 %v9274_v38 }
 0x43c   : > { %3604 = vmatmul.mubr.f32.vlgmr.msra.gmra.mrb[4].mxu1 %v9275_v37  ;;  %4678 = vmatpush1.bf16.msra.mxu0 %v9276_v62  ;;  %v9286_v62 = vld [vmem:[#allocation42_spill] sm:$0xff] }
 0x43d   : > { %2457 = vmatprep.mubr.f32.mxu0 %v9277_v56  ;;  %5062 = vmatpush1.bf16.msra.mxu1 %v9278_v33  ;;  %v9288_v56 = vld [vmem:[#allocation48_spill] sm:$0xff]  ;;  %v9342_v33 = vld [vmem:[#allocation195_spill] sm:$0xff] }
 0x43e   : > { %3741 = vmatprep.mubr.f32.mxu1 %v9279_v2  ;;  %4680 = vmatprep.subr.bf16.mxu0 %v9280_v27  ;;  %v9290_v2 = vld [vmem:[#allocation55_spill] sm:$0xff]  ;;  %v9291_v27 = vld [vmem:[#allocation57_spill] sm:$0xff] }
 0x43f   : > { %5064 = vmatprep.subr.bf16.mxu1 %v9281_v17  ;;  %v9292_v17 = vld [vmem:[#allocation60_spill] sm:$0xff] }
 0x440   : > { %4682 = vmatpush1.bf16.msra.mxu0 %v9282_v21  ;;  %v9293_v21 = vld [vmem:[#allocation64_spill] sm:$0xff] }
 0x441   : > { %5066 = vmatpush1.bf16.msra.mxu1 %v9283_v48  ;;  %4684 = vmatprep.subr.bf16.mxu0 %v9284_v14  ;;  %v9294_v48 = vld [vmem:[#allocation66_spill] sm:$0xff]  ;;  %v9295_v14 = vld [vmem:[#allocation69_spill] sm:$0xff] }
 0x442   : > { %5068 = vmatprep.subr.bf16.mxu1 %v9285_v26  ;;  %v9296_v26 = vld [vmem:[#allocation72_spill] sm:$0xff] }
 0x444   : > { %4686 = vmatpush1.bf16.msra.mxu0 %v9286_v62  ;;  %v9297_v62 = vld [vmem:[#allocation76_spill] sm:$0xff] }
 0x445   : > { %5070 = vmatpush1.bf16.msra.mxu1 %v9287_v41  ;;  %4688 = vmatprep.subr.bf16.mxu0 %v9288_v56  ;;  %v9298_v41 = vld [vmem:[#allocation78_spill] sm:$0xff]  ;;  %v9299_v56 = vld [vmem:[#allocation81_spill] sm:$0xff] }
 0x446   : > { %5072 = vmatprep.subr.bf16.mxu1 %v9289_v15  ;;  %v9300_v15 = vld [vmem:[#allocation84_spill] sm:$0xff] }
 0x448   : > { %4690 = vmatpush1.bf16.msra.mxu0 %v9290_v2  ;;  %v9301_v2 = vld [vmem:[#allocation88_spill] sm:$0xff] }
 0x449   : > { %5074 = vmatpush1.bf16.msra.mxu1 %v9291_v27  ;;  %4692 = vmatprep.subr.bf16.mxu0 %v9292_v17  ;;  %v9302_v27 = vld [vmem:[#allocation90_spill] sm:$0xff]  ;;  %v9303_v17 = vld [vmem:[#allocation93_spill] sm:$0xff] }
 0x44a   : > { %5076 = vmatprep.subr.bf16.mxu1 %v9293_v21  ;;  %v9304_v21 = vld [vmem:[#allocation96_spill] sm:$0xff] }
 0x44c   : > { %4694 = vmatpush1.bf16.msra.mxu0 %v9294_v48  ;;  %v9305_v48 = vld [vmem:[#allocation98_spill] sm:$0xff] }
 0x44d   : > { %5078 = vmatpush1.bf16.msra.mxu1 %v9295_v14  ;;  %4696 = vmatprep.subr.bf16.mxu0 %v9296_v26  ;;  %v9306_v14 = vld [vmem:[#allocation99_spill] sm:$0xff]  ;;  %v9307_v26 = vld [vmem:[#allocation100_spill] sm:$0xff] }
 0x44e   : > { %5080 = vmatprep.subr.bf16.mxu1 %v9297_v62  ;;  %v9308_v62 = vld [vmem:[#allocation109_spill] sm:$0xff] }
 0x450   : > { %4698 = vmatpush1.bf16.msra.mxu0 %v9298_v41  ;;  %v9309_v41 = vld [vmem:[#allocation110_spill] sm:$0xff] }
 0x451   : > { %5082 = vmatpush1.bf16.msra.mxu1 %v9299_v56  ;;  %4700 = vmatprep.subr.bf16.mxu0 %v9300_v15  ;;  %v9310_v56 = vld [vmem:[#allocation111_spill] sm:$0xff]  ;;  %v9311_v15 = vld [vmem:[#allocation118_spill] sm:$0xff] }
 0x452   : > { %5084 = vmatprep.subr.bf16.mxu1 %v9301_v2  ;;  %v9312_v2 = vld [vmem:[#allocation121_spill] sm:$0xff] }
 0x454   : > { %4702 = vmatpush1.bf16.msra.mxu0 %v9302_v27  ;;  %v9313_v27 = vld [vmem:[#allocation122_spill] sm:$0xff] }
 0x455   : > { %5086 = vmatpush1.bf16.msra.mxu1 %v9303_v17  ;;  %4704 = vmatprep.subr.bf16.mxu0 %v9304_v21  ;;  %v9314_v17 = vld [vmem:[#allocation123_spill] sm:$0xff]  ;;  %v9315_v21 = vld [vmem:[#allocation124_spill] sm:$0xff] }
 0x456   : > { %5088 = vmatprep.subr.bf16.mxu1 %v9305_v48  ;;  %v9316_v48 = vld [vmem:[#allocation125_spill] sm:$0xff] }
 0x458   : > { %4706 = vmatpush1.bf16.msra.mxu0 %v9306_v14  ;;  %v9317_v14 = vld [vmem:[#allocation126_spill] sm:$0xff] }
 0x459   : > { %5090 = vmatpush1.bf16.msra.mxu1 %v9307_v26  ;;  %4708 = vmatprep.subr.bf16.mxu0 %v9308_v62  ;;  %v9318_v26 = vld [vmem:[#allocation127_spill] sm:$0xff]  ;;  %v9319_v62 = vld [vmem:[#allocation128_spill] sm:$0xff] }
 0x45a   : > { %5092 = vmatprep.subr.bf16.mxu1 %v9309_v41  ;;  %v9320_v41 = vld [vmem:[#allocation129_spill] sm:$0xff] }
 0x45c   : > { %4710 = vmatpush1.bf16.msra.mxu0 %v9310_v56  ;;  %v9321_v56 = vld [vmem:[#allocation130_spill] sm:$0xff] }
 0x45d   : > { %5094 = vmatpush1.bf16.msra.mxu1 %v9311_v15  ;;  %4712 = vmatprep.subr.bf16.mxu0 %v9312_v2  ;;  %v9322_v15 = vld [vmem:[#allocation131_spill] sm:$0xff]  ;;  %v9323_v2 = vld [vmem:[#allocation132_spill] sm:$0xff] }
 0x45e   : > { %5096 = vmatprep.subr.bf16.mxu1 %v9313_v27  ;;  %v9324_v27 = vld [vmem:[#allocation133_spill] sm:$0xff] }
 0x460   : > { %4714 = vmatpush1.bf16.msra.mxu0 %v9314_v17  ;;  %v9325_v17 = vld [vmem:[#allocation134_spill] sm:$0xff] }
 0x461   : > { %5098 = vmatpush1.bf16.msra.mxu1 %v9315_v21  ;;  %4716 = vmatprep.subr.bf16.mxu0 %v9316_v48  ;;  %v9326_v21 = vld [vmem:[#allocation135_spill] sm:$0xff]  ;;  %v9327_v48 = vld [vmem:[#allocation136_spill] sm:$0xff] }
 0x462   : > { %5100 = vmatprep.subr.bf16.mxu1 %v9317_v14  ;;  %v9328_v14 = vld [vmem:[#allocation137_spill] sm:$0xff] }
 0x464   : > { %4718 = vmatpush1.bf16.msra.mxu0 %v9318_v26  ;;  %v9329_v26 = vld [vmem:[#allocation138_spill] sm:$0xff] }
 0x465   : > { %5102 = vmatpush1.bf16.msra.mxu1 %v9319_v62  ;;  %4720 = vmatprep.subr.bf16.mxu0 %v9320_v41  ;;  %v9330_v62 = vld [vmem:[#allocation139_spill] sm:$0xff]  ;;  %v9331_v41 = vld [vmem:[#allocation142_spill] sm:$0xff] }
 0x466   : > { %5104 = vmatprep.subr.bf16.mxu1 %v9321_v56  ;;  %v9332_v56 = vld [vmem:[#allocation178_spill] sm:$0xff] }
 0x468   : > { %4722 = vmatpush1.bf16.msra.mxu0 %v9322_v15  ;;  %v9333_v15 = vld [vmem:[#allocation181_spill] sm:$0xff] }
 0x469   : > { %5106 = vmatpush1.bf16.msra.mxu1 %v9323_v2  ;;  %4724 = vmatprep.subr.bf16.mxu0 %v9324_v27  ;;  %v9334_v2 = vld [vmem:[#allocation183_spill] sm:$0xff]  ;;  %v9335_v27 = vld [vmem:[#allocation185_spill] sm:$0xff] }
 0x46a   : > { %5108 = vmatprep.subr.bf16.mxu1 %v9325_v17  ;;  %v9336_v17 = vld [vmem:[#allocation189_spill] sm:$0xff] }
 0x46c   : > { %4726 = vmatpush1.bf16.msra.mxu0 %v9326_v21 }
 0x46d   : > { %5110 = vmatpush1.bf16.msra.mxu1 %v9327_v48  ;;  %4728 = vmatprep.subr.bf16.mxu0 %v9328_v14  ;;  %v9337_v48 = vand.u32 4294901760, %v9151_v1  ;;  %v9338_v14 = vand.u32 4294901760, %v9152_v25  ;;  %v9346_v1 = vand.u32 4294901760, %v9159_v49  ;;  %v9348_v25 = vand.u32 4294901760, %v9161_v43  ;;  %v9356_v49 = vld [vmem:[#allocation30_spill] sm:$0xff] }
 0x46e   : > { %5112 = vmatprep.subr.bf16.mxu1 %v9329_v26  ;;  %v9339_v26 = vld [vmem:[#allocation191_spill] sm:$0xff] }
 0x46f   : > { %v4739_v21 = vpack.c.bf16 %v9338_v14, %v9337_v48  ;;  %v9347_v14 = vand.u32 4294901760, %v9160_v53  ;;  %v9357_v53 = vand.u32 4294901760, %v9356_v49  ;;  %v9370_v49 = vld [vmem:[#allocation40_spill] sm:$0xff] }
 0x470   : > { %4730 = vmatpush1.bf16.msra.mxu0 %v9330_v62  ;;  %v9340_v62 = vand.u32 4294901760, %v9153_v50  ;;  %v9349_v50 = vand.u32 4294901760, %v9162_v23  ;;  %v9361_v23 = vld [vmem:[#allocation33_spill] sm:$0xff] }
 0x471   : > { %5114 = vmatpush1.bf16.msra.mxu1 %v9331_v41  ;;  %4732 = vmatprep.subr.bf16.mxu0 %v9332_v56  ;;  %v9341_v41 = vand.u32 4294901760, %v9154_v22  ;;  %v5125_v48 = vpack.c.bf16 %v9347_v14, %v9346_v1  ;;  %v9360_v14 = vld [vmem:[#allocation240_spill] sm:$0xff] }
 0x472   : > { %5116 = vmatprep.subr.bf16.mxu1 %v9333_v15  ;;  %v4743_v22 = vpack.c.bf16 %v9349_v50, %v9348_v25  ;;  %v9363_v25 = vld [vmem:[#allocation35_spill] sm:$0xff] }
 0x473   : > { %v5123_v56 = vpack.c.bf16 %v9341_v41, %v9340_v62  ;;  %v9350_v62 = vand.u32 4294901760, %v9274_v38  ;;  %v9362_v38 = vand.u32 4294901760, %v9361_v23  ;;  %v9364_v50 = vand.u32 4294901760, %v9363_v25  ;;  %v9374_v23 = vld [vmem:[#allocation43_spill] sm:$0xff]  ;;  %v9376_v25 = vld [vmem:[#allocation44_spill] sm:$0xff] }
 0x474   : > { %4734 = vmatpush1.bf16.msra.mxu0 %v9334_v2  ;;  %v9343_v2 = vand.u32 4294901760, %v9157_v29  ;;  %v9351_v29 = vld [vmem:[#allocation28_spill] sm:$0xff] }
 0x475   : > { %5118 = vmatpush1.bf16.msra.mxu1 %v9335_v27  ;;  %4736 = vmatprep.subr.bf16.mxu0 %v9336_v17  ;;  %v9344_v27 = vand.u32 4294901760, %v9158_v20  ;;  %v9345_v17 = vld [vmem:[#allocation198_spill] sm:$0xff]  ;;  %v9352_v20 = vand.u32 4294901760, %v9351_v29  ;;  %v9365_v29 = vld [vmem:[#allocation37_spill] sm:$0xff] }
 0x476   : > { %5120 = vmatprep.subr.bf16.mxu1 %v9339_v26 }
 0x477   : > { %v4741_v15 = vpack.c.bf16 %v9344_v27, %v9343_v2  ;;  %v9353_v27 = vld [vmem:[#allocation29_spill] sm:$0xff] }
 0x478   : > { %4738 = vmatpush1.bf16.msra.mxu0 %v9342_v33  ;;  %v9354_v41 = vand.u32 4294901760, %v9353_v27  ;;  %v9366_v27 = vand.u32 4294901760, %v9365_v29  ;;  %v9382_v33 = vld [vmem:[#allocation49_spill] sm:$0xff] }
 0x479   : > { %5122 = vmatpush1.bf16.msra.mxu1 %v9345_v17  ;;  %4740 = vmatprep.subr.bf16.mxu0 %v4739_v21  ;;  %v9355_v21 = vand.u32 4294901760, %v9275_v37 }
 0x47a   : > { %5124 = vmatprep.subr.bf16.mxu1 %v5123_v56  ;;  %v5127_v2 = vpack.c.bf16 %v9354_v41, %v9352_v20  ;;  %v9358_v56 = vld [vmem:[#allocation32_spill] sm:$0xff]  ;;  %v9367_v20 = vld [vmem:[#allocation38_spill] sm:$0xff] }
 0x47b   : > { %2461 = vmatmul.mubr.f32.vlgmr.msra.gmra.mrb[2].mxu0 %v9350_v62  ;;  %v9359_v1 = vand.u32 4294901760, %v9358_v56  ;;  %v5129_v62 = vpack.c.bf16 %v9364_v50, %v9362_v38  ;;  %v9368_v41 = vand.u32 4294901760, %v9367_v20  ;;  %v9371_v56 = vand.u32 4294901760, %v9370_v49 }
 0x47c   : > { %3745 = vmatmul.mubr.f32.vlgmr.msra.gmra.mrb[4].mxu1 %v9355_v21  ;;  %4742 = vmatpush1.bf16.msra.mxu0 %v4741_v15  ;;  %v1575_v21 = vld [vmem:[#allocation2] sm:$0x1]  ;;  %v9369_v15 = vld [vmem:[#allocation241_spill] sm:$0xff]  ;;  %v9375_v38 = vand.u32 4294901760, %v9374_v23  ;;  %v9377_v50 = vand.u32 4294901760, %v9376_v25 }
 0x47d   : > { %v4745_v43 = vpack.c.bf16 %v9359_v1, %v9357_v53  ;;  %2724 = vmatprep.mubr.f32.mxu0 %v9360_v14  ;;  %5126 = vmatpush1.bf16.msra.mxu1 %v5125_v48  ;;  %v4747_v37 = vpack.c.bf16 %v9368_v41, %v9366_v27  ;;  %v9372_v53 = vld [vmem:[#allocation41_spill] sm:$0xff]  ;;  %v5519_v48 = vmov 0   ;;  %v9378_v27 = vld [vmem:[#allocation46_spill] sm:$0xff] }
 0x47e   : > { %4008 = vmatprep.mubr.f32.mxu1 %v9369_v15  ;;  %4744 = vmatprep.subr.bf16.mxu0 %v4743_v22  ;;  %v9373_v1 = vand.u32 4294901760, %v9372_v53  ;;  %v4749_v29 = vpack.c.bf16 %v9377_v50, %v9375_v38  ;;  %v9379_v20 = vand.u32 4294901760, %v9378_v27  ;;  %v9380_v22 = vld [vmem:[#allocation47_spill] sm:$0xff]  ;;  %v9383_v53 = vand.u32 4294901760, %v9382_v33  ;;  %v9388_v23 = vld [vmem:[#allocation53_spill] sm:$0xff]  ;;  %v9394_v27 = vld [vmem:[#allocation58_spill] sm:$0xff] }
 0x47f   : > { %5128 = vmatprep.subr.bf16.mxu1 %v5127_v2  ;;  %5361 = vset.pattern.permute.xlu0 %v5519_v48  ;;  %v9381_v41 = vand.u32 4294901760, %v9380_v22  ;;  %v9389_v26 = vand.u32 4294901760, %v9388_v23  ;;  %v9396_v33 = vld [vmem:[#allocation59_spill] sm:$0xff] }
 0x480   : > { %v5131_v17 = vpack.c.bf16 %v9373_v1, %v9371_v56  ;;  %4746 = vmatpush1.bf16.msra.mxu0 %v4745_v43  ;;  %1578 = vperm.xlu0 %5361, %v1575_v21   ;;  %v9384_v56 = vld [vmem:[#allocation50_spill] sm:$0xff]  ;;  %v9386_v43 = vld [vmem:[#allocation52_spill] sm:$0xff]  ;;  %v9397_v22 = vand.u32 4294901760, %v9396_v33  ;;  %v9412_v33 = vld [vmem:[#allocation71_spill] sm:$0xff] }
 0x481   : > { %5130 = vmatpush1.bf16.msra.mxu1 %v5129_v62  ;;  %4748 = vmatprep.subr.bf16.mxu0 %v4747_v37  ;;  %v5133_v49 = vpack.c.bf16 %v9381_v41, %v9379_v20  ;;  %v9385_v2 = vand.u32 4294901760, %v9384_v56  ;;  %v9387_v48 = vand.u32 4294901760, %v9386_v43  ;;  %v9390_v21 = vld [vmem:[#allocation54_spill] sm:$0xff]  ;;  %v9392_v37 = vld [vmem:[#allocation56_spill] sm:$0xff]  ;;  %v9395_v20 = vand.u32 4294901760, %v9394_v27 }
 0x482   : > { %5132 = vmatprep.subr.bf16.mxu1 %v5131_v17  ;;  %v9391_v62 = vand.u32 4294901760, %v9390_v21  ;;  %v9393_v38 = vand.u32 4294901760, %v9392_v37  ;;  %v9400_v56 = vld [vmem:[#allocation62_spill] sm:$0xff] }
 0x483   : > { %v4751_v1 = vpack.c.bf16 %v9385_v2, %v9383_v53  ;;  %v5135_v25 = vpack.c.bf16 %v9389_v26, %v9387_v48  ;;  %v5137_v41 = vpack.c.bf16 %v9397_v22, %v9395_v20  ;;  %v9398_v53 = vld [vmem:[#allocation61_spill] sm:$0xff]  ;;  %v9401_v2 = vand.u32 4294901760, %v9400_v56  ;;  %v9402_v26 = vld [vmem:[#allocation63_spill] sm:$0xff]  ;;  %v9410_v27 = vld [vmem:[#allocation70_spill] sm:$0xff] }
 0x484   : > { %4750 = vmatpush1.bf16.msra.mxu0 %v4749_v29  ;;  %v4753_v50 = vpack.c.bf16 %v9393_v38, %v9391_v62  ;;  %v9399_v17 = vand.u32 4294901760, %v9398_v53  ;;  %v9403_v29 = vand.u32 4294901760, %v9402_v26  ;;  %v9404_v48 = vld [vmem:[#allocation65_spill] sm:$0xff]  ;;  %v9406_v62 = vld [vmem:[#allocation67_spill] sm:$0xff]  ;;  %v9411_v20 = vand.u32 4294901760, %v9410_v27  ;;  %v9416_v56 = vld [vmem:[#allocation74_spill] sm:$0xff] }
 0x485   : > { %5134 = vmatpush1.bf16.msra.mxu1 %v5133_v49  ;;  %4752 = vmatprep.subr.bf16.mxu0 %v4751_v1  ;;  %v9405_v23 = vand.u32 4294901760, %v9404_v48  ;;  %v9407_v49 = vand.u32 4294901760, %v9406_v62  ;;  %v9408_v1 = vld [vmem:[#allocation68_spill] sm:$0xff]  ;;  %v9413_v22 = vand.u32 4294901760, %v9412_v33  ;;  %v9420_v48 = vld [vmem:[#allocation77_spill] sm:$0xff]  ;;  %v9426_v27 = vld [vmem:[#allocation82_spill] sm:$0xff] }
 0x486   : > { %v4755_v43 = vpack.c.bf16 %v9401_v2, %v9399_v17  ;;  %5136 = vmatprep.subr.bf16.mxu1 %v5135_v25  ;;  %v9409_v37 = vand.u32 4294901760, %v9408_v1  ;;  %v9414_v17 = vld [vmem:[#allocation73_spill] sm:$0xff]  ;;  %v9417_v2 = vand.u32 4294901760, %v9416_v56  ;;  %v9428_v33 = vld [vmem:[#allocation83_spill] sm:$0xff]  ;;  %v9432_v56 = vld [vmem:[#allocation86_spill] sm:$0xff] }
 0x487   : > { %v5139_v21 = vpack.c.bf16 %v9405_v23, %v9403_v29  ;;  %v5141_v53 = vpack.c.bf16 %v9413_v22, %v9411_v20  ;;  %v9415_v25 = vand.u32 4294901760, %v9414_v17  ;;  %v9418_v29 = vld [vmem:[#allocation75_spill] sm:$0xff]  ;;  %v9421_v23 = vand.u32 4294901760, %v9420_v48  ;;  %v9436_v48 = vld [vmem:[#allocation89_spill] sm:$0xff] }
 0x488   : > { %4754 = vmatpush1.bf16.msra.mxu0 %v4753_v50  ;;  %v4757_v38 = vpack.c.bf16 %v9409_v37, %v9407_v49  ;;  %v9419_v50 = vand.u32 4294901760, %v9418_v29  ;;  %v9422_v49 = vld [vmem:[#allocation79_spill] sm:$0xff]  ;;  %v9427_v20 = vand.u32 4294901760, %v9426_v27  ;;  %v9429_v22 = vand.u32 4294901760, %v9428_v33  ;;  %v9442_v27 = vld [vmem:[#allocation94_spill] sm:$0xff] }
 0x489   : > { %5138 = vmatpush1.bf16.msra.mxu1 %v5137_v41  ;;  %4756 = vmatprep.subr.bf16.mxu0 %v4755_v43  ;;  %v4759_v26 = vpack.c.bf16 %v9417_v2, %v9415_v25  ;;  %v9423_v41 = vand.u32 4294901760, %v9422_v49  ;;  %v9424_v43 = vld [vmem:[#allocation80_spill] sm:$0xff]  ;;  %v9430_v25 = vld [vmem:[#allocation85_spill] sm:$0xff]  ;;  %v9433_v2 = vand.u32 4294901760, %v9432_v56  ;;  %v9444_v33 = vld [vmem:[#allocation95_spill] sm:$0xff] }
 0x48a   : > { %5140 = vmatprep.subr.bf16.mxu1 %v5139_v21  ;;  %v5143_v62 = vpack.c.bf16 %v9421_v23, %v9419_v50  ;;  %v9425_v1 = vand.u32 4294901760, %v9424_v43  ;;  %v5145_v17 = vpack.c.bf16 %v9429_v22, %v9427_v20  ;;  %v9431_v21 = vand.u32 4294901760, %v9430_v25  ;;  %v9434_v50 = vld [vmem:[#allocation87_spill] sm:$0xff]  ;;  %v9448_v56 = vld [vmem:[#allocation102_spill] sm:$0xff] }
 0x48b   : > { %v9437_v23 = vand.u32 4294901760, %v9436_v48  ;;  %v9443_v20 = vand.u32 4294901760, %v9442_v27  ;;  %v9445_v22 = vand.u32 4294901760, %v9444_v33  ;;  %v9452_v48 = vld [vmem:[#allocation104_spill] sm:$0xff]  ;;  %v9458_v27 = vld [vmem:[#allocation107_spill] sm:$0xff] }
 0x48c   : > { %4758 = vmatpush1.bf16.msra.mxu0 %v4757_v38  ;;  %v4761_v37 = vpack.c.bf16 %v9425_v1, %v9423_v41  ;;  %v4763_v29 = vpack.c.bf16 %v9433_v2, %v9431_v21  ;;  %v9435_v38 = vand.u32 4294901760, %v9434_v50  ;;  %v9438_v41 = vld [vmem:[#allocation91_spill] sm:$0xff]  ;;  %v9446_v21 = vld [vmem:[#allocation101_spill] sm:$0xff]  ;;  %v9449_v2 = vand.u32 4294901760, %v9448_v56  ;;  %v9460_v33 = vld [vmem:[#allocation108_spill] sm:$0xff] }
 0x48d   : > { %5142 = vmatpush1.bf16.msra.mxu1 %v5141_v53  ;;  %4760 = vmatprep.subr.bf16.mxu0 %v4759_v26  ;;  %v9439_v53 = vand.u32 4294901760, %v9438_v41  ;;  %v9440_v26 = vld [vmem:[#allocation92_spill] sm:$0xff]  ;;  %v5149_v25 = vpack.c.bf16 %v9445_v22, %v9443_v20  ;;  %v9459_v20 = vand.u32 4294901760, %v9458_v27  ;;  %v9461_v22 = vand.u32 4294901760, %v9460_v33 }
 0x48e   : > { %5144 = vmatprep.subr.bf16.mxu1 %v5143_v62  ;;  %v5147_v49 = vpack.c.bf16 %v9437_v23, %v9435_v38  ;;  %v9441_v43 = vand.u32 4294901760, %v9440_v26  ;;  %v9447_v62 = vand.u32 4294901760, %v9446_v21  ;;  %v9450_v38 = vld [vmem:[#allocation103_spill] sm:$0xff]  ;;  %v9453_v23 = vand.u32 4294901760, %v9452_v48 }
 0x48f   : > { %v5153_v21 = vpack.c.bf16 %v9461_v22, %v9459_v20  ;;  %v9477_v27 = vand.u32 4294901760, %v9087_v13  ;;  %v9478_v20 = vand.u32 4294901760, %v9091_v12  ;;  %v9481_v22 = vand.u32 4294901760, %v9233_v60 }
 0x490   : > { %4762 = vmatpush1.bf16.msra.mxu0 %v4761_v37  ;;  %v4765_v1 = vpack.c.bf16 %v9441_v43, %v9439_v53  ;;  %v4767_v50 = vpack.c.bf16 %v9449_v2, %v9447_v62  ;;  %v9451_v37 = vand.u32 4294901760, %v9450_v38  ;;  %v9454_v53 = vld [vmem:[#allocation105_spill] sm:$0xff]  ;;  %v9466_v38 = vand.u32 4294901760, %v9224_v45 }
 0x491   : > { %5146 = vmatpush1.bf16.msra.mxu1 %v5145_v17  ;;  %4764 = vmatprep.subr.bf16.mxu0 %v4763_v29  ;;  %v9455_v17 = vand.u32 4294901760, %v9454_v53  ;;  %v9456_v29 = vld [vmem:[#allocation106_spill] sm:$0xff]  ;;  %v9463_v62 = vld [vmem:[#allocation113_spill] sm:$0xff]  ;;  %v9470_v53 = vand.u32 4294901760, %v9227_v24  ;;  %v9475_v45 = vand.u32 4294901760, %v9231_v63  ;;  %v4777_v24 = vpack.c.bf16 %v9478_v20, %v9477_v27 }
 0x492   : > { %5148 = vmatprep.subr.bf16.mxu1 %v5147_v49  ;;  %v5151_v41 = vpack.c.bf16 %v9453_v23, %v9451_v37  ;;  %v9457_v26 = vand.u32 4294901760, %v9456_v29  ;;  %v9462_v49 = vand.u32 4294901760, %v9221_v44  ;;  %v9464_v56 = vand.u32 4294901760, %v9463_v62  ;;  %v9473_v29 = vld [vmem:[#allocation144_spill] sm:$0xff] }
 0x493   : > { %v9471_v44 = vand.u32 4294901760, %v9228_v39  ;;  %v9479_v39 = vand.u32 4294901760, %v9092_v28  ;;  %v9482_v63 = vand.u32 4294901760, %v9234_v58  ;;  %v9486_v12 = vand.u32 4294901760, %v9105_v54 }
 0x494   : > { %4766 = vmatpush1.bf16.msra.mxu0 %v4765_v1  ;;  %v4769_v43 = vpack.c.bf16 %v9457_v26, %v9455_v17  ;;  %v4771_v2 = vpack.c.bf16 %v9464_v56, %v9462_v49  ;;  %v9465_v1 = vand.u32 4294901760, %v9223_v8  ;;  %v9474_v8 = vand.u32 4294901760, %v9473_v29  ;;  %v9484_v49 = vld [vmem:[#allocation154_spill] sm:$0xff] }
 0x495   : > { %5150 = vmatpush1.bf16.msra.mxu1 %v5149_v25  ;;  %4768 = vmatprep.subr.bf16.mxu0 %v4767_v50  ;;  %v9467_v25 = vand.u32 4294901760, %v9225_v16  ;;  %v9468_v50 = vld [vmem:[#allocation117_spill] sm:$0xff]  ;;  %v5157_v17 = vpack.c.bf16 %v9471_v44, %v9470_v53  ;;  %v9476_v16 = vand.u32 4294901760, %v9232_v19  ;;  %v9483_v19 = vand.u32 4294901760, %v9103_v18  ;;  %v9501_v53 = vld [vmem:[#allocation166_spill] sm:$0xff] }
 0x496   : > { %5152 = vmatprep.subr.bf16.mxu1 %v5151_v41  ;;  %v5155_v37 = vpack.c.bf16 %v9466_v38, %v9465_v1  ;;  %v9469_v48 = vand.u32 4294901760, %v9468_v50  ;;  %v9472_v41 = vand.u32 4294901760, %v9229_v51  ;;  %v9480_v51 = vand.u32 4294901760, %v9095_v34  ;;  %v9507_v29 = vld [vmem:[#allocation170_spill] sm:$0xff] }
 0x497   : > { %v9485_v13 = vand.u32 4294901760, %v9484_v49  ;;  %v9487_v56 = vand.u32 4294901760, %v9106_v0  ;;  %v9488_v34 = vand.u32 4294901760, %v9113_v10  ;;  %v9489_v60 = vand.u32 4294901760, %v9123_v6  ;;  %v9496_v6 = vld [vmem:[#allocation163_spill] sm:$0xff] }
 0x498   : > { %4770 = vmatpush1.bf16.msra.mxu0 %v4769_v43  ;;  %v4773_v23 = vpack.c.bf16 %v9469_v48, %v9467_v25  ;;  %v4775_v26 = vpack.c.bf16 %v9474_v8, %v9472_v41  ;;  %v5159_v43 = vpack.c.bf16 %v9476_v16, %v9475_v45  ;;  %v5161_v33 = vpack.c.bf16 %v9480_v51, %v9479_v39  ;;  %v9515_v39 = vld [vmem:[#allocation175_spill] sm:$0xff] }
 0x499   : > { %5154 = vmatpush1.bf16.msra.mxu1 %v5153_v21  ;;  %4772 = vmatprep.subr.bf16.mxu0 %v4771_v2  ;;  %v4779_v21 = vpack.c.bf16 %v9482_v63, %v9481_v22  ;;  %v5163_v62 = vpack.c.bf16 %v9485_v13, %v9483_v19  ;;  %v4781_v28 = vpack.c.bf16 %v9487_v56, %v9486_v12  ;;  %v9490_v2 = vand.u32 4294901760, %v9130_v47  ;;  %v9498_v47 = vld [vmem:[#allocation164_spill] sm:$0xff]  ;;  %v9523_v49 = vld [vmem:[#allocation179_spill] sm:$0xff]  ;;  %v9527_v56 = vld [vmem:[#allocation182_spill] sm:$0xff] }
 0x49a   : > { %5156 = vmatprep.subr.bf16.mxu1 %v5155_v37  ;;  %v5165_v58 = vpack.c.bf16 %v9489_v60, %v9488_v34  ;;  %v9491_v18 = vand.u32 4294901760, %v9131_v4  ;;  %v9492_v38 = vand.u32 4294901760, %v6471_v55  ;;  %v9493_v54 = vand.u32 4294901760, %v6476_v31  ;;  %v9519_v63 = vld [vmem:[#allocation176_spill] sm:$0xff] }
 0x49b   : > { %v9494_v0 = vand.u32 4294901760, %v9237_v61  ;;  %v9495_v25 = vand.u32 4294901760, %v9236_v40  ;;  %v9497_v50 = vand.u32 4294901760, %v9496_v6  ;;  %v9499_v48 = vand.u32 4294901760, %v9498_v47  ;;  %v9529_v34 = vld [vmem:[#allocation140_spill] sm:$0xff]  ;;  %v9541_v47 = vld [vmem:[#allocation193_spill] sm:$0xff] }
 0x49c   : > { %4774 = vmatpush1.bf16.msra.mxu0 %v4773_v23  ;;  %v4783_v1 = vpack.c.bf16 %v9491_v18, %v9490_v2  ;;  %v5167_v37 = vpack.c.bf16 %v9493_v54, %v9492_v38  ;;  %v9500_v23 = vand.u32 4294901760, %v9107_v36  ;;  %v9502_v55 = vand.u32 4294901760, %v9501_v53  ;;  %v9510_v36 = vld [vmem:[#allocation171_spill] sm:$0xff] }
 0x49d   : > { %5158 = vmatpush1.bf16.msra.mxu1 %v5157_v17  ;;  %4776 = vmatprep.subr.bf16.mxu0 %v4775_v26  ;;  %v4785_v10 = vpack.c.bf16 %v9495_v25, %v9494_v0  ;;  %v5169_v4 = vpack.c.bf16 %v9499_v48, %v9497_v50  ;;  %v9503_v31 = vand.u32 4294901760, %v9109_v11  ;;  %v9504_v17 = vld [vmem:[#allocation168_spill] sm:$0xff]  ;;  %v9506_v40 = vand.u32 4294901760, %v9242_v57  ;;  %v9535_v38 = vld [vmem:[#allocation187_spill] sm:$0xff]  ;;  %v9538_v25 = vld [vmem:[#allocation190_spill] sm:$0xff] }
 0x49e   : > { %5160 = vmatprep.subr.bf16.mxu1 %v5159_v43  ;;  %v4787_v44 = vpack.c.bf16 %v9502_v55, %v9500_v23  ;;  %v9505_v61 = vand.u32 4294901760, %v9504_v17  ;;  %v9508_v8 = vand.u32 4294901760, %v9507_v29  ;;  %v9509_v45 = vand.u32 4294901760, %v6533_v35  ;;  %v9544_v23 = vld [vmem:[#allocation196_spill] sm:$0xff]  ;;  %v9546_v55 = vld [vmem:[#allocation197_spill] sm:$0xff] }
 0x49f   : > { %v9511_v16 = vand.u32 4294901760, %v9510_v36  ;;  %v9512_v27 = vand.u32 4294901760, %v9246_v5  ;;  %v9513_v11 = vand.u32 4294901760, %v9245_v3  ;;  %v9516_v57 = vand.u32 4294901760, %v9515_v39  ;;  %v9521_v5 = vld [vmem:[#allocation177_spill] sm:$0xff]  ;;  %v9559_v36 = vld [vmem:[#allocation34_spill] sm:$0xff] }
 0x4a0   : > { %4778 = vmatpush1.bf16.msra.mxu0 %v4777_v24  ;;  %v5171_v41 = vpack.c.bf16 %v9505_v61, %v9503_v31  ;;  %v4789_v26 = vpack.c.bf16 %v9508_v8, %v9506_v40  ;;  %v9514_v24 = vand.u32 4294901760, %v9249_v7  ;;  %v9518_v22 = vand.u32 4294901760, %v6568_v52  ;;  %v9551_v61 = vld [vmem:[#allocation16_spill] sm:$0xff]  ;;  %v9554_v40 = vld [vmem:[#allocation18_spill] sm:$0xff]  ;;  %v9555_v29 = vld [vmem:[#allocation21_spill] sm:$0xff] }
 0x4a1   : > { %5162 = vmatpush1.bf16.msra.mxu1 %v5161_v33  ;;  %4780 = vmatprep.subr.bf16.mxu0 %v4779_v21  ;;  %v5173_v43 = vpack.c.bf16 %v9511_v16, %v9509_v45  ;;  %v4791_v20 = vpack.c.bf16 %v9513_v11, %v9512_v27  ;;  %v9517_v33 = vand.u32 4294901760, %v6563_v9  ;;  %v9520_v21 = vand.u32 4294901760, %v9519_v63  ;;  %v9556_v8 = vld [vmem:[#allocation25_spill] sm:$0xff]  ;;  %v9558_v45 = vld [vmem:[#allocation31_spill] sm:$0xff]  ;;  %v9560_v16 = vld [vmem:[#allocation36_spill] sm:$0xff] }
 0x4a2   : > { %5164 = vmatprep.subr.bf16.mxu1 %v5163_v62  ;;  %v5175_v51 = vpack.c.bf16 %v9516_v57, %v9514_v24  ;;  %v9522_v19 = vand.u32 4294901760, %v9521_v5  ;;  %v9524_v13 = vand.u32 4294901760, %v9523_v49  ;;  %v9525_v62 = vld [vmem:[#allocation180_spill] sm:$0xff]  ;;  %v9530_v9 = vand.u32 4294901760, %v9529_v34  ;;  %v9562_v27 = vld [vmem:[#allocation42_spill] sm:$0xff]  ;;  %v9563_v11 = vld [vmem:[#allocation45_spill] sm:$0xff] }
 0x4a3   : > { %v4793_v35 = vpack.c.bf16 %v9518_v22, %v9517_v33  ;;  %v9526_v7 = vand.u32 4294901760, %v9525_v62  ;;  %v9531_v52 = vand.u32 4294901760, %v9258_v42  ;;  %v9536_v54 = vand.u32 4294901760, %v9535_v38  ;;  %v9567_v24 = vld [vmem:[#allocation57_spill] sm:$0xff]  ;;  %v9568_v39 = vld [vmem:[#allocation60_spill] sm:$0xff]  ;;  %v9574_v63 = vld [vmem:[#allocation78_spill] sm:$0xff] }
 0x4a4   : > { %4782 = vmatpush1.bf16.msra.mxu0 %v4781_v28  ;;  %v5177_v3 = vpack.c.bf16 %v9522_v19, %v9520_v21  ;;  %v9528_v28 = vand.u32 4294901760, %v9527_v56  ;;  %v9537_v0 = vand.u32 4294901760, %v9261_v46  ;;  %v9540_v50 = vand.u32 4294901760, %v9264_v30  ;;  %v9548_v46 = vld [vmem:[#allocation199_spill] sm:$0xff]  ;;  %v9550_v30 = vld [vmem:[#allocation12_spill] sm:$0xff]  ;;  %v9571_v33 = vld [vmem:[#allocation69_spill] sm:$0xff] }
 0x4a5   : > { %5166 = vmatpush1.bf16.msra.mxu1 %v5165_v58  ;;  %4784 = vmatprep.subr.bf16.mxu0 %v4783_v1  ;;  %v4795_v12 = vpack.c.bf16 %v9526_v7, %v9524_v13  ;;  %v9532_v58 = vld [vmem:[#allocation184_spill] sm:$0xff]  ;;  %v9534_v1 = vand.u32 4294901760, %v9042_v59  ;;  %v9542_v42 = vand.u32 4294901760, %v9541_v47  ;;  %v9545_v53 = vand.u32 4294901760, %v9544_v23  ;;  %v9575_v21 = vld [vmem:[#allocation81_spill] sm:$0xff]  ;;  %v9581_v62 = vld [vmem:[#allocation98_spill] sm:$0xff] }
 0x4a6   : > { %5168 = vmatprep.subr.bf16.mxu1 %v5167_v37  ;;  %v5179_v60 = vpack.c.bf16 %v9530_v9, %v9528_v28  ;;  %v9533_v2 = vand.u32 4294901760, %v9532_v58  ;;  %v9549_v31 = vand.u32 4294901760, %v9548_v46  ;;  %v9569_v57 = vld [vmem:[#allocation64_spill] sm:$0xff]  ;;  %v9579_v49 = vld [vmem:[#allocation93_spill] sm:$0xff]  ;;  %v9582_v7 = vld [vmem:[#allocation99_spill] sm:$0xff] }
 0x4a7   : > { %v5181_v37 = vpack.c.bf16 %v9536_v54, %v9534_v1  ;;  %v5183_v48 = vpack.c.bf16 %v9542_v42, %v9540_v50  ;;  %v9572_v22 = vld [vmem:[#allocation72_spill] sm:$0xff]  ;;  %v9584_v56 = vld [vmem:[#allocation109_spill] sm:$0xff]  ;;  %v9585_v28 = vld [vmem:[#allocation110_spill] sm:$0xff] }
 0x4a8   : > { %4786 = vmatpush1.bf16.msra.mxu0 %v4785_v10  ;;  %v4797_v18 = vpack.c.bf16 %v9533_v2, %v9531_v52  ;;  %v9539_v10 = vand.u32 4294901760, %v9538_v25  ;;  %v9576_v5 = vld [vmem:[#allocation84_spill] sm:$0xff]  ;;  %v9586_v34 = vld [vmem:[#allocation111_spill] sm:$0xff]  ;;  %v9587_v9 = vld [vmem:[#allocation118_spill] sm:$0xff] }
 0x4a9   : > { %5170 = vmatpush1.bf16.msra.mxu1 %v5169_v4  ;;  %4788 = vmatprep.subr.bf16.mxu0 %v4787_v44  ;;  %v9543_v4 = vand.u32 4294901760, %v9267_v32  ;;  %v9547_v44 = vand.u32 4294901760, %v9546_v55  ;;  %v9553_v32 = vld [vmem:[#allocation239_spill] sm:$0xff]  ;;  %v9577_v19 = vld [vmem:[#allocation88_spill] sm:$0xff]  ;;  %v9589_v52 = vld [vmem:[#allocation122_spill] sm:$0xff] }
 0x4aa   : > { %5172 = vmatprep.subr.bf16.mxu1 %v5171_v41  ;;  %v4799_v6 = vpack.c.bf16 %v9539_v10, %v9537_v0  ;;  %v9552_v41 = vld [vmem:[#allocation238_spill] sm:$0xff]  ;;  %v9580_v13 = vld [vmem:[#allocation96_spill] sm:$0xff]  ;;  %v9590_v58 = vld [vmem:[#allocation123_spill] sm:$0xff] }
 0x4ab   : > { %v4801_v59 = vpack.c.bf16 %v9545_v53, %v9543_v4  ;;  %v5185_v17 = vpack.c.bf16 %v9549_v31, %v9547_v44  ;;  %v9591_v2 = vld [vmem:[#allocation124_spill] sm:$0xff]  ;;  %v9593_v1 = vld [vmem:[#allocation126_spill] sm:$0xff]  ;;  %v9594_v38 = vld [vmem:[#allocation127_spill] sm:$0xff] }
 0x4ac   : > { %4790 = vmatpush1.bf16.msra.mxu0 %v4789_v26  ;;  %v9557_v26 = vld [vmem:[#allocation27_spill] sm:$0xff]  ;;  %v9595_v54 = vld [vmem:[#allocation128_spill] sm:$0xff]  ;;  %v9597_v0 = vld [vmem:[#allocation130_spill] sm:$0xff] }
 0x4ad   : > { %5174 = vmatpush1.bf16.msra.mxu1 %v5173_v43  ;;  %4792 = vmatprep.subr.bf16.mxu0 %v4791_v20  ;;  %v9561_v43 = vld [vmem:[#allocation39_spill] sm:$0xff]  ;;  %v9599_v10 = vld [vmem:[#allocation132_spill] sm:$0xff]  ;;  %v9601_v50 = vld [vmem:[#allocation134_spill] sm:$0xff] }
 0x4ae   : > { %5176 = vmatprep.subr.bf16.mxu1 %v5175_v51  ;;  %v9565_v20 = vld [vmem:[#allocation51_spill] sm:$0xff]  ;;  %v9570_v51 = vld [vmem:[#allocation66_spill] sm:$0xff]  ;;  %v9603_v42 = vld [vmem:[#allocation136_spill] sm:$0xff] }
 0x4af   : > { %v9598_v25 = vld [vmem:[#allocation131_spill] sm:$0xff]  ;;  %v9605_v4 = vld [vmem:[#allocation138_spill] sm:$0xff]  ;;  %v9609_v55 = vld [vmem:[#allocation181_spill] sm:$0xff] }
 0x4b0   : > { %4794 = vmatpush1.bf16.msra.mxu0 %v4793_v35  ;;  %v9573_v35 = vld [vmem:[#allocation76_spill] sm:$0xff]  ;;  %v9602_v47 = vld [vmem:[#allocation135_spill] sm:$0xff]  ;;  %v9607_v53 = vld [vmem:[#allocation142_spill] sm:$0xff] }
 0x4b1   : > { %5178 = vmatpush1.bf16.msra.mxu1 %v5177_v3  ;;  %4796 = vmatprep.subr.bf16.mxu0 %v4795_v12  ;;  %v9578_v3 = vld [vmem:[#allocation90_spill] sm:$0xff]  ;;  %v9583_v12 = vld [vmem:[#allocation100_spill] sm:$0xff]  ;;  %v9606_v23 = vld [vmem:[#allocation139_spill] sm:$0xff] }
 0x4b2   : > { %5180 = vmatprep.subr.bf16.mxu1 %v5179_v60  ;;  %v9588_v60 = vld [vmem:[#allocation121_spill] sm:$0xff]  ;;  %v9610_v44 = vld [vmem:[#allocation183_spill] sm:$0xff] }
 0x4b3   : > { %v9611_v46 = vld [vmem:[#allocation185_spill] sm:$0xff] }
 0x4b4   : > { %4798 = vmatpush1.bf16.msra.mxu0 %v4797_v18  ;;  %v9592_v18 = vld [vmem:[#allocation125_spill] sm:$0xff] }
 0x4b5   : > { %5182 = vmatpush1.bf16.msra.mxu1 %v5181_v37  ;;  %4800 = vmatprep.subr.bf16.mxu0 %v4799_v6  ;;  %v9596_v37 = vld [vmem:[#allocation129_spill] sm:$0xff] }
 0x4b6   : > { %5184 = vmatprep.subr.bf16.mxu1 %v5183_v48  ;;  %v9600_v6 = vld [vmem:[#allocation133_spill] sm:$0xff] }
 0x4b7   : > { %v9604_v48 = vld [vmem:[#allocation137_spill] sm:$0xff] }
 0x4b8   : > { %4802 = vmatpush1.bf16.msra.mxu0 %v4801_v59  ;;  %v9608_v59 = vld [vmem:[#allocation178_spill] sm:$0xff]  ;;  %v9612_v31 = vld [vmem:[#allocation189_spill] sm:$0xff] }
 0x4b9   : > { %5186 = vmatpush1.bf16.msra.mxu1 %v5185_v17  ;;  %4804 = vmatprep.subr.bf16.mxu0 %v9550_v30  ;;  %v9613_v17 = vld [vmem:[#allocation191_spill] sm:$0xff] }
 0x4ba   : > { %5188 = vmatprep.subr.bf16.mxu1 %v9551_v61  ;;  %v9614_v30 = vld [vmem:[#allocation195_spill] sm:$0xff]  ;;  %v9615_v61 = vld [vmem:[#allocation198_spill] sm:$0xff] }
 0x4bb   : > { %2726 = vmatmul.mubr.f32.vlgmr.msra.gmra.mrb[2].mxu0 %v9552_v41 }
 0x4bc   : > { %4010 = vmatmul.mubr.f32.vlgmr.msra.gmra.mrb[4].mxu1 %v9553_v32  ;;  %4806 = vmatpush1.bf16.msra.mxu0 %v9554_v40 }
 0x4bd   : > { %2861 = vmatprep.mubr.f32.mxu0 %v9360_v14  ;;  %5190 = vmatpush1.bf16.msra.mxu1 %v9555_v29  ;;  %v9564_v14 = vld [vmem:[#allocation48_spill] sm:$0xff]  ;;  %v9616_v29 = vld [vmem:[#allocation97_spill] sm:$0xff] }
 0x4be   : > { %4145 = vmatprep.mubr.f32.mxu1 %v9369_v15  ;;  %4808 = vmatprep.subr.bf16.mxu0 %v9556_v8  ;;  %v9566_v15 = vld [vmem:[#allocation55_spill] sm:$0xff] }
 0x4bf   : > { %5192 = vmatprep.subr.bf16.mxu1 %v9557_v26 }
 0x4c0   : > { %4810 = vmatpush1.bf16.msra.mxu0 %v9558_v45 }
 0x4c1   : > { %5194 = vmatpush1.bf16.msra.mxu1 %v9559_v36  ;;  %4812 = vmatprep.subr.bf16.mxu0 %v9560_v16 }
 0x4c2   : > { %5196 = vmatprep.subr.bf16.mxu1 %v9561_v43 }
 0x4c4   : > { %4814 = vmatpush1.bf16.msra.mxu0 %v9562_v27 }
 0x4c5   : > { %5198 = vmatpush1.bf16.msra.mxu1 %v9563_v11  ;;  %4816 = vmatprep.subr.bf16.mxu0 %v9564_v14 }
 0x4c6   : > { %5200 = vmatprep.subr.bf16.mxu1 %v9565_v20 }
 0x4c8   : > { %4818 = vmatpush1.bf16.msra.mxu0 %v9566_v15 }
 0x4c9   : > { %5202 = vmatpush1.bf16.msra.mxu1 %v9567_v24  ;;  %4820 = vmatprep.subr.bf16.mxu0 %v9568_v39 }
 0x4ca   : > { %5204 = vmatprep.subr.bf16.mxu1 %v9569_v57 }
 0x4cc   : > { %4822 = vmatpush1.bf16.msra.mxu0 %v9570_v51 }
 0x4cd   : > { %5206 = vmatpush1.bf16.msra.mxu1 %v9571_v33  ;;  %4824 = vmatprep.subr.bf16.mxu0 %v9572_v22 }
 0x4ce   : > { %5208 = vmatprep.subr.bf16.mxu1 %v9573_v35  ;;  %v9617_v35 = vld [vmem:[#allocation222_spill] sm:$0xff] }
 0x4d0   : > { %4826 = vmatpush1.bf16.msra.mxu0 %v9574_v63 }
 0x4d1   : > { %5210 = vmatpush1.bf16.msra.mxu1 %v9575_v21  ;;  %4828 = vmatprep.subr.bf16.mxu0 %v9576_v5  ;;  %v9618_v21 = vld [vmem:[#allocation220_spill] sm:$0xff] }
 0x4d2   : > { %5212 = vmatprep.subr.bf16.mxu1 %v9577_v19  ;;  %v9619_v19 = vld [vmem:[#allocation227_spill] sm:$0xff] }
 0x4d4   : > { %4830 = vmatpush1.bf16.msra.mxu0 %v9578_v3 }
 0x4d5   : > { %5214 = vmatpush1.bf16.msra.mxu1 %v9579_v49  ;;  %4832 = vmatprep.subr.bf16.mxu0 %v9580_v13  ;;  %v9620_v49 = vld [vmem:[#allocation230_spill] sm:$0xff] }
 0x4d6   : > { %5216 = vmatprep.subr.bf16.mxu1 %v9581_v62  ;;  %v9621_v62 = vld [vmem:[#allocation223_spill] sm:$0xff] }
 0x4d8   : > { %4834 = vmatpush1.bf16.msra.mxu0 %v9582_v7 }
 0x4d9   : > { %5218 = vmatpush1.bf16.msra.mxu1 %v9583_v12  ;;  %4836 = vmatprep.subr.bf16.mxu0 %v9584_v56  ;;  %v9622_v12 = vld [vmem:[#allocation221_spill] sm:$0xff] }
 0x4da   : > { %5220 = vmatprep.subr.bf16.mxu1 %v9585_v28  ;;  %v9623_v28 = vld [vmem:[#allocation228_spill] sm:$0xff] }
 0x4dc   : > { %4838 = vmatpush1.bf16.msra.mxu0 %v9586_v34 }
 0x4dd   : > { %5222 = vmatpush1.bf16.msra.mxu1 %v9587_v9  ;;  %4840 = vmatprep.subr.bf16.mxu0 %v9588_v60  ;;  %v9624_v9 = vld [vmem:[#allocation231_spill] sm:$0xff] }
 0x4de   : > { %5224 = vmatprep.subr.bf16.mxu1 %v9589_v52 }
 0x4e0   : > { %4842 = vmatpush1.bf16.msra.mxu0 %v9590_v58 }
 0x4e1   : > { %5226 = vmatpush1.bf16.msra.mxu1 %v9591_v2  ;;  %4844 = vmatprep.subr.bf16.mxu0 %v9592_v18 }
 0x4e2   : > { %5228 = vmatprep.subr.bf16.mxu1 %v9593_v1 }
 0x4e4   : > { %4846 = vmatpush1.bf16.msra.mxu0 %v9594_v38 }
 0x4e5   : > { %5230 = vmatpush1.bf16.msra.mxu1 %v9595_v54  ;;  %4848 = vmatprep.subr.bf16.mxu0 %v9596_v37 }
 0x4e6   : > { %5232 = vmatprep.subr.bf16.mxu1 %v9597_v0 }
 0x4e8   : > { %4850 = vmatpush1.bf16.msra.mxu0 %v9598_v25 }
 0x4e9   : > { %5234 = vmatpush1.bf16.msra.mxu1 %v9599_v10  ;;  %4852 = vmatprep.subr.bf16.mxu0 %v9600_v6 }
 0x4ea   : > { %5236 = vmatprep.subr.bf16.mxu1 %v9601_v50 }
 0x4ec   : > { %4854 = vmatpush1.bf16.msra.mxu0 %v9602_v47 }
 0x4ed   : > { %5238 = vmatpush1.bf16.msra.mxu1 %v9603_v42  ;;  %4856 = vmatprep.subr.bf16.mxu0 %v9604_v48 }
 0x4ee   : > { %5240 = vmatprep.subr.bf16.mxu1 %v9605_v4 }
 0x4f0   : > { %4858 = vmatpush1.bf16.msra.mxu0 %v9606_v23 }
 0x4f1   : > { %5242 = vmatpush1.bf16.msra.mxu1 %v9607_v53  ;;  %4860 = vmatprep.subr.bf16.mxu0 %v9608_v59 }
 0x4f2   : > { %5244 = vmatprep.subr.bf16.mxu1 %v9609_v55 }
 0x4f4   : > { %4862 = vmatpush1.bf16.msra.mxu0 %v9610_v44 }
 0x4f5   : > { %5246 = vmatpush1.bf16.msra.mxu1 %v9611_v46  ;;  %4864 = vmatprep.subr.bf16.mxu0 %v9612_v31 }
 0x4f6   : > { %5248 = vmatprep.subr.bf16.mxu1 %v9613_v17 }
 0x4f8   : > { %4866 = vmatpush1.bf16.msra.mxu0 %v9614_v30 }
 0x4f9   : > { %5250 = vmatpush1.bf16.msra.mxu1 %v9615_v61 }
 0x4fb   : > { %2863 = vmatmul.mubr.f32.vlgmr.msra.gmra.mrb[2].mxu0 %v9552_v41 }
 0x4fc   : > { %4147 = vmatmul.mubr.f32.vlgmr.msra.gmra.mrb[4].mxu1 %v9553_v32 }
 0x4ff   : > { %v1579_v40 = vpop.permute.xlu0 %1578 }
 0x500   : > { %v1584_v8 = vrot.slane %v1579_v40, %v9616_v29 }
 0x5ce   : > { %v2864_v26 = vpop.f32.mrb[2].mxu0 }
 0x5cf   : > { %v5254_v45 = vadd.f32 %v2864_v26, %v1584_v8  ;;  %v4148_v36 = vpop.f32.mrb[4].mxu1  ;;  %v2866_v16 = vpop.f32.mrb[3].mxu0 }
 0x5d0   : > { %v5256_v43 = vadd.f32 %v2866_v16, %v1584_v8  ;;  %v4150_v27 = vpop.f32.mrb[5].mxu1 }
 0x5d1   : > { %v5255_v11 = vadd.f32 %v5254_v45, %v4148_v36 }
 0x5d2   : > { %v5257_v14 = vadd.f32 %v5256_v43, %v4150_v27 }
 0x5d3   : > { %v4300_v20 = vmul.f32 -1.442695, %v5255_v11 }
 0x5d4   : > { %v4301_v15 = vmul.f32 -1.442695, %v5257_v14 }
 0x5d5   : > { %5366 = vpow2.f32 %v4300_v20 }
 0x5d6   : > { %5368 = vpow2.f32 %v4301_v15 }
 0x5df   : > { %v5367_v41 = vpop.eup %5366 }
 0x5e0   : > { %v5369_v24 = vpop.eup %5368  ;;  %v4159_v32 = vadd.f32 1.0, %v5367_v41 }
 0x5e1   : > { %v4160_v39 = vadd.f32 1.0, %v5369_v24 }
 0x5e2   : > { %5370 = vrcp.f32 %v4159_v32 }
 0x5e3   : > { %5372 = vrcp.f32 %v4160_v39 }
 0x5ec   : > { %v5371_v57 = vpop.eup %5370 }
 0x5ed   : > { %v5373_v51 = vpop.eup %5372  ;;  %v4168_v33 = vrot.slane %v5371_v57, %v9616_v29 }
 0x5ee   : > { %v4172_v22 = vrot.slane %v5373_v51, %v9616_v29 }
 0x5ef   : > { %v4173_v63 = vmul.f32 %v4168_v33, %v9617_v35  ;;  %v4175_v5 = vmul.f32 %v4168_v33, %v9618_v21  ;;  %v4177_v3 = vmul.f32 %v4168_v33, %v9619_v19  ;;  %v4179_v13 = vmul.f32 %v4168_v33, %v9620_v49 }
 0x5f0   : > { %v4174_v7 = vmul.f32 %v4172_v22, %v9621_v62  ;;  %v4176_v56 = vmul.f32 %v4172_v22, %v9622_v12  ;;  %v4178_v34 = vmul.f32 %v4172_v22, %v9623_v28  ;;  %v4180_v60 = vmul.f32 %v4172_v22, %v9624_v9 }
 0x5f1   : > { %4181 = vst [vmem:[%s313_s25] sm:$0xff] %v4173_v63  ;;  %4183 = vst [vmem:[%s313_s25 + $0x10] sm:$0xff] %v4175_v5 }
 0x5f2   : > { %4185 = vst [vmem:[%s313_s25 + $0x20] sm:$0xff] %v4177_v3  ;;  %4187 = vst [vmem:[%s313_s25 + $0x30] sm:$0xff] %v4179_v13 }
 0x5f3   : > { %4182 = vst [vmem:[%s313_s25 + $0x8] sm:$0xff] %v4174_v7  ;;  %4184 = vst [vmem:[%s313_s25 + $0x18] sm:$0xff] %v4176_v56 }
 0x5f4   : > { %4186 = vst [vmem:[%s313_s25 + $0x28] sm:$0xff] %v4178_v34  ;;  %4188 = vst [vmem:[%s313_s25 + $0x38] sm:$0xff] %v4180_v60 }
 0x5f5   : > { %5453 = shalt.err (!%p5450_p7)
}
 0x5f6   : > { %s5454_s23 = scalar_lea.hbm %s8071_s6, 1024  ;;  %s5458_s10 = scalar_lea.hbm %s8128_s7, 2048 }
 0x5f7   : > { %p5455_p9 = scmp.ne.s32.totalorder %s8071_s6, %s5454_s23  ;;  %p5459_p5 = scmp.lt.u32.totalorder %s8071_s6, %s8128_s7 }
 0x5f8   : > { %p5460_p11 = scmp.lt.u32.totalorder %s5458_s10, %s5454_s23  ;;  %p5462_p4 = scmp.lt.u32.totalorder %s5454_s23, %s8071_s6 }
 0x5f9   : > { %p5456_p1 = pnand %p5455_p9, %p5660_p12 }
 0x5fa   : > { %p5461_p2 = por %p5460_p11, %p5459_p5 }
 0x5fb   : > { %p5457_p0 = pneg %p5456_p1 }
 0x5fc   : > { %p5463_p6 = por %p5462_p4, %p5461_p2 }
 0x5fe   : > { %p5464_p8 = pnand %p5463_p6, %p5457_p0 }
 0x600   : > { %5467 = shalt.err (!%p5464_p8)
}
 0x601   : > { %s5521_s24 = smov 256   ;;  %s5522_s15 = smov 16  }
 0x602   : > { %5302 = dma.vmem_to_hbm [thread:$0]  (%p5660_p12), %s8073_s30, 1024, %s8071_s6, %s4190_s22, %s5521_s24, %s5521_s24, %s5522_s15  }
 0x603 PF: > { %s4218_s11 = sand.u32 1, %s5498_s26   ;;  %p9625_p10 = scmp.ne.s32.totalorder %s8583_s9, 0 }
 0x604   : > { %p9626_p13 = scmp.ge.s32.totalorder %s5510_s29, 2  ;;  %s4219_s13 = scalar_lea.sflag [#allocation5], %s4218_s11 }
 0x606   : > { %p5313_p3 = pnand %p9626_p13, %p9625_p10 }
 0x608   : > { %5493 = dma.done.wait (!%p5313_p3), %s4219_s13, 1024  }
 0x609   : > { %5495 = vsyncadd (!%p5313_p3), %s4219_s13, 4294966272  ;;  %p23_p7 = scmp.ge.s32.totalorder %s5622_s14, 4   ;;  %s9627_s26 = smov %s5502_s27 }
 0x60a   : > { %s9628_s27 = smov %s5506_s28  ;;  %s9629_s28 = smov %s5656_s18 }
 0x60b   : > { %s9630_s29 = smov %s5622_s14  ;;  %25 = sbr.rel (!%p23_p7) target bundleno = 9 (0x9), region = 97 }
 0x612   :  { %4224 = vsyncpa [#allocation4], 1 }
 0x613   :  { %4226 = vsyncpa [#allocation4 + $0x1], 1 }
 0x614   :  { %4227 = vsyncpa [#allocation7], 1 }
 0x615   :  { %4228 = vsyncpa [#allocation5], 1 }
 0x616   :  { %4230 = vsyncpa [#allocation5 + $0x1], 1 }

</bundles_post_ra>
